<compile_context>
chip_gen: v6e
topology: v6e:2x2x1
jax: 0.10.0
libtpu: 0.0.40
codegen_flags: <defaults>
</compile_context>

<pallas_src>
import functools

import jax
import jax.numpy as jnp
from jax.experimental import pallas as pl
from jax.experimental.pallas import tpu as pltpu

# Set to jnp.bfloat16 on v6e/v7x to halve MXU-operand bytes (accumulation stays
# f32).  Kept f32 here so the numerics match the PyTorch module exactly.
MXU_INPUT_DTYPE = jnp.float32


# ----------------------------------------------------------------------------
# Fused Conv2d(3x3, stride=1, pad=1) + bias + ReLU + MaxPool2d(2, 2) kernel
# ----------------------------------------------------------------------------
def _conv_relu_pool_kernel(x_ref, w_ref, b_ref, sel_ref, o_ref, *, H, W, Cin, Cout):
    """One batch element per grid step.

    x_ref:   (1, H+2, W+2, Cin)  zero-padded NHWC input tile
    w_ref:   (9*Cin, Cout)       conv weight, rows ordered (kh, kw, ci)
    b_ref:   (1, Cout)
    sel_ref: (4, Ho*Wo, H*W)     constant 0/1 pooling gather matrices
    o_ref:   (1, Ho*Wo, Cout)    pooled output, rows ordered (ho, wo)
    """
    x = x_ref[0]                                    # (H+2, W+2, Cin)
    w = w_ref[...]                                  # (9*Cin, Cout)

    # im2col-free conv: 9 accumulating matmuls over static VMEM slices.
    acc = jnp.zeros((H * W, Cout), jnp.float32)
    for kh in range(3):
        for kw in range(3):
            tap = x[kh:kh + H, kw:kw + W, :].reshape(H * W, Cin)
            wk = w[(kh * 3 + kw) * Cin:(kh * 3 + kw + 1) * Cin, :]
            acc += jnp.dot(tap.astype(MXU_INPUT_DTYPE),
                           wk.astype(MXU_INPUT_DTYPE),
                           preferred_element_type=jnp.float32)

    y = jnp.maximum(acc + b_ref[...], 0.0)          # bias + ReLU  (H*W, Cout)

    # 2x2 / stride-2 max pool: gather the 4 window positions with constant
    # 0/1 matrices on the MXU, then take the elementwise max.
    pooled = None
    for i in range(4):
        g = jnp.dot(sel_ref[i], y, preferred_element_type=jnp.float32)
        pooled = g if pooled is None else jnp.maximum(pooled, g)
    o_ref[0] = pooled.astype(o_ref.dtype)


def _pool_select_matrices(H, W):
    """sel[2*dh+dw] @ y gathers conv-output rows (2*ho+dh, 2*wo+dw)."""
    Ho, Wo = H // 2, W // 2
    o = jnp.arange(Ho * Wo)
    ho, wo = o // Wo, o % Wo
    r = jnp.arange(H * W)
    mats = []
    for dh in (0, 1):
        for dw in (0, 1):
            src = (2 * ho + dh) * W + (2 * wo + dw)
            mats.append((r[None, :] == src[:, None]).astype(jnp.float32))
    return jnp.stack(mats, axis=0)                  # (4, Ho*Wo, H*W)


def conv3x3_relu_pool(x_nhwc, w_k, b_k):
    """x: (B, H, W, Cin) NHWC -> (B, H//2, W//2, Cout), fused conv+relu+pool."""
    B, H, W, Cin = x_nhwc.shape
    Cout = w_k.shape[1]
    assert H % 2 == 0 and W % 2 == 0   # MaxPool2d(2,2) floor; even sizes here
    Ho, Wo = H // 2, W // 2

    xp = jnp.pad(x_nhwc, ((0, 0), (1, 1), (1, 1), (0, 0)))
    sel = _pool_select_matrices(H, W)
    kernel = functools.partial(_conv_relu_pool_kernel, H=H, W=W, Cin=Cin, Cout=Cout)

    out = pl.pallas_call(
        kernel,
        out_shape=jax.ShapeDtypeStruct((B, Ho * Wo, Cout), jnp.float32),
        grid=(B,),
        in_specs=[
            pl.BlockSpec((1, H + 2, W + 2, Cin), lambda b: (b, 0, 0, 0)),
            pl.BlockSpec((9 * Cin, Cout), lambda b: (0, 0)),          # resident
            pl.BlockSpec((1, Cout), lambda b: (0, 0)),                # resident
            pl.BlockSpec((4, Ho * Wo, H * W), lambda b: (0, 0, 0)),   # resident
        ],
        out_specs=pl.BlockSpec((1, Ho * Wo, Cout), lambda b: (b, 0, 0)),
        compiler_params=pltpu.CompilerParams(
            dimension_semantics=("parallel",)),     # 2 TensorCores on v7x
    )(xp, w_k, b_k, sel)
    return out.reshape(B, Ho, Wo, Cout)             # metadata-only reshape


# ----------------------------------------------------------------------------
# Fused fc1 (+ReLU) + fc2 kernel
# ----------------------------------------------------------------------------
def _fc_fused_kernel(x_ref, w1_ref, b1_ref, w2_ref, b2_ref, o_ref):
    h = jnp.dot(x_ref[...].astype(MXU_INPUT_DTYPE),
                w1_ref[...].astype(MXU_INPUT_DTYPE),
                preferred_element_type=jnp.float32)
    h = jnp.maximum(h + b1_ref[...], 0.0)                       # fc1 + ReLU
    # fc2 (units -> 1) as VPU multiply + lane reduce (avoids an N=1 MXU matmul)
    o = jnp.sum(h * w2_ref[...], axis=-1, keepdims=True) + b2_ref[...]
    o_ref[...] = o.astype(o_ref.dtype)


def fc1_relu_fc2(x, w1, b1, w2, b2, *, tile_b=512):
    B, F = x.shape
    units = w1.shape[1]
    tb = min(tile_b, B)
    return pl.pallas_call(
        _fc_fused_kernel,
        out_shape=jax.ShapeDtypeStruct((B, 1), jnp.float32),
        grid=(pl.cdiv(B, tb),),
        in_specs=[
            pl.BlockSpec((tb, F), lambda i: (i, 0)),
            pl.BlockSpec((F, units), lambda i: (0, 0)),   # resident
            pl.BlockSpec((1, units), lambda i: (0, 0)),   # resident
            pl.BlockSpec((1, units), lambda i: (0, 0)),   # resident
            pl.BlockSpec((1, 1), lambda i: (0, 0)),       # resident
        ],
        out_specs=pl.BlockSpec((tb, 1), lambda i: (i, 0)),
        compiler_params=pltpu.CompilerParams(
            dimension_semantics=("parallel",)),
    )(x, w1, b1, w2, b2)


# ----------------------------------------------------------------------------
# CustomCNN forward (NHWC activations throughout)
# ----------------------------------------------------------------------------
def custom_cnn_forward(x_nchw, kp):
    x = jnp.transpose(x_nchw, (0, 2, 3, 1))      # NCHW -> NHWC, once at entry
    x = conv3x3_relu_pool(x, kp["conv1_w"], kp["conv1_b"])
    # dropout1: identity in eval mode
    x = conv3x3_relu_pool(x, kp["conv2_w"], kp["conv2_b"])
    # dropout2: identity in eval mode
    B = x.shape[0]
    x = x.reshape(B, -1)                         # NHWC flatten; fc1_w pre-permuted
    # fc1 -> relu -> (dropout3 identity) -> fc2, fused
    return fc1_relu_fc2(x, kp["fc1_w"], kp["fc1_b"], kp["fc2_w"], kp["fc2_b"])


# ----------------------------------------------------------------------------
# Parameters: PyTorch layout + one-time repacking for the kernels
# ----------------------------------------------------------------------------
def init_params(key, input_shape, filters_1, filters_2, units):
    H, W, Cin = input_shape
    ks = jax.random.split(key, 8)

    def u(k, shape, fan_in):
        bound = 1.0 / jnp.sqrt(fan_in)
        return jax.random.uniform(k, shape, jnp.float32, -bound, bound)

    fc1_in = filters_2 * (H // 4) * (W // 4)
    return {
        "conv1_w": u(ks[0], (filters_1, Cin, 3, 3), Cin * 9),
        "conv1_b": u(ks[1], (filters_1,), Cin * 9),
        "conv2_w": u(ks[2], (filters_2, filters_1, 3, 3), filters_1 * 9),
        "conv2_b": u(ks[3], (filters_2,), filters_1 * 9),
        "fc1_w":   u(ks[4], (units, fc1_in), fc1_in),
        "fc1_b":   u(ks[5], (units,), fc1_in),
        "fc2_w":   u(ks[6], (1, units), units),
        "fc2_b":   u(ks[7], (1,), units),
    }


def preprocess_params(p, input_shape):
    """Repack PyTorch-layout params once for the NHWC Pallas kernels."""
    H, W, _ = input_shape
    Hq, Wq = H // 4, W // 4
    f2 = p["conv2_w"].shape[0]
    units = p["fc1_w"].shape[0]

    def conv_w(w):  # (Cout, Cin, 3, 3) -> (9*Cin, Cout), rows ordered (kh, kw, ci)
        cout, cin = w.shape[0], w.shape[1]
        return jnp.transpose(w, (2, 3, 1, 0)).reshape(9 * cin, cout)

    # fc1: PyTorch flattens NCHW (c, h, w); our kernels flatten NHWC (h, w, c).
    fc1_w = p["fc1_w"].reshape(units, f2, Hq, Wq)
    fc1_w = jnp.transpose(fc1_w, (0, 2, 3, 1)).reshape(units, Hq * Wq * f2)

    return {
        "conv1_w": conv_w(p["conv1_w"]), "conv1_b": p["conv1_b"].reshape(1, -1),
        "conv2_w": conv_w(p["conv2_w"]), "conv2_b": p["conv2_b"].reshape(1, -1),
        "fc1_w": fc1_w.T,                "fc1_b": p["fc1_b"].reshape(1, -1),
        "fc2_w": p["fc2_w"].reshape(1, -1),
        "fc2_b": p["fc2_b"].reshape(1, 1),
    }


# ----------------------------------------------------------------------------
# Pure-JAX reference (PyTorch semantics) for a correctness cross-check
# ----------------------------------------------------------------------------
def _reference_forward(x_nchw, params):
    def conv(x, w, b):
        y = jax.lax.conv_general_dilated(
            x, w, window_strides=(1, 1), padding=((1, 1), (1, 1)),
            dimension_numbers=("NCHW", "OIHW", "NCHW"))
        return jax.nn.relu(y + b[None, :, None, None])

    def pool(x):
        return jax.lax.reduce_window(x, -jnp.inf, jax.lax.max,
                                     (1, 1, 2, 2), (1, 1, 2, 2), "VALID")

    x = pool(conv(x_nchw, params["conv1_w"], params["conv1_b"]))
    x = pool(conv(x, params["conv2_w"], params["conv2_b"]))
    x = x.reshape(x.shape[0], -1)
    x = jax.nn.relu(x @ params["fc1_w"].T + params["fc1_b"])
    return x @ params["fc2_w"].T + params["fc2_b"]


if __name__ == "__main__":
    # Small shapes consistent with the module: input_shape = (H, W, C)
    input_shape = (16, 16, 4)
    filters_1, filters_2, units = 8, 8, 32
    batch = 2

    key = jax.random.PRNGKey(0)
    kx, kp = jax.random.split(key)
    x = jax.random.normal(kx, (batch, input_shape[2], input_shape[0],
                               input_shape[1]), jnp.float32)    # NCHW input
    params = init_params(kp, input_shape, filters_1, filters_2, units)
    kparams = preprocess_params(params, input_shape)            # one-time repack

    fwd = jax.jit(custom_cnn_forward)
    out = fwd(x, kparams)
    jax.block_until_ready(out)
    assert out.shape == (batch, 1), out.shape

    ref = _reference_forward(x, params)
    assert jnp.allclose(out, ref, atol=1e-2, rtol=1e-2), "mismatch vs reference"
    print("KERNEL_OK")
</pallas_src>

<mosaic_0001>
module attributes {stable_mosaic.version = 11 : i64} {
  func.func @_conv_relu_pool_kernel(%arg0: i32, %arg1: memref<1x18x18x4xf32, #tpu.memory_space<vmem>>, %arg2: memref<36x8xf32, #tpu.memory_space<vmem>>, %arg3: memref<1x8xf32, #tpu.memory_space<vmem>>, %arg4: memref<4x64x256xf32, #tpu.memory_space<vmem>>, %arg5: memref<1x64x8xf32, #tpu.memory_space<vmem>>) attributes {dimension_semantics = [#tpu.dimension_semantics<parallel>], iteration_bounds = array<i64: 2>, scalar_prefetch = 0 : i64, scratch_operands = 0 : i64, tpu.core_type = #tpu.core_type<tc>, window_params = [{transform_indices = @transform_0, window_bounds = array<i64: 1, 18, 18, 4>}, {pipeline_mode = #tpu.pipeline_mode<synchronous>, transform_indices = @transform_1, window_bounds = array<i64: 36, 8>}, {pipeline_mode = #tpu.pipeline_mode<synchronous>, transform_indices = @transform_2, window_bounds = array<i64: 1, 8>}, {pipeline_mode = #tpu.pipeline_mode<synchronous>, transform_indices = @transform_3, window_bounds = array<i64: 4, 64, 256>}, {transform_indices = @transform_4, window_bounds = array<i64: 1, 64, 8>}]} {
    %c0 = arith.constant 0 : index
    %c0_0 = arith.constant 0 : index
    %c0_1 = arith.constant 0 : index
    %c0_2 = arith.constant 0 : index
    %0 = vector.load %arg1[%c0, %c0_0, %c0_1, %c0_2] : memref<1x18x18x4xf32, #tpu.memory_space<vmem>>, vector<1x18x18x4xf32>
    %1 = vector.shape_cast %0 : vector<1x18x18x4xf32> to vector<18x18x4xf32>
    %c0_3 = arith.constant 0 : index
    %c0_4 = arith.constant 0 : index
    %2 = vector.load %arg2[%c0_3, %c0_4] : memref<36x8xf32, #tpu.memory_space<vmem>>, vector<36x8xf32>
    %cst = arith.constant 0.000000e+00 : f32
    %3 = vector.broadcast %cst : f32 to vector<256x8xf32>
    %4 = vector.extract_strided_slice %1 {offsets = [0, 0, 0], sizes = [16, 16, 4], strides = [1, 1, 1]} : vector<18x18x4xf32> to vector<16x16x4xf32>
    %5 = vector.shape_cast %4 : vector<16x16x4xf32> to vector<256x4xf32>
    %6 = vector.extract_strided_slice %2 {offsets = [0, 0], sizes = [4, 8], strides = [1, 1]} : vector<36x8xf32> to vector<4x8xf32>
    %cst_5 = arith.constant dense<0.000000e+00> : vector<256x8xf32>
    %7 = tpu.matmul %5, %6, %cst_5 {dimension_numbers = #tpu.dot_dimension_numbers<[1], [0], [0], [1], [0, 0, 1, 1], [], []>} : vector<256x4xf32>, vector<4x8xf32>, vector<256x8xf32> -> vector<256x8xf32>
    %8 = arith.addf %3, %7 : vector<256x8xf32>
    %9 = vector.extract_strided_slice %1 {offsets = [0, 1, 0], sizes = [16, 16, 4], strides = [1, 1, 1]} : vector<18x18x4xf32> to vector<16x16x4xf32>
    %10 = vector.shape_cast %9 : vector<16x16x4xf32> to vector<256x4xf32>
    %11 = vector.extract_strided_slice %2 {offsets = [4, 0], sizes = [4, 8], strides = [1, 1]} : vector<36x8xf32> to vector<4x8xf32>
    %cst_6 = arith.constant dense<0.000000e+00> : vector<256x8xf32>
    %12 = tpu.matmul %10, %11, %cst_6 {dimension_numbers = #tpu.dot_dimension_numbers<[1], [0], [0], [1], [0, 0, 1, 1], [], []>} : vector<256x4xf32>, vector<4x8xf32>, vector<256x8xf32> -> vector<256x8xf32>
    %13 = arith.addf %8, %12 : vector<256x8xf32>
    %14 = vector.extract_strided_slice %1 {offsets = [0, 2, 0], sizes = [16, 16, 4], strides = [1, 1, 1]} : vector<18x18x4xf32> to vector<16x16x4xf32>
    %15 = vector.shape_cast %14 : vector<16x16x4xf32> to vector<256x4xf32>
    %16 = vector.extract_strided_slice %2 {offsets = [8, 0], sizes = [4, 8], strides = [1, 1]} : vector<36x8xf32> to vector<4x8xf32>
    %cst_7 = arith.constant dense<0.000000e+00> : vector<256x8xf32>
    %17 = tpu.matmul %15, %16, %cst_7 {dimension_numbers = #tpu.dot_dimension_numbers<[1], [0], [0], [1], [0, 0, 1, 1], [], []>} : vector<256x4xf32>, vector<4x8xf32>, vector<256x8xf32> -> vector<256x8xf32>
    %18 = arith.addf %13, %17 : vector<256x8xf32>
    %19 = vector.extract_strided_slice %1 {offsets = [1, 0, 0], sizes = [16, 16, 4], strides = [1, 1, 1]} : vector<18x18x4xf32> to vector<16x16x4xf32>
    %20 = vector.shape_cast %19 : vector<16x16x4xf32> to vector<256x4xf32>
    %21 = vector.extract_strided_slice %2 {offsets = [12, 0], sizes = [4, 8], strides = [1, 1]} : vector<36x8xf32> to vector<4x8xf32>
    %cst_8 = arith.constant dense<0.000000e+00> : vector<256x8xf32>
    %22 = tpu.matmul %20, %21, %cst_8 {dimension_numbers = #tpu.dot_dimension_numbers<[1], [0], [0], [1], [0, 0, 1, 1], [], []>} : vector<256x4xf32>, vector<4x8xf32>, vector<256x8xf32> -> vector<256x8xf32>
    %23 = arith.addf %18, %22 : vector<256x8xf32>
    %24 = vector.extract_strided_slice %1 {offsets = [1, 1, 0], sizes = [16, 16, 4], strides = [1, 1, 1]} : vector<18x18x4xf32> to vector<16x16x4xf32>
    %25 = vector.shape_cast %24 : vector<16x16x4xf32> to vector<256x4xf32>
    %26 = vector.extract_strided_slice %2 {offsets = [16, 0], sizes = [4, 8], strides = [1, 1]} : vector<36x8xf32> to vector<4x8xf32>
    %cst_9 = arith.constant dense<0.000000e+00> : vector<256x8xf32>
    %27 = tpu.matmul %25, %26, %cst_9 {dimension_numbers = #tpu.dot_dimension_numbers<[1], [0], [0], [1], [0, 0, 1, 1], [], []>} : vector<256x4xf32>, vector<4x8xf32>, vector<256x8xf32> -> vector<256x8xf32>
    %28 = arith.addf %23, %27 : vector<256x8xf32>
    %29 = vector.extract_strided_slice %1 {offsets = [1, 2, 0], sizes = [16, 16, 4], strides = [1, 1, 1]} : vector<18x18x4xf32> to vector<16x16x4xf32>
    %30 = vector.shape_cast %29 : vector<16x16x4xf32> to vector<256x4xf32>
    %31 = vector.extract_strided_slice %2 {offsets = [20, 0], sizes = [4, 8], strides = [1, 1]} : vector<36x8xf32> to vector<4x8xf32>
    %cst_10 = arith.constant dense<0.000000e+00> : vector<256x8xf32>
    %32 = tpu.matmul %30, %31, %cst_10 {dimension_numbers = #tpu.dot_dimension_numbers<[1], [0], [0], [1], [0, 0, 1, 1], [], []>} : vector<256x4xf32>, vector<4x8xf32>, vector<256x8xf32> -> vector<256x8xf32>
    %33 = arith.addf %28, %32 : vector<256x8xf32>
    %34 = vector.extract_strided_slice %1 {offsets = [2, 0, 0], sizes = [16, 16, 4], strides = [1, 1, 1]} : vector<18x18x4xf32> to vector<16x16x4xf32>
    %35 = vector.shape_cast %34 : vector<16x16x4xf32> to vector<256x4xf32>
    %36 = vector.extract_strided_slice %2 {offsets = [24, 0], sizes = [4, 8], strides = [1, 1]} : vector<36x8xf32> to vector<4x8xf32>
    %cst_11 = arith.constant dense<0.000000e+00> : vector<256x8xf32>
    %37 = tpu.matmul %35, %36, %cst_11 {dimension_numbers = #tpu.dot_dimension_numbers<[1], [0], [0], [1], [0, 0, 1, 1], [], []>} : vector<256x4xf32>, vector<4x8xf32>, vector<256x8xf32> -> vector<256x8xf32>
    %38 = arith.addf %33, %37 : vector<256x8xf32>
    %39 = vector.extract_strided_slice %1 {offsets = [2, 1, 0], sizes = [16, 16, 4], strides = [1, 1, 1]} : vector<18x18x4xf32> to vector<16x16x4xf32>
    %40 = vector.shape_cast %39 : vector<16x16x4xf32> to vector<256x4xf32>
    %41 = vector.extract_strided_slice %2 {offsets = [28, 0], sizes = [4, 8], strides = [1, 1]} : vector<36x8xf32> to vector<4x8xf32>
    %cst_12 = arith.constant dense<0.000000e+00> : vector<256x8xf32>
    %42 = tpu.matmul %40, %41, %cst_12 {dimension_numbers = #tpu.dot_dimension_numbers<[1], [0], [0], [1], [0, 0, 1, 1], [], []>} : vector<256x4xf32>, vector<4x8xf32>, vector<256x8xf32> -> vector<256x8xf32>
    %43 = arith.addf %38, %42 : vector<256x8xf32>
    %44 = vector.extract_strided_slice %1 {offsets = [2, 2, 0], sizes = [16, 16, 4], strides = [1, 1, 1]} : vector<18x18x4xf32> to vector<16x16x4xf32>
    %45 = vector.shape_cast %44 : vector<16x16x4xf32> to vector<256x4xf32>
    %46 = vector.extract_strided_slice %2 {offsets = [32, 0], sizes = [4, 8], strides = [1, 1]} : vector<36x8xf32> to vector<4x8xf32>
    %cst_13 = arith.constant dense<0.000000e+00> : vector<256x8xf32>
    %47 = tpu.matmul %45, %46, %cst_13 {dimension_numbers = #tpu.dot_dimension_numbers<[1], [0], [0], [1], [0, 0, 1, 1], [], []>} : vector<256x4xf32>, vector<4x8xf32>, vector<256x8xf32> -> vector<256x8xf32>
    %48 = arith.addf %43, %47 : vector<256x8xf32>
    %c0_14 = arith.constant 0 : index
    %c0_15 = arith.constant 0 : index
    %49 = vector.load %arg3[%c0_14, %c0_15] : memref<1x8xf32, #tpu.memory_space<vmem>>, vector<1x8xf32>
    %50 = vector.broadcast %49 : vector<1x8xf32> to vector<256x8xf32>
    %51 = arith.addf %48, %50 : vector<256x8xf32>
    %cst_16 = arith.constant 0.000000e+00 : f32
    %52 = vector.broadcast %cst_16 : f32 to vector<256x8xf32>
    %53 = arith.maximumf %51, %52 : vector<256x8xf32>
    %c0_17 = arith.constant 0 : index
    %c0_18 = arith.constant 0 : index
    %c0_19 = arith.constant 0 : index
    %54 = vector.load %arg4[%c0_17, %c0_18, %c0_19] : memref<4x64x256xf32, #tpu.memory_space<vmem>>, vector<1x64x256xf32>
    %55 = vector.shape_cast %54 : vector<1x64x256xf32> to vector<64x256xf32>
    %cst_20 = arith.constant dense<0.000000e+00> : vector<64x8xf32>
    %56 = tpu.matmul %55, %53, %cst_20 {dimension_numbers = #tpu.dot_dimension_numbers<[1], [0], [0], [1], [0, 0, 1, 1], [], []>} : vector<64x256xf32>, vector<256x8xf32>, vector<64x8xf32> -> vector<64x8xf32>
    %c1 = arith.constant 1 : index
    %c0_21 = arith.constant 0 : index
    %c0_22 = arith.constant 0 : index
    %57 = vector.load %arg4[%c1, %c0_21, %c0_22] : memref<4x64x256xf32, #tpu.memory_space<vmem>>, vector<1x64x256xf32>
    %58 = vector.shape_cast %57 : vector<1x64x256xf32> to vector<64x256xf32>
    %cst_23 = arith.constant dense<0.000000e+00> : vector<64x8xf32>
    %59 = tpu.matmul %58, %53, %cst_23 {dimension_numbers = #tpu.dot_dimension_numbers<[1], [0], [0], [1], [0, 0, 1, 1], [], []>} : vector<64x256xf32>, vector<256x8xf32>, vector<64x8xf32> -> vector<64x8xf32>
    %60 = arith.maximumf %56, %59 : vector<64x8xf32>
    %c2 = arith.constant 2 : index
    %c0_24 = arith.constant 0 : index
    %c0_25 = arith.constant 0 : index
    %61 = vector.load %arg4[%c2, %c0_24, %c0_25] : memref<4x64x256xf32, #tpu.memory_space<vmem>>, vector<1x64x256xf32>
    %62 = vector.shape_cast %61 : vector<1x64x256xf32> to vector<64x256xf32>
    %cst_26 = arith.constant dense<0.000000e+00> : vector<64x8xf32>
    %63 = tpu.matmul %62, %53, %cst_26 {dimension_numbers = #tpu.dot_dimension_numbers<[1], [0], [0], [1], [0, 0, 1, 1], [], []>} : vector<64x256xf32>, vector<256x8xf32>, vector<64x8xf32> -> vector<64x8xf32>
    %64 = arith.maximumf %60, %63 : vector<64x8xf32>
    %c3 = arith.constant 3 : index
    %c0_27 = arith.constant 0 : index
    %c0_28 = arith.constant 0 : index
    %65 = vector.load %arg4[%c3, %c0_27, %c0_28] : memref<4x64x256xf32, #tpu.memory_space<vmem>>, vector<1x64x256xf32>
    %66 = vector.shape_cast %65 : vector<1x64x256xf32> to vector<64x256xf32>
    %cst_29 = arith.constant dense<0.000000e+00> : vector<64x8xf32>
    %67 = tpu.matmul %66, %53, %cst_29 {dimension_numbers = #tpu.dot_dimension_numbers<[1], [0], [0], [1], [0, 0, 1, 1], [], []>} : vector<64x256xf32>, vector<256x8xf32>, vector<64x8xf32> -> vector<64x8xf32>
    %68 = arith.maximumf %64, %67 : vector<64x8xf32>
    %c0_30 = arith.constant 0 : index
    %c0_31 = arith.constant 0 : index
    %c0_32 = arith.constant 0 : index
    %69 = vector.load %arg5[%c0_30, %c0_31, %c0_32] : memref<1x64x8xf32, #tpu.memory_space<vmem>>, vector<1x64x8xf32>
    %70 = vector.shape_cast %69 : vector<1x64x8xf32> to vector<64x8xf32>
    %71 = vector.shape_cast %68 : vector<64x8xf32> to vector<1x64x8xf32>
    tpu.vector_store %arg5[%c0_30, %c0_31, %c0_32], %71 {strides = array<i32>} : memref<1x64x8xf32, #tpu.memory_space<vmem>>, vector<1x64x8xf32>,
    return
  }
  func.func @transform_0(%arg0: i32) -> (i32, i32, i32, i32) {
    %c0_i32 = arith.constant 0 : i32
    %c0_i32_0 = arith.constant 0 : i32
    %c0_i32_1 = arith.constant 0 : i32
    %c0_i32_2 = arith.constant 0 : i32
    return %arg0, %c0_i32, %c0_i32_0, %c0_i32_1 : i32, i32, i32, i32
  }
  func.func @transform_1(%arg0: i32) -> (i32, i32) {
    %c0_i32 = arith.constant 0 : i32
    %c0_i32_0 = arith.constant 0 : i32
    %c0_i32_1 = arith.constant 0 : i32
    return %c0_i32, %c0_i32_0 : i32, i32
  }
  func.func @transform_2(%arg0: i32) -> (i32, i32) {
    %c0_i32 = arith.constant 0 : i32
    %c0_i32_0 = arith.constant 0 : i32
    %c0_i32_1 = arith.constant 0 : i32
    return %c0_i32, %c0_i32_0 : i32, i32
  }
  func.func @transform_3(%arg0: i32) -> (i32, i32, i32) {
    %c0_i32 = arith.constant 0 : i32
    %c0_i32_0 = arith.constant 0 : i32
    %c0_i32_1 = arith.constant 0 : i32
    %c0_i32_2 = arith.constant 0 : i32
    return %c0_i32, %c0_i32_0, %c0_i32_1 : i32, i32, i32
  }
  func.func @transform_4(%arg0: i32) -> (i32, i32, i32) {
    %c0_i32 = arith.constant 0 : i32
    %c0_i32_0 = arith.constant 0 : i32
    %c0_i32_1 = arith.constant 0 : i32
    return %arg0, %c0_i32, %c0_i32_0 : i32, i32, i32
  }
}

module attributes {stable_mosaic.version = 11 : i64} {
  func.func @_conv_relu_pool_kernel(%arg0: i32, %arg1: memref<1x10x10x8xf32, #tpu.memory_space<vmem>>, %arg2: memref<72x8xf32, #tpu.memory_space<vmem>>, %arg3: memref<1x8xf32, #tpu.memory_space<vmem>>, %arg4: memref<4x16x64xf32, #tpu.memory_space<vmem>>, %arg5: memref<1x16x8xf32, #tpu.memory_space<vmem>>) attributes {dimension_semantics = [#tpu.dimension_semantics<parallel>], iteration_bounds = array<i64: 2>, scalar_prefetch = 0 : i64, scratch_operands = 0 : i64, tpu.core_type = #tpu.core_type<tc>, window_params = [{transform_indices = @transform_0, window_bounds = array<i64: 1, 10, 10, 8>}, {pipeline_mode = #tpu.pipeline_mode<synchronous>, transform_indices = @transform_1, window_bounds = array<i64: 72, 8>}, {pipeline_mode = #tpu.pipeline_mode<synchronous>, transform_indices = @transform_2, window_bounds = array<i64: 1, 8>}, {pipeline_mode = #tpu.pipeline_mode<synchronous>, transform_indices = @transform_3, window_bounds = array<i64: 4, 16, 64>}, {transform_indices = @transform_4, window_bounds = array<i64: 1, 16, 8>}]} {
    %c0 = arith.constant 0 : index
    %c0_0 = arith.constant 0 : index
    %c0_1 = arith.constant 0 : index
    %c0_2 = arith.constant 0 : index
    %0 = vector.load %arg1[%c0, %c0_0, %c0_1, %c0_2] : memref<1x10x10x8xf32, #tpu.memory_space<vmem>>, vector<1x10x10x8xf32>
    %1 = vector.shape_cast %0 : vector<1x10x10x8xf32> to vector<10x10x8xf32>
    %c0_3 = arith.constant 0 : index
    %c0_4 = arith.constant 0 : index
    %2 = vector.load %arg2[%c0_3, %c0_4] : memref<72x8xf32, #tpu.memory_space<vmem>>, vector<72x8xf32>
    %cst = arith.constant 0.000000e+00 : f32
    %3 = vector.broadcast %cst : f32 to vector<64x8xf32>
    %4 = vector.extract_strided_slice %1 {offsets = [0, 0, 0], sizes = [8, 8, 8], strides = [1, 1, 1]} : vector<10x10x8xf32> to vector<8x8x8xf32>
    %5 = vector.shape_cast %4 : vector<8x8x8xf32> to vector<64x8xf32>
    %6 = vector.extract_strided_slice %2 {offsets = [0, 0], sizes = [8, 8], strides = [1, 1]} : vector<72x8xf32> to vector<8x8xf32>
    %cst_5 = arith.constant dense<0.000000e+00> : vector<64x8xf32>
    %7 = tpu.matmul %5, %6, %cst_5 {dimension_numbers = #tpu.dot_dimension_numbers<[1], [0], [0], [1], [0, 0, 1, 1], [], []>} : vector<64x8xf32>, vector<8x8xf32>, vector<64x8xf32> -> vector<64x8xf32>
    %8 = arith.addf %3, %7 : vector<64x8xf32>
    %9 = vector.extract_strided_slice %1 {offsets = [0, 1, 0], sizes = [8, 8, 8], strides = [1, 1, 1]} : vector<10x10x8xf32> to vector<8x8x8xf32>
    %10 = vector.shape_cast %9 : vector<8x8x8xf32> to vector<64x8xf32>
    %11 = vector.extract_strided_slice %2 {offsets = [8, 0], sizes = [8, 8], strides = [1, 1]} : vector<72x8xf32> to vector<8x8xf32>
    %cst_6 = arith.constant dense<0.000000e+00> : vector<64x8xf32>
    %12 = tpu.matmul %10, %11, %cst_6 {dimension_numbers = #tpu.dot_dimension_numbers<[1], [0], [0], [1], [0, 0, 1, 1], [], []>} : vector<64x8xf32>, vector<8x8xf32>, vector<64x8xf32> -> vector<64x8xf32>
    %13 = arith.addf %8, %12 : vector<64x8xf32>
    %14 = vector.extract_strided_slice %1 {offsets = [0, 2, 0], sizes = [8, 8, 8], strides = [1, 1, 1]} : vector<10x10x8xf32> to vector<8x8x8xf32>
    %15 = vector.shape_cast %14 : vector<8x8x8xf32> to vector<64x8xf32>
    %16 = vector.extract_strided_slice %2 {offsets = [16, 0], sizes = [8, 8], strides = [1, 1]} : vector<72x8xf32> to vector<8x8xf32>
    %cst_7 = arith.constant dense<0.000000e+00> : vector<64x8xf32>
    %17 = tpu.matmul %15, %16, %cst_7 {dimension_numbers = #tpu.dot_dimension_numbers<[1], [0], [0], [1], [0, 0, 1, 1], [], []>} : vector<64x8xf32>, vector<8x8xf32>, vector<64x8xf32> -> vector<64x8xf32>
    %18 = arith.addf %13, %17 : vector<64x8xf32>
    %19 = vector.extract_strided_slice %1 {offsets = [1, 0, 0], sizes = [8, 8, 8], strides = [1, 1, 1]} : vector<10x10x8xf32> to vector<8x8x8xf32>
    %20 = vector.shape_cast %19 : vector<8x8x8xf32> to vector<64x8xf32>
    %21 = vector.extract_strided_slice %2 {offsets = [24, 0], sizes = [8, 8], strides = [1, 1]} : vector<72x8xf32> to vector<8x8xf32>
    %cst_8 = arith.constant dense<0.000000e+00> : vector<64x8xf32>
    %22 = tpu.matmul %20, %21, %cst_8 {dimension_numbers = #tpu.dot_dimension_numbers<[1], [0], [0], [1], [0, 0, 1, 1], [], []>} : vector<64x8xf32>, vector<8x8xf32>, vector<64x8xf32> -> vector<64x8xf32>
    %23 = arith.addf %18, %22 : vector<64x8xf32>
    %24 = vector.extract_strided_slice %1 {offsets = [1, 1, 0], sizes = [8, 8, 8], strides = [1, 1, 1]} : vector<10x10x8xf32> to vector<8x8x8xf32>
    %25 = vector.shape_cast %24 : vector<8x8x8xf32> to vector<64x8xf32>
    %26 = vector.extract_strided_slice %2 {offsets = [32, 0], sizes = [8, 8], strides = [1, 1]} : vector<72x8xf32> to vector<8x8xf32>
    %cst_9 = arith.constant dense<0.000000e+00> : vector<64x8xf32>
    %27 = tpu.matmul %25, %26, %cst_9 {dimension_numbers = #tpu.dot_dimension_numbers<[1], [0], [0], [1], [0, 0, 1, 1], [], []>} : vector<64x8xf32>, vector<8x8xf32>, vector<64x8xf32> -> vector<64x8xf32>
    %28 = arith.addf %23, %27 : vector<64x8xf32>
    %29 = vector.extract_strided_slice %1 {offsets = [1, 2, 0], sizes = [8, 8, 8], strides = [1, 1, 1]} : vector<10x10x8xf32> to vector<8x8x8xf32>
    %30 = vector.shape_cast %29 : vector<8x8x8xf32> to vector<64x8xf32>
    %31 = vector.extract_strided_slice %2 {offsets = [40, 0], sizes = [8, 8], strides = [1, 1]} : vector<72x8xf32> to vector<8x8xf32>
    %cst_10 = arith.constant dense<0.000000e+00> : vector<64x8xf32>
    %32 = tpu.matmul %30, %31, %cst_10 {dimension_numbers = #tpu.dot_dimension_numbers<[1], [0], [0], [1], [0, 0, 1, 1], [], []>} : vector<64x8xf32>, vector<8x8xf32>, vector<64x8xf32> -> vector<64x8xf32>
    %33 = arith.addf %28, %32 : vector<64x8xf32>
    %34 = vector.extract_strided_slice %1 {offsets = [2, 0, 0], sizes = [8, 8, 8], strides = [1, 1, 1]} : vector<10x10x8xf32> to vector<8x8x8xf32>
    %35 = vector.shape_cast %34 : vector<8x8x8xf32> to vector<64x8xf32>
    %36 = vector.extract_strided_slice %2 {offsets = [48, 0], sizes = [8, 8], strides = [1, 1]} : vector<72x8xf32> to vector<8x8xf32>
    %cst_11 = arith.constant dense<0.000000e+00> : vector<64x8xf32>
    %37 = tpu.matmul %35, %36, %cst_11 {dimension_numbers = #tpu.dot_dimension_numbers<[1], [0], [0], [1], [0, 0, 1, 1], [], []>} : vector<64x8xf32>, vector<8x8xf32>, vector<64x8xf32> -> vector<64x8xf32>
    %38 = arith.addf %33, %37 : vector<64x8xf32>
    %39 = vector.extract_strided_slice %1 {offsets = [2, 1, 0], sizes = [8, 8, 8], strides = [1, 1, 1]} : vector<10x10x8xf32> to vector<8x8x8xf32>
    %40 = vector.shape_cast %39 : vector<8x8x8xf32> to vector<64x8xf32>
    %41 = vector.extract_strided_slice %2 {offsets = [56, 0], sizes = [8, 8], strides = [1, 1]} : vector<72x8xf32> to vector<8x8xf32>
    %cst_12 = arith.constant dense<0.000000e+00> : vector<64x8xf32>
    %42 = tpu.matmul %40, %41, %cst_12 {dimension_numbers = #tpu.dot_dimension_numbers<[1], [0], [0], [1], [0, 0, 1, 1], [], []>} : vector<64x8xf32>, vector<8x8xf32>, vector<64x8xf32> -> vector<64x8xf32>
    %43 = arith.addf %38, %42 : vector<64x8xf32>
    %44 = vector.extract_strided_slice %1 {offsets = [2, 2, 0], sizes = [8, 8, 8], strides = [1, 1, 1]} : vector<10x10x8xf32> to vector<8x8x8xf32>
    %45 = vector.shape_cast %44 : vector<8x8x8xf32> to vector<64x8xf32>
    %46 = vector.extract_strided_slice %2 {offsets = [64, 0], sizes = [8, 8], strides = [1, 1]} : vector<72x8xf32> to vector<8x8xf32>
    %cst_13 = arith.constant dense<0.000000e+00> : vector<64x8xf32>
    %47 = tpu.matmul %45, %46, %cst_13 {dimension_numbers = #tpu.dot_dimension_numbers<[1], [0], [0], [1], [0, 0, 1, 1], [], []>} : vector<64x8xf32>, vector<8x8xf32>, vector<64x8xf32> -> vector<64x8xf32>
    %48 = arith.addf %43, %47 : vector<64x8xf32>
    %c0_14 = arith.constant 0 : index
    %c0_15 = arith.constant 0 : index
    %49 = vector.load %arg3[%c0_14, %c0_15] : memref<1x8xf32, #tpu.memory_space<vmem>>, vector<1x8xf32>
    %50 = vector.broadcast %49 : vector<1x8xf32> to vector<64x8xf32>
    %51 = arith.addf %48, %50 : vector<64x8xf32>
    %cst_16 = arith.constant 0.000000e+00 : f32
    %52 = vector.broadcast %cst_16 : f32 to vector<64x8xf32>
    %53 = arith.maximumf %51, %52 : vector<64x8xf32>
    %c0_17 = arith.constant 0 : index
    %c0_18 = arith.constant 0 : index
    %c0_19 = arith.constant 0 : index
    %54 = vector.load %arg4[%c0_17, %c0_18, %c0_19] : memref<4x16x64xf32, #tpu.memory_space<vmem>>, vector<1x16x64xf32>
    %55 = vector.shape_cast %54 : vector<1x16x64xf32> to vector<16x64xf32>
    %cst_20 = arith.constant dense<0.000000e+00> : vector<16x8xf32>
    %56 = tpu.matmul %55, %53, %cst_20 {dimension_numbers = #tpu.dot_dimension_numbers<[1], [0], [0], [1], [0, 0, 1, 1], [], []>} : vector<16x64xf32>, vector<64x8xf32>, vector<16x8xf32> -> vector<16x8xf32>
    %c1 = arith.constant 1 : index
    %c0_21 = arith.constant 0 : index
    %c0_22 = arith.constant 0 : index
    %57 = vector.load %arg4[%c1, %c0_21, %c0_22] : memref<4x16x64xf32, #tpu.memory_space<vmem>>, vector<1x16x64xf32>
    %58 = vector.shape_cast %57 : vector<1x16x64xf32> to vector<16x64xf32>
    %cst_23 = arith.constant dense<0.000000e+00> : vector<16x8xf32>
    %59 = tpu.matmul %58, %53, %cst_23 {dimension_numbers = #tpu.dot_dimension_numbers<[1], [0], [0], [1], [0, 0, 1, 1], [], []>} : vector<16x64xf32>, vector<64x8xf32>, vector<16x8xf32> -> vector<16x8xf32>
    %60 = arith.maximumf %56, %59 : vector<16x8xf32>
    %c2 = arith.constant 2 : index
    %c0_24 = arith.constant 0 : index
    %c0_25 = arith.constant 0 : index
    %61 = vector.load %arg4[%c2, %c0_24, %c0_25] : memref<4x16x64xf32, #tpu.memory_space<vmem>>, vector<1x16x64xf32>
    %62 = vector.shape_cast %61 : vector<1x16x64xf32> to vector<16x64xf32>
    %cst_26 = arith.constant dense<0.000000e+00> : vector<16x8xf32>
    %63 = tpu.matmul %62, %53, %cst_26 {dimension_numbers = #tpu.dot_dimension_numbers<[1], [0], [0], [1], [0, 0, 1, 1], [], []>} : vector<16x64xf32>, vector<64x8xf32>, vector<16x8xf32> -> vector<16x8xf32>
    %64 = arith.maximumf %60, %63 : vector<16x8xf32>
    %c3 = arith.constant 3 : index
    %c0_27 = arith.constant 0 : index
    %c0_28 = arith.constant 0 : index
    %65 = vector.load %arg4[%c3, %c0_27, %c0_28] : memref<4x16x64xf32, #tpu.memory_space<vmem>>, vector<1x16x64xf32>
    %66 = vector.shape_cast %65 : vector<1x16x64xf32> to vector<16x64xf32>
    %cst_29 = arith.constant dense<0.000000e+00> : vector<16x8xf32>
    %67 = tpu.matmul %66, %53, %cst_29 {dimension_numbers = #tpu.dot_dimension_numbers<[1], [0], [0], [1], [0, 0, 1, 1], [], []>} : vector<16x64xf32>, vector<64x8xf32>, vector<16x8xf32> -> vector<16x8xf32>
    %68 = arith.maximumf %64, %67 : vector<16x8xf32>
    %c0_30 = arith.constant 0 : index
    %c0_31 = arith.constant 0 : index
    %c0_32 = arith.constant 0 : index
    %69 = vector.load %arg5[%c0_30, %c0_31, %c0_32] : memref<1x16x8xf32, #tpu.memory_space<vmem>>, vector<1x16x8xf32>
    %70 = vector.shape_cast %69 : vector<1x16x8xf32> to vector<16x8xf32>
    %71 = vector.shape_cast %68 : vector<16x8xf32> to vector<1x16x8xf32>
    tpu.vector_store %arg5[%c0_30, %c0_31, %c0_32], %71 {strides = array<i32>} : memref<1x16x8xf32, #tpu.memory_space<vmem>>, vector<1x16x8xf32>,
    return
  }
  func.func @transform_0(%arg0: i32) -> (i32, i32, i32, i32) {
    %c0_i32 = arith.constant 0 : i32
    %c0_i32_0 = arith.constant 0 : i32
    %c0_i32_1 = arith.constant 0 : i32
    %c0_i32_2 = arith.constant 0 : i32
    return %arg0, %c0_i32, %c0_i32_0, %c0_i32_1 : i32, i32, i32, i32
  }
  func.func @transform_1(%arg0: i32) -> (i32, i32) {
    %c0_i32 = arith.constant 0 : i32
    %c0_i32_0 = arith.constant 0 : i32
    %c0_i32_1 = arith.constant 0 : i32
    return %c0_i32, %c0_i32_0 : i32, i32
  }
  func.func @transform_2(%arg0: i32) -> (i32, i32) {
    %c0_i32 = arith.constant 0 : i32
    %c0_i32_0 = arith.constant 0 : i32
    %c0_i32_1 = arith.constant 0 : i32
    return %c0_i32, %c0_i32_0 : i32, i32
  }
  func.func @transform_3(%arg0: i32) -> (i32, i32, i32) {
    %c0_i32 = arith.constant 0 : i32
    %c0_i32_0 = arith.constant 0 : i32
    %c0_i32_1 = arith.constant 0 : i32
    %c0_i32_2 = arith.constant 0 : i32
    return %c0_i32, %c0_i32_0, %c0_i32_1 : i32, i32, i32
  }
  func.func @transform_4(%arg0: i32) -> (i32, i32, i32) {
    %c0_i32 = arith.constant 0 : i32
    %c0_i32_0 = arith.constant 0 : i32
    %c0_i32_1 = arith.constant 0 : i32
    return %arg0, %c0_i32, %c0_i32_0 : i32, i32, i32
  }
}

module attributes {stable_mosaic.version = 11 : i64} {
  func.func @_fc_fused_kernel(%arg0: i32, %arg1: memref<2x128xf32, #tpu.memory_space<vmem>>, %arg2: memref<128x32xf32, #tpu.memory_space<vmem>>, %arg3: memref<1x32xf32, #tpu.memory_space<vmem>>, %arg4: memref<1x32xf32, #tpu.memory_space<vmem>>, %arg5: memref<1x1xf32, #tpu.memory_space<vmem>>, %arg6: memref<2x1xf32, #tpu.memory_space<vmem>>) attributes {dimension_semantics = [#tpu.dimension_semantics<parallel>], iteration_bounds = array<i64: 1>, scalar_prefetch = 0 : i64, scratch_operands = 0 : i64, tpu.core_type = #tpu.core_type<tc>, window_params = [{transform_indices = @transform_0, window_bounds = array<i64: 2, 128>}, {pipeline_mode = #tpu.pipeline_mode<synchronous>, transform_indices = @transform_1, window_bounds = array<i64: 128, 32>}, {pipeline_mode = #tpu.pipeline_mode<synchronous>, transform_indices = @transform_2, window_bounds = array<i64: 1, 32>}, {pipeline_mode = #tpu.pipeline_mode<synchronous>, transform_indices = @transform_3, window_bounds = array<i64: 1, 32>}, {pipeline_mode = #tpu.pipeline_mode<synchronous>, transform_indices = @transform_4, window_bounds = array<i64: 1, 1>}, {transform_indices = @transform_5, window_bounds = array<i64: 2, 1>}]} {
    %c0 = arith.constant 0 : index
    %c0_0 = arith.constant 0 : index
    %0 = vector.load %arg1[%c0, %c0_0] : memref<2x128xf32, #tpu.memory_space<vmem>>, vector<2x128xf32>
    %c0_1 = arith.constant 0 : index
    %c0_2 = arith.constant 0 : index
    %1 = vector.load %arg2[%c0_1, %c0_2] : memref<128x32xf32, #tpu.memory_space<vmem>>, vector<128x32xf32>
    %cst = arith.constant dense<0.000000e+00> : vector<2x32xf32>
    %2 = tpu.matmul %0, %1, %cst {dimension_numbers = #tpu.dot_dimension_numbers<[1], [0], [0], [1], [0, 0, 1, 1], [], []>} : vector<2x128xf32>, vector<128x32xf32>, vector<2x32xf32> -> vector<2x32xf32>
    %c0_3 = arith.constant 0 : index
    %c0_4 = arith.constant 0 : index
    %3 = vector.load %arg3[%c0_3, %c0_4] : memref<1x32xf32, #tpu.memory_space<vmem>>, vector<1x32xf32>
    %4 = vector.broadcast %3 : vector<1x32xf32> to vector<2x32xf32>
    %5 = arith.addf %2, %4 : vector<2x32xf32>
    %cst_5 = arith.constant 0.000000e+00 : f32
    %6 = vector.broadcast %cst_5 : f32 to vector<2x32xf32>
    %7 = arith.maximumf %5, %6 : vector<2x32xf32>
    %c0_6 = arith.constant 0 : index
    %c0_7 = arith.constant 0 : index
    %8 = vector.load %arg4[%c0_6, %c0_7] : memref<1x32xf32, #tpu.memory_space<vmem>>, vector<1x32xf32>
    %9 = vector.broadcast %8 : vector<1x32xf32> to vector<2x32xf32>
    %10 = arith.mulf %7, %9 : vector<2x32xf32>
    %cst_8 = arith.constant dense<0.000000e+00> : vector<2xf32>
    %11 = vector.multi_reduction <add>, %10, %cst_8 [1] : vector<2x32xf32> to vector<2xf32>
    %12 = vector.shape_cast %11 : vector<2xf32> to vector<2x1xf32>
    %c0_9 = arith.constant 0 : index
    %c0_10 = arith.constant 0 : index
    %13 = vector.load %arg5[%c0_9, %c0_10] : memref<1x1xf32, #tpu.memory_space<vmem>>, vector<1x1xf32>
    %14 = vector.broadcast %13 : vector<1x1xf32> to vector<2x1xf32>
    %15 = arith.addf %12, %14 : vector<2x1xf32>
    %c0_11 = arith.constant 0 : index
    %c0_12 = arith.constant 0 : index
    %16 = vector.load %arg6[%c0_11, %c0_12] : memref<2x1xf32, #tpu.memory_space<vmem>>, vector<2x1xf32>
    tpu.vector_store %arg6[%c0_11, %c0_12], %15 {strides = array<i32>} : memref<2x1xf32, #tpu.memory_space<vmem>>, vector<2x1xf32>,
    return
  }
  func.func @transform_0(%arg0: i32) -> (i32, i32) {
    %c0_i32 = arith.constant 0 : i32
    %c0_i32_0 = arith.constant 0 : i32
    return %arg0, %c0_i32 : i32, i32
  }
  func.func @transform_1(%arg0: i32) -> (i32, i32) {
    %c0_i32 = arith.constant 0 : i32
    %c0_i32_0 = arith.constant 0 : i32
    %c0_i32_1 = arith.constant 0 : i32
    return %c0_i32, %c0_i32_0 : i32, i32
  }
  func.func @transform_2(%arg0: i32) -> (i32, i32) {
    %c0_i32 = arith.constant 0 : i32
    %c0_i32_0 = arith.constant 0 : i32
    %c0_i32_1 = arith.constant 0 : i32
    return %c0_i32, %c0_i32_0 : i32, i32
  }
  func.func @transform_3(%arg0: i32) -> (i32, i32) {
    %c0_i32 = arith.constant 0 : i32
    %c0_i32_0 = arith.constant 0 : i32
    %c0_i32_1 = arith.constant 0 : i32
    return %c0_i32, %c0_i32_0 : i32, i32
  }
  func.func @transform_4(%arg0: i32) -> (i32, i32) {
    %c0_i32 = arith.constant 0 : i32
    %c0_i32_0 = arith.constant 0 : i32
    %c0_i32_1 = arith.constant 0 : i32
    return %c0_i32, %c0_i32_0 : i32, i32
  }
  func.func @transform_5(%arg0: i32) -> (i32, i32) {
    %c0_i32 = arith.constant 0 : i32
    %c0_i32_0 = arith.constant 0 : i32
    return %arg0, %c0_i32 : i32, i32
  }
}

</mosaic_0001>

<bundles_post_ra>
// kernel: custom_cnn_forward.5
= control target key start
LH: loop header
LB: loop body
LE: loop exit
PB: predicated region body
PF: predicated region fallthrough
CT: control target
= control target key end

     0   :  { %v200_v0 = vmov 0.0   ;;  %vm201_vm0 = vmmov 0   ;;  %vm125_vm1 = vcmask 254976   ;;  %vm137_vm2 = vcmask 1024   ;;  %s295_s1 = inlined_call_operand.vmem [shape: f32[128,32], index: 1, kind: input, shape index: {}]   ;;  %s296_s0 = inlined_call_operand.vmem [shape: f32[2,128], index: 0, kind: input, shape index: {}]   ;;  %s297_s4 = inlined_call_operand.<no memory space> [shape: f32[1,1], index: 4, kind: input, shape index: {}]   ;;  %s298_s2 = inlined_call_operand.vmem [shape: f32[1,32], index: 2, kind: input, shape index: {}]   ;;  %s299_s3 = inlined_call_operand.vmem [shape: f32[1,32], index: 3, kind: input, shape index: {}]   ;;  %s300_s5 = inlined_call_operand.vmem [shape: f32[2,1], index: 5, kind: output, shape index: {}]  }
   0x1   :  { %163 = vmatprep.subr.mxu0 %v200_v0  ;;  %v38_v1 = vld [vmem:[%s295_s1 + $0x78] sm:$0xff]  ;;  %v37_v2 = vld [vmem:[%s295_s1 + $0x70] sm:$0xff]  ;;  %195 = vmatprep.mubr.msk.f32.mxu0 %vm201_vm0, %v200_v0  ;;  %v36_v3 = vld [vmem:[%s295_s1 + $0x68] sm:$0xff]  ;;  %v10_v18 = vstv %s297_s4 }
   0x2   :  { %164 = vmatpush3.msra.mxu0 %v38_v1  ;;  %v35_v4 = vld [vmem:[%s295_s1 + $0x60] sm:$0xff]  ;;  %v34_v5 = vld [vmem:[%s295_s1 + $0x58] sm:$0xff]  ;;  %v33_v6 = vld [vmem:[%s295_s1 + $0x50] sm:$0xff]  ;;  %11 = vst [vmem:[#allocation2] sm:$0x1] %v10_v18 }
   0x3   :  { %165 = vmatprep.subr.mxu0 %v200_v0  ;;  %v32_v7 = vld [vmem:[%s295_s1 + $0x48] sm:$0xff]  ;;  %v31_v8 = vld [vmem:[%s295_s1 + $0x40] sm:$0xff]  ;;  %v30_v9 = vld [vmem:[%s295_s1 + $0x38] sm:$0xff] }
   0x4   :  { %166 = vmatpush3.msra.mxu0 %v37_v2  ;;  %v29_v10 = vld [vmem:[%s295_s1 + $0x30] sm:$0xff]  ;;  %v28_v11 = vld [vmem:[%s295_s1 + $0x28] sm:$0xff]  ;;  %v27_v12 = vld [vmem:[%s295_s1 + $0x20] sm:$0xff] }
   0x5   :  { %167 = vmatprep.subr.mxu0 %v200_v0  ;;  %v26_v13 = vld [vmem:[%s295_s1 + $0x18] sm:$0xff]  ;;  %v25_v14 = vld [vmem:[%s295_s1 + $0x10] sm:$0xff]  ;;  %v24_v15 = vld [vmem:[%s295_s1 + $0x8] sm:$0xff] }
   0x6   :  { %168 = vmatpush3.msra.mxu0 %v36_v3  ;;  %v23_v16 = vld [vmem:[%s295_s1] sm:$0xff] }
   0x7   :  { %169 = vmatprep.subr.mxu0 %v200_v0  ;;  %v22_v17 = vld [vmem:[%s296_s0] sm:$0x3] }
   0x8   :  { %170 = vmatpush3.msra.mxu0 %v35_v4  ;;  %v143_v19 = vld [vmem:[%s298_s2] ss:$0 sm:$0xff] }
   0x9   :  { %171 = vmatprep.subr.mxu0 %v200_v0  ;;  %v144_v23 = vld [vmem:[%s299_s3] ss:$0 sm:$0xff] }
   0xa   :  { %172 = vmatpush3.msra.mxu0 %v34_v5  ;;  %v145_v27 = vld [vmem:[#allocation2] ss:$0 sm:$0xff] }
   0xb   :  { %173 = vmatprep.subr.mxu0 %v200_v0 }
   0xc   :  { %174 = vmatpush3.msra.mxu0 %v33_v6 }
   0xd   :  { %175 = vmatprep.subr.mxu0 %v200_v0 }
   0xe   :  { %176 = vmatpush3.msra.mxu0 %v32_v7 }
   0xf   :  { %177 = vmatprep.subr.mxu0 %v200_v0 }
  0x10   :  { %178 = vmatpush3.msra.mxu0 %v31_v8 }
  0x11   :  { %179 = vmatprep.subr.mxu0 %v200_v0 }
  0x12   :  { %180 = vmatpush3.msra.mxu0 %v30_v9 }
  0x13   :  { %181 = vmatprep.subr.mxu0 %v200_v0 }
  0x14   :  { %182 = vmatpush3.msra.mxu0 %v29_v10 }
  0x15   :  { %183 = vmatprep.subr.mxu0 %v200_v0 }
  0x16   :  { %184 = vmatpush3.msra.mxu0 %v28_v11 }
  0x17   :  { %185 = vmatprep.subr.mxu0 %v200_v0 }
  0x18   :  { %186 = vmatpush3.msra.mxu0 %v27_v12 }
  0x19   :  { %187 = vmatprep.subr.mxu0 %v200_v0 }
  0x1a   :  { %188 = vmatpush3.msra.mxu0 %v26_v13 }
  0x1b   :  { %189 = vmatprep.subr.mxu0 %v200_v0 }
  0x1c   :  { %190 = vmatpush3.msra.mxu0 %v25_v14 }
  0x1d   :  { %191 = vmatprep.subr.mxu0 %v200_v0 }
  0x1e   :  { %192 = vmatpush3.msra.mxu0 %v24_v15 }
  0x1f   :  { %193 = vmatprep.subr.mxu0 %v200_v0 }
  0x20   :  { %194 = vmatpush3.msra.mxu0 %v23_v16 }
  0x21   :  { %196 = vmatmul.mubr.f32.vlgmr.msra.gmra.mxu0 %v22_v17 }
  0xe1   :  { %v112_v20 = vpop.f32.mrf.mxu0 }
  0xe2   :  { %v113_v21 = vadd.f32 %v143_v19, %v112_v20 }
  0xe3   :  { %v197_v22 = vpop.f32.mrf.mxu0 }
  0xe4   :  { %v116_v24 = vmax.f32 %v113_v21, 0.0 }
  0xe6   :  { %v124_v25 = vmul.f32 %v144_v23, %v116_v24 }
  0xe8   :  { %v126_v26 = vsel %vm125_vm1, %v124_v25, 0.0 }
  0xe9   :  { %127 = vadd.xlane.f32.xlu0 %v126_v26 }
 0x172   :  { %v128_v28 = vpop.xlane.xlu0 %127 }
 0x173   :  { %v136_v29 = vadd.f32 %v145_v27, %v128_v28 }
 0x175   :  { %138 = vst.msk [vmem:[%s300_s5] sm:$0x3] %vm137_vm2, %v136_v29 }

// kernel: custom_cnn_forward.4
= control target key start
LH: loop header
LB: loop body
LE: loop exit
PB: predicated region body
PF: predicated region fallthrough
CT: control target
= control target key end

     0   :  { %s2258_s15 = smov 0   ;;  %s2666_s0 = inlined_call_operand.vmem [shape: f32[2,10,10,8], index: 0, kind: input, shape index: {}]   ;;  %s2667_s1 = inlined_call_operand.vmem [shape: f32[72,8], index: 1, kind: input, shape index: {}]   ;;  %s2668_s2 = inlined_call_operand.vmem [shape: f32[1,8], index: 2, kind: input, shape index: {}]   ;;  %s2669_s3 = inlined_call_operand.vmem [shape: f32[4,16,64], index: 3, kind: input, shape index: {}]   ;;  %s2670_s4 = inlined_call_operand.vmem [shape: f32[2,16,8], index: 4, kind: output, shape index: {}]  }
   0x1 LB: > { %s1793_s16 = sadd.s32 4294967295, %s2231_s15   ;;  %p1797_p0 = scmp.ge.s32.totalorder %s2231_s15, 1  ;;  %s2231_s15 = sphi %s2258_s15, %s14_s15  }
   0x2   : > { %p162_p1 = scmp.lt.s32.totalorder %s2231_s15, 3 }
   0x4   : > { %p163_p2 = pnand %p1797_p0, %p162_p1 }
   0x6   : > { %166 = sbr.rel (%p163_p2) target bundleno = 527 (0x20f), region = 36 }
   0xb   : > { %v219_v0 = vld [vmem:[%s2667_s1 + $0x8] sm:$0xff]  ;;  %p188_p3 = scmp.lt.s32.totalorder %s1793_s16, 1  ;;  %v218_v1 = vld [vmem:[%s2667_s1] sm:$0xff]  ;;  %v220_v2 = vld [vmem:[%s2667_s1 + $0x10] sm:$0xff]  ;;  %vm243_vm0 = vcmask 1046528   ;;  %vm268_vm1 = vcmask 64512  }
   0xc   : > { %2214 = vmatprep.subr.mxu1 %v219_v0  ;;  %2012 = vmatprep.subr.mxu0 %v219_v0  ;;  %vm511_vm2 = vcmask 1045504   ;;  %v221_v28 = vld [vmem:[%s2667_s1 + $0x18] sm:$0xff]  ;;  %v222_v44 = vld [vmem:[%s2667_s1 + $0x20] sm:$0xff]  ;;  %v223_v60 = vld [vmem:[%s2667_s1 + $0x28] sm:$0xff]  ;;  %vm1396_vm3 = vcmask 523264  }
   0xd   : > { %2215 = vmatpush3.msra.mxu1 %v219_v0  ;;  %2013 = vmatpush3.msra.mxu0 %v219_v0  ;;  %s2680_s16 = smov (!%p188_p3, %s1793_s16), 1 }
   0xe   : > { %2026 = vmatprep.subr.mxu1 %v218_v1  ;;  %2040 = vmatprep.subr.mxu0 %v220_v2  ;;  %s2216_s23 = smul.u32 160, %s2680_s16  ;;  %s1890_s7 = sshll.u32 %s2680_s16, 4 }
   0xf   : > { %s197_s10 = scalar_lea.vmem %s2670_s4, %s1890_s7 }
  0x10   : > { %s2281_s26 = scalar_lea.vmem %s2666_s0, %s2216_s23 }
  0x11   : > { %v2284_v3 = vld [vmem:[%s2281_s26] sm:$0xff]  ;;  %v199_v4 = vld [vmem:[%s2281_s26 + $0x8] sm:$0x3]  ;;  %v2297_v12 = vld [vmem:[%s2281_s26 + $0x10] sm:$0xff] }
  0x12   : > { %v2288_v5 = vld [vmem:[%s2281_s26 + $0x40] sm:$0xff]  ;;  %v244_v6 = vrot.slane %v2284_v3, 1  ;;  %v245_v7 = vrot.slane %v199_v4, 1  ;;  %v513_v8 = vrot.slane %v199_v4, 2  ;;  %v2292_v9 = vld [vmem:[%s2281_s26 + $0x48] sm:$0x3] }
  0x13   : > { %v256_v10 = vrot.slane %v2288_v5, 1  ;;  %v257_v11 = vrot.slane %v2292_v9, 1  ;;  %v201_v13 = vld [vmem:[%s2281_s26 + $0x18] sm:$0x3]  ;;  %v2301_v14 = vld [vmem:[%s2281_s26 + $0x50] sm:$0xff]  ;;  %v512_v15 = vrot.slane %v2284_v3, 2 }
  0x14   : > { %v246_v16 = vsel %vm243_vm0, %v244_v6, %v245_v7  ;;  %v247_v17 = vrot.slane %v2297_v12, 1  ;;  %v248_v18 = vrot.slane %v201_v13, 1  ;;  %v516_v19 = vrot.slane %v201_v13, 2  ;;  %v2307_v20 = vld [vmem:[%s2281_s26 + $0x58] sm:$0x3]  ;;  %v2310_v21 = vld [vmem:[%s2281_s26 + $0x20] sm:$0xff] }
  0x15   : > { %2014 = vmatprep.mubr.msk.f32.mxu0 %vm268_vm1, %v246_v16  ;;  %v2314_v22 = vsel %vm243_vm0, %v256_v10, %v257_v11  ;;  %v259_v23 = vrot.slane %v2301_v14, 1  ;;  %v260_v24 = vrot.slane %v2307_v20, 1  ;;  %v203_v25 = vld [vmem:[%s2281_s26 + $0x28] sm:$0x3]  ;;  %v250_v26 = vrot.slane %v2310_v21, 1  ;;  %v2321_v27 = vld [vmem:[%s2281_s26 + $0x60] sm:$0xff] }
  0x16   : > { %2020 = vmatprep.mubr.msk.f32.mxu1 %vm268_vm1, %v2314_v22  ;;  %v2329_v29 = vsel %vm243_vm0, %v247_v17, %v248_v18  ;;  %v251_v30 = vrot.slane %v203_v25, 1  ;;  %v2332_v31 = vld [vmem:[%s2281_s26 + $0x68] sm:$0x3]  ;;  %v262_v32 = vrot.slane %v2321_v27, 1  ;;  %v2336_v33 = vld [vmem:[%s2281_s26 + $0x30] sm:$0xff]  ;;  %v514_v46 = vsel %vm511_vm2, %v512_v15, %v513_v8  ;;  %v225_v15 = vld [vmem:[%s2667_s1 + $0x38] sm:$0xff] }
  0x17   : > { %v2339_v34 = vld [vmem:[%s2281_s26 + $0x70] sm:$0xff]  ;;  %2015 = vmatmul.mubr.msk.f32.vlgmr.msra.gmra.mxu0 %vm268_vm1, %v2329_v29  ;;  %v2344_v35 = vsel %vm243_vm0, %v259_v23, %v260_v24  ;;  %v263_v36 = vrot.slane %v2332_v31, 1  ;;  %v205_v37 = vld [vmem:[%s2281_s26 + $0x38] sm:$0x3]  ;;  %v253_v38 = vrot.slane %v2336_v33, 1  ;;  %v515_v47 = vrot.slane %v2297_v12, 2 }
  0x18   : > { %v2350_v39 = vld [vmem:[%s2281_s26 + $0x78] sm:$0x3]  ;;  %2021 = vmatmul.mubr.msk.f32.vlgmr.msra.gmra.mxu1 %vm268_vm1, %v2344_v35  ;;  %2041 = vmatpush3.msra.mxu0 %v220_v2  ;;  %v2355_v40 = vsel %vm243_vm0, %v250_v26, %v251_v30  ;;  %v254_v41 = vrot.slane %v205_v37, 1  ;;  %v265_v42 = vrot.slane %v2339_v34, 1  ;;  %v518_v50 = vrot.slane %v2310_v21, 2  ;;  %v2395_v58 = vld [vmem:[%s2281_s26 + $0x90] sm:$0xff] }
  0x19   : > { %v266_v43 = vrot.slane %v2350_v39, 1  ;;  %2027 = vmatpush3.msra.mxu1 %v218_v1  ;;  %2017 = vmatprep.mubr.msk.f32.mxu0 %vm268_vm1, %v2355_v40  ;;  %v2365_v45 = vsel %vm243_vm0, %v262_v32, %v263_v36  ;;  %v519_v51 = vrot.slane %v203_v25, 2  ;;  %v2384_v52 = vsel %vm511_vm2, %v515_v47, %v516_v19  ;;  %v2392_v57 = vld [vmem:[%s2281_s26 + $0x98] sm:$0x3]  ;;  %v224_v1 = vld [vmem:[%s2667_s1 + $0x30] sm:$0xff]  ;;  %v226_v16 = vld [vmem:[%s2667_s1 + $0x40] sm:$0xff] }
  0x1a   : > { %2023 = vmatprep.mubr.msk.f32.mxu1 %vm268_vm1, %v2365_v45  ;;  %v2372_v48 = vsel %vm243_vm0, %v253_v38, %v254_v41  ;;  %2054 = vmatprep.subr.mxu1 %v221_v28  ;;  %v521_v53 = vrot.slane %v2336_v33, 2  ;;  %v522_v54 = vrot.slane %v205_v37, 2  ;;  %v524_v55 = vrot.slane %v2288_v5, 2  ;;  %v215_v17 = vld [vmem:[%s2281_s26 + $0x88] sm:$0x3]  ;;  %v1394_v25 = vld [vmem:[%s2669_s3] sm:$0xff] }
  0x1b   : > { %v2375_v49 = vsel %vm243_vm0, %v265_v42, %v266_v43  ;;  %2018 = vmatmul.mubr.msk.f32.gmra.mxu0 %vm268_vm1, %v2372_v48  ;;  %2068 = vmatprep.subr.mxu0 %v222_v44  ;;  %v525_v56 = vrot.slane %v2292_v9, 2  ;;  %v2400_v59 = vsel %vm511_vm2, %v518_v50, %v519_v51  ;;  %v1135_v61 = vrot.slane %v2395_v58, 1  ;;  %v1876_v26 = vld [vmem:[%s2669_s3 + $0x10] sm:$0xff] }
  0x1c   : > { %2024 = vmatmul.mubr.msk.f32.gmra.mxu1 %vm268_vm1, %v2375_v49  ;;  %2042 = vmatprep.mubr.msk.f32.mxu0 %vm268_vm1, %v514_v46  ;;  %v2409_v62 = vsel %vm511_vm2, %v521_v53, %v522_v54  ;;  %v527_v63 = vrot.slane %v2301_v14, 2  ;;  %v528_v0 = vrot.slane %v2307_v20, 2  ;;  %v1136_v2 = vrot.slane %v2392_v57, 1 }
  0x1d   : > { %2028 = vmatprep.mubr.msk.f32.mxu1 %vm268_vm1, %v2284_v3  ;;  %v2420_v3 = vsel %vm511_vm2, %v524_v55, %v525_v56  ;;  %v530_v4 = vrot.slane %v2321_v27, 2  ;;  %v531_v6 = vrot.slane %v2332_v31, 2  ;;  %v533_v9 = vrot.slane %v2339_v34, 2 }
  0x1e   : > { %v2427_v7 = vsel %vm243_vm0, %v1135_v61, %v1136_v2  ;;  %v2436_v8 = vsel %vm511_vm2, %v527_v63, %v528_v0  ;;  %v534_v10 = vrot.slane %v2350_v39, 2  ;;  %v783_v19 = vrot.slane %v215_v17, 1 }
  0x1f   : > { %2043 = vmatmul.mubr.msk.f32.vlgmr.msra.gmra.mxu0 %vm268_vm1, %v2384_v52  ;;  %v2443_v11 = vsel %vm511_vm2, %v530_v4, %v531_v6  ;;  %v901_v23 = vrot.slane %v215_v17, 2  ;;  %v1254_v24 = vrot.slane %v2392_v57, 2 }
  0x20   : > { %2029 = vmatmul.mubr.msk.f32.vlgmr.msra.gmra.mxu1 %vm268_vm1, %v2297_v12  ;;  %2069 = vmatpush3.msra.mxu0 %v222_v44  ;;  %v2452_v13 = vsel %vm511_vm2, %v533_v9, %v534_v10 }
  0x21   : > { %2055 = vmatpush3.msra.mxu1 %v221_v28  ;;  %2031 = vmatprep.mubr.msk.f32.mxu1 %vm268_vm1, %v2310_v21 }
  0x22   : > { %2045 = vmatprep.mubr.msk.f32.mxu0 %vm268_vm1, %v2400_v59  ;;  %2082 = vmatprep.subr.mxu1 %v223_v60 }
  0x23   : > { %2046 = vmatmul.mubr.msk.f32.gmra.mxu0 %vm268_vm1, %v2409_v62  ;;  %2096 = vmatprep.subr.mxu0 %v224_v1 }
  0x24   : > { %2032 = vmatmul.mubr.msk.f32.gmra.mxu1 %vm268_vm1, %v2336_v33  ;;  %2048 = vmatprep.mubr.msk.f32.mxu0 %vm268_vm1, %v2420_v3 }
  0x25   : > { %2034 = vmatprep.mubr.msk.f32.mxu1 %vm268_vm1, %v2288_v5 }
  0x27   : > { %2049 = vmatmul.mubr.msk.f32.gmra.mxu0 %vm268_vm1, %v2436_v8 }
  0x28   : > { %2035 = vmatmul.mubr.msk.f32.gmra.mxu1 %vm268_vm1, %v2301_v14  ;;  %2051 = vmatprep.mubr.msk.f32.mxu0 %vm268_vm1, %v2443_v11 }
  0x29   : > { %2037 = vmatprep.mubr.msk.f32.mxu1 %vm268_vm1, %v2321_v27 }
  0x2b   : > { %2052 = vmatmul.mubr.msk.f32.gmra.mxu0 %vm268_vm1, %v2452_v13 }
  0x2c   : > { %2038 = vmatmul.mubr.msk.f32.gmra.mxu1 %vm268_vm1, %v2339_v34  ;;  %2070 = vmatprep.mubr.msk.f32.mxu0 %vm268_vm1, %v2329_v29 }
  0x2d   : > { %2056 = vmatprep.mubr.msk.f32.mxu1 %vm268_vm1, %v2297_v12  ;;  %v214_v12 = vld [vmem:[%s2281_s26 + $0x80] sm:$0xff] }
  0x2e   : > { %v782_v18 = vrot.slane %v214_v12, 1 }
  0x2f   : > { %2071 = vmatmul.mubr.msk.f32.vlgmr.msra.gmra.mxu0 %vm268_vm1, %v2355_v40 }
  0x30   : > { %2057 = vmatmul.mubr.msk.f32.vlgmr.msra.gmra.mxu1 %vm268_vm1, %v2310_v21  ;;  %2097 = vmatpush3.msra.mxu0 %v224_v1  ;;  %v784_v20 = vsel %vm243_vm0, %v782_v18, %v783_v19 }
  0x31   : > { %2083 = vmatpush3.msra.mxu1 %v223_v60  ;;  %2059 = vmatprep.mubr.msk.f32.mxu1 %vm268_vm1, %v2336_v33 }
  0x32   : > { %2073 = vmatprep.mubr.msk.f32.mxu0 %vm268_vm1, %v2372_v48  ;;  %2110 = vmatprep.subr.mxu1 %v225_v15 }
  0x33   : > { %2074 = vmatmul.mubr.msk.f32.gmra.mxu0 %vm268_vm1, %v2314_v22  ;;  %2124 = vmatprep.subr.mxu0 %v226_v16 }
  0x34   : > { %2060 = vmatmul.mubr.msk.f32.gmra.mxu1 %vm268_vm1, %v2288_v5  ;;  %2076 = vmatprep.mubr.msk.f32.mxu0 %vm268_vm1, %v2344_v35 }
  0x35   : > { %2062 = vmatprep.mubr.msk.f32.mxu1 %vm268_vm1, %v2301_v14 }
  0x37   : > { %2077 = vmatmul.mubr.msk.f32.gmra.mxu0 %vm268_vm1, %v2365_v45 }
  0x38   : > { %2063 = vmatmul.mubr.msk.f32.gmra.mxu1 %vm268_vm1, %v2321_v27  ;;  %2079 = vmatprep.mubr.msk.f32.mxu0 %vm268_vm1, %v2375_v49 }
  0x39   : > { %2065 = vmatprep.mubr.msk.f32.mxu1 %vm268_vm1, %v2339_v34 }
  0x3b   : > { %2080 = vmatmul.mubr.msk.f32.gmra.mxu0 %vm268_vm1, %v784_v20 }
  0x3c   : > { %2066 = vmatmul.mubr.msk.f32.gmra.mxu1 %vm268_vm1, %v214_v12  ;;  %2098 = vmatprep.mubr.msk.f32.mxu0 %vm268_vm1, %v2310_v21  ;;  %v900_v21 = vrot.slane %v214_v12, 2 }
  0x3d   : > { %2084 = vmatprep.mubr.msk.f32.mxu1 %vm268_vm1, %v2384_v52 }
  0x3f   : > { %2099 = vmatmul.mubr.msk.f32.vlgmr.msra.gmra.mxu0 %vm268_vm1, %v2336_v33 }
  0x40   : > { %2085 = vmatmul.mubr.msk.f32.vlgmr.msra.gmra.mxu1 %vm268_vm1, %v2400_v59  ;;  %2125 = vmatpush3.msra.mxu0 %v226_v16 }
  0x41   : > { %2111 = vmatpush3.msra.mxu1 %v225_v15  ;;  %2087 = vmatprep.mubr.msk.f32.mxu1 %vm268_vm1, %v2409_v62 }
  0x42   : > { %2101 = vmatprep.mubr.msk.f32.mxu0 %vm268_vm1, %v2288_v5  ;;  %v902_v5 = vsel %vm511_vm2, %v900_v21, %v901_v23 }
  0x43   : > { %2102 = vmatmul.mubr.msk.f32.gmra.mxu0 %vm268_vm1, %v2301_v14  ;;  %v1253_v14 = vrot.slane %v2395_v58, 2 }
  0x44   : > { %2088 = vmatmul.mubr.msk.f32.gmra.mxu1 %vm268_vm1, %v2420_v3  ;;  %2104 = vmatprep.mubr.msk.f32.mxu0 %vm268_vm1, %v2321_v27 }
  0x45   : > { %2090 = vmatprep.mubr.msk.f32.mxu1 %vm268_vm1, %v2436_v8 }
  0x47   : > { %2105 = vmatmul.mubr.msk.f32.gmra.mxu0 %vm268_vm1, %v2339_v34 }
  0x48   : > { %2091 = vmatmul.mubr.msk.f32.gmra.mxu1 %vm268_vm1, %v2443_v11  ;;  %2107 = vmatprep.mubr.msk.f32.mxu0 %vm268_vm1, %v214_v12 }
  0x49   : > { %2093 = vmatprep.mubr.msk.f32.mxu1 %vm268_vm1, %v2452_v13 }
  0x4b   : > { %2108 = vmatmul.mubr.msk.f32.gmra.mxu0 %vm268_vm1, %v2395_v58 }
  0x4c   : > { %2094 = vmatmul.mubr.msk.f32.gmra.mxu1 %vm268_vm1, %v902_v5  ;;  %2126 = vmatprep.mubr.msk.f32.mxu0 %vm268_vm1, %v2400_v59 }
  0x4d   : > { %2112 = vmatprep.mubr.msk.f32.mxu1 %vm268_vm1, %v2355_v40 }
  0x4f   : > { %2127 = vmatmul.mubr.msk.f32.vlgmr.msra.gmra.mxu0 %vm268_vm1, %v2409_v62 }
  0x50   : > { %2113 = vmatmul.mubr.msk.f32.vlgmr.msra.gmra.mxu1 %vm268_vm1, %v2372_v48  ;;  %2129 = vmatprep.mubr.msk.f32.mxu0 %vm268_vm1, %v2420_v3 }
  0x51   : > { %2115 = vmatprep.mubr.msk.f32.mxu1 %vm268_vm1, %v2314_v22  ;;  %v1255_v22 = vsel %vm511_vm2, %v1253_v14, %v1254_v24 }
  0x53   : > { %2130 = vmatmul.mubr.msk.f32.gmra.mxu0 %vm268_vm1, %v2436_v8 }
  0x54   : > { %2116 = vmatmul.mubr.msk.f32.gmra.mxu1 %vm268_vm1, %v2344_v35  ;;  %2132 = vmatprep.mubr.msk.f32.mxu0 %vm268_vm1, %v2443_v11 }
  0x55   : > { %2118 = vmatprep.mubr.msk.f32.mxu1 %vm268_vm1, %v2365_v45 }
  0x57   : > { %2133 = vmatmul.mubr.msk.f32.gmra.mxu0 %vm268_vm1, %v2452_v13 }
  0x58   : > { %2119 = vmatmul.mubr.msk.f32.gmra.mxu1 %vm268_vm1, %v2375_v49  ;;  %2135 = vmatprep.mubr.msk.f32.mxu0 %vm268_vm1, %v902_v5 }
  0x59   : > { %2121 = vmatprep.mubr.msk.f32.mxu1 %vm268_vm1, %v784_v20 }
  0x5b   : > { %2136 = vmatmul.mubr.msk.f32.gmra.mxu0 %vm268_vm1, %v1255_v22 }
  0x5c   : > { %2122 = vmatmul.mubr.msk.f32.gmra.mxu1 %vm268_vm1, %v2427_v7  ;;  %2173 = vmatprep.mubr.msk.f32.mxu0 %vm1396_vm3, %v1876_v26 }
  0x5d   : > { %2154 = vmatprep.mubr.msk.f32.mxu1 %vm1396_vm3, %v1394_v25 }
  0xd7   : > { %v2570_v27 = vpop.f32.mrf.mxu0 }
  0xd8   : > { %v2022_v28 = vpop.f32.mrf.mxu1 }
  0xd9   : > { %v2572_v29 = vpop.f32.mrf.mxu0 }
  0xda   : > { %v371_v30 = vpop.f32.mrf.mxu1 }
  0xdb   : > { %v2019_v31 = vpop.f32.mrf.mxu0 }
  0xdc   : > { %v2025_v32 = vpop.f32.mrf.mxu1 }
  0xdd   : > { %v361_v33 = vpop.f32.mrf.mxu0 }
  0xde   : > { %v381_v34 = vpop.f32.mrf.mxu1 }
  0xdf   : > { %v2574_v35 = vpop.f32.mrf.mxu0 }
  0xe0   : > { %v2030_v36 = vpop.f32.mrf.mxu1 }
  0xe1   : > { %v2576_v37 = vpop.f32.mrf.mxu0 }
  0xe2   : > { %v2578_v38 = vpop.f32.mrf.mxu1 }
  0xe3   : > { %v2047_v39 = vpop.f32.mrf.mxu0 }
  0xe4   : > { %v2033_v40 = vpop.f32.mrf.mxu1 }
  0xe5   : > { %v628_v41 = vpop.f32.mrf.mxu0  ;;  %v488_v23 = vadd.f32 %v2033_v40, %v2019_v31  ;;  %v473_v31 = vadd.f32 %v2578_v38, %v2572_v29 }
  0xe6   : > { %v482_v42 = vpop.f32.mrf.mxu1 }
  0xe7   : > { %v2050_v43 = vpop.f32.mrf.mxu0  ;;  %v483_v22 = vadd.f32 %v482_v42, %v361_v33 }
  0xe8   : > { %v2036_v44 = vpop.f32.mrf.mxu1 }
  0xe9   : > { %v638_v45 = vpop.f32.mrf.mxu0  ;;  %v498_v16 = vadd.f32 %v2036_v44, %v2022_v28  ;;  %v660_v44 = vadd.f32 %v2047_v39, %v488_v23  ;;  %v659_v33 = vadd.f32 %v628_v41, %v483_v22 }
  0xea   : > { %v492_v46 = vpop.f32.mrf.mxu1 }
  0xeb   : > { %v2053_v47 = vpop.f32.mrf.mxu0  ;;  %v493_v18 = vadd.f32 %v492_v46, %v371_v30  ;;  %v662_v5 = vadd.f32 %v2050_v43, %v498_v16 }
  0xec   : > { %v2039_v48 = vpop.f32.mrf.mxu1 }
  0xed   : > { %v648_v49 = vpop.f32.mrf.mxu0  ;;  %v508_v19 = vadd.f32 %v2039_v48, %v2025_v32  ;;  %v661_v26 = vadd.f32 %v638_v45, %v493_v18 }
  0xee   : > { %v502_v50 = vpop.f32.mrf.mxu1 }
  0xef   : > { %v2580_v51 = vpop.f32.mrf.mxu0  ;;  %v503_v14 = vadd.f32 %v502_v50, %v381_v34 }
  0xf0   : > { %v2582_v52 = vpop.f32.mrf.mxu1 }
  0xf1   : > { %v2584_v53 = vpop.f32.mrf.mxu0  ;;  %v663_v30 = vadd.f32 %v648_v49, %v503_v14 }
  0xf2   : > { %v2586_v54 = vpop.f32.mrf.mxu1 }
  0xf3   : > { %v2588_v55 = vpop.f32.mrf.mxu0 }
  0xf4   : > { %v2061_v56 = vpop.f32.mrf.mxu1 }
  0xf5   : > { %v2590_v57 = vpop.f32.mrf.mxu0  ;;  %v776_v40 = vadd.f32 %v2061_v56, %v660_v44 }
  0xf6   : > { %v744_v58 = vpop.f32.mrf.mxu1 }
  0xf7   : > { %v2078_v59 = vpop.f32.mrf.mxu0  ;;  %v895_v29 = vadd.f32 %v2588_v55, %v776_v40 }
  0xf8   : > { %v2064_v60 = vpop.f32.mrf.mxu1 }
  0xf9   : > { %v873_v61 = vpop.f32.mrf.mxu0 }
  0xfa   : > { %v754_v62 = vpop.f32.mrf.mxu1 }
  0xfb   : > { %v2081_v63 = vpop.f32.mrf.mxu0  ;;  %v777_v32 = vadd.f32 %v754_v62, %v661_v26  ;;  %v657_v62 = vadd.f32 %v2576_v37, %v473_v31 }
  0xfc   : > { %v2067_v0 = vpop.f32.mrf.mxu1 }
  0xfd   : > { %v883_v1 = vpop.f32.mrf.mxu0  ;;  %v896_v50 = vadd.f32 %v873_v61, %v777_v32 }
  0xfe   : > { %v764_v2 = vpop.f32.mrf.mxu1 }
  0xff   : > { %v2592_v3 = vpop.f32.mrf.mxu0  ;;  %v779_v43 = vadd.f32 %v764_v2, %v663_v30  ;;  %v773_v2 = vadd.f32 %v2586_v54, %v657_v62 }
 0x100   : > { %2671 = vst [vmem:[#allocation2_spill] sm:$0xff] %v2592_v3  ;;  %v2594_v4 = vpop.f32.mrf.mxu1  ;;  %v778_v3 = vadd.f32 %v2064_v60, %v662_v5 }
 0x101   : > { %v2596_v6 = vpop.f32.mrf.mxu0  ;;  %v898_v38 = vadd.f32 %v883_v1, %v779_v43  ;;  %v892_v1 = vadd.f32 %v2584_v53, %v773_v2  ;;  %v1884_v2 = vld [vmem:[%s2669_s3 + $0x30] sm:$0xff] }
 0x102   : > { %2672 = vst [vmem:[#allocation3_spill] sm:$0xff] %v2596_v6  ;;  %v2598_v7 = vpop.f32.mrf.mxu1  ;;  %v664_v6 = vadd.f32 %v2053_v47, %v508_v19  ;;  %v897_v42 = vadd.f32 %v2078_v59, %v778_v3 }
 0x103   : > { %2673 = vst [vmem:[#allocation4_spill] sm:$0xff] %v2598_v7  ;;  %v2600_v8 = vpop.f32.mrf.mxu0  ;;  %v478_v7 = vadd.f32 %v2030_v36, %v2570_v27  ;;  %v775_v27 = vadd.f32 %v744_v58, %v659_v33 }
 0x104   : > { %v2089_v9 = vpop.f32.mrf.mxu1  ;;  %v780_v46 = vadd.f32 %v2067_v0, %v664_v6 }
 0x105   : > { %v2602_v10 = vpop.f32.mrf.mxu0  ;;  %v658_v47 = vadd.f32 %v2574_v35, %v478_v7  ;;  %v894_v35 = vadd.f32 %v2590_v57, %v775_v27  ;;  %v1013_v61 = vadd.f32 %v2089_v9, %v895_v29 }
 0x106   : > { %2674 = vst [vmem:[#allocation5_spill] sm:$0xff] %v2602_v10  ;;  %v981_v11 = vpop.f32.mrf.mxu1  ;;  %v899_v39 = vadd.f32 %v2081_v63, %v780_v46 }
 0x107   : > { %v2106_v13 = vpop.f32.mrf.mxu0  ;;  %v774_v0 = vadd.f32 %v2582_v52, %v658_v47  ;;  %v1129_v57 = vadd.f32 %v2600_v8, %v1013_v61  ;;  %v2677_v26 = vld [vmem:[#allocation2_spill] sm:$0xff] }
 0x108   : > { %v2092_v15 = vpop.f32.mrf.mxu1 }
 0x109   : > { %v1107_v12 = vpop.f32.mrf.mxu0  ;;  %v1015_v49 = vadd.f32 %v2092_v15, %v897_v42  ;;  %v893_v37 = vadd.f32 %v2580_v51, %v774_v0  ;;  %v1012_v15 = vadd.f32 %v981_v11, %v894_v35  ;;  %v2678_v46 = vld [vmem:[#allocation3_spill] sm:$0xff] }
 0x10a   : > { %v991_v17 = vpop.f32.mrf.mxu1  ;;  %v2675_v23 = vld [vmem:[#allocation4_spill] sm:$0xff]  ;;  %v1881_v35 = vld [vmem:[%s2669_s3 + $0x28] sm:$0xff] }
 0x10b   : > { %v2109_v20 = vpop.f32.mrf.mxu0  ;;  %v1014_v41 = vadd.f32 %v991_v17, %v896_v50  ;;  %v1131_v63 = vadd.f32 %v2106_v13, %v1015_v49  ;;  %v1011_v17 = vadd.f32 %v2594_v4, %v893_v37  ;;  %v1010_v5 = vadd.f32 %v2675_v23, %v892_v1  ;;  %v1873_v4 = vld [vmem:[%s2668_s2] ss:$0 sm:$0xff] }
 0x10c   : > { %v2095_v21 = vpop.f32.mrf.mxu1 }
 0x10d   : > { %v1117_v24 = vpop.f32.mrf.mxu0  ;;  %v1017_v56 = vadd.f32 %v2095_v21, %v899_v39  ;;  %v1130_v16 = vadd.f32 %v1107_v12, %v1014_v41  ;;  %v2676_v14 = vld [vmem:[#allocation5_spill] sm:$0xff]  ;;  %v1127_v53 = vadd.f32 %v2677_v26, %v1011_v17  ;;  %v1126_v31 = vadd.f32 %v2678_v46, %v1010_v5  ;;  %v1395_v41 = vld [vmem:[%s2669_s3 + $0x8] sm:$0xff] }
 0x10e   : > { %v1001_v25 = vpop.f32.mrf.mxu1  ;;  %v1128_v51 = vadd.f32 %v2676_v14, %v1012_v15 }
 0x10f   : > { %v2604_v10 = vpop.f32.mrf.mxu0  ;;  %v1016_v3 = vadd.f32 %v1001_v25, %v898_v38  ;;  %v1133_v18 = vadd.f32 %v2109_v20, %v1017_v56  ;;  %v1877_v56 = vld [vmem:[%s2669_s3 + $0x18] sm:$0xff] }
 0x110   : > { %v2607_v28 = vpop.f32.mrf.mxu1 }
 0x111   : > { %v2609_v48 = vpop.f32.mrf.mxu0  ;;  %v1132_v21 = vadd.f32 %v1117_v24, %v1016_v3  ;;  %v1246_v33 = vadd.f32 %v2607_v28, %v1127_v53 }
 0x112   : > { %v1206_v34 = vpop.f32.mrf.mxu1 }
 0x113   : > { %v2131_v45 = vpop.f32.mrf.mxu0  ;;  %v1245_v27 = vadd.f32 %v1206_v34, %v1126_v31  ;;  %v1364_v49 = vadd.f32 %v2604_v10, %v1246_v33 }
 0x114   : > { %v2117_v36 = vpop.f32.mrf.mxu1 }
 0x115   : > { %v1334_v60 = vpop.f32.mrf.mxu0  ;;  %v1248_v22 = vadd.f32 %v2117_v36, %v1129_v57  ;;  %v1363_v28 = vadd.f32 %v2609_v48, %v1245_v27  ;;  %v1379_v34 = vadd.f32 %v1873_v4, %v1364_v49 }
 0x116   : > { %v1216_v6 = vpop.f32.mrf.mxu1 }
 0x117   : > { %v2134_v59 = vpop.f32.mrf.mxu0  ;;  %v1247_v8 = vadd.f32 %v1216_v6, %v1128_v51  ;;  %v1366_v40 = vadd.f32 %v2131_v45, %v1248_v22  ;;  %v1378_v10 = vadd.f32 %v1873_v4, %v1363_v28  ;;  %v1387_v38 = vmax.f32 %v1379_v34, 0.0 }
 0x118   : > { %v2120_v58 = vpop.f32.mrf.mxu1 }
 0x119   : > { %v1344_v7 = vpop.f32.mrf.mxu0  ;;  %v1250_v55 = vadd.f32 %v2120_v58, %v1131_v63  ;;  %v1365_v36 = vadd.f32 %v1334_v60, %v1247_v8  ;;  %v1381_v62 = vadd.f32 %v1873_v4, %v1366_v40  ;;  %v1386_v48 = vmax.f32 %v1378_v10, 0.0  ;;  %v1885_v58 = vld [vmem:[%s2669_s3 + $0x38] sm:$0xff] }
 0x11a   : > { %v1226_v52 = vpop.f32.mrf.mxu1 }
 0x11b   : > { %v2137_v54 = vpop.f32.mrf.mxu0  ;;  %v1249_v9 = vadd.f32 %v1226_v52, %v1130_v16  ;;  %v1368_v12 = vadd.f32 %v2134_v59, %v1250_v55  ;;  %v1380_v45 = vadd.f32 %v1873_v4, %v1365_v36  ;;  %v1389_v60 = vmax.f32 %v1381_v62, 0.0  ;;  %v1880_v59 = vld [vmem:[%s2669_s3 + $0x20] sm:$0xff] }
 0x11c   : > { %v2123_v19 = vpop.f32.mrf.mxu1 }
 0x11d   : > { %v1252_v13 = vadd.f32 %v2123_v19, %v1133_v18  ;;  %v1354_v44 = vpop.f32.mrf.mxu0  ;;  %v1367_v24 = vadd.f32 %v1344_v7, %v1249_v9  ;;  %v1383_v42 = vadd.f32 %v1873_v4, %v1368_v12  ;;  %v1388_v29 = vmax.f32 %v1380_v45, 0.0 }
 0x11e   : > { %v1236_v11 = vpop.f32.mrf.mxu1 }
 0x11f   : > { %v1370_v20 = vadd.f32 %v2137_v54, %v1252_v13  ;;  %v1251_v25 = vadd.f32 %v1236_v11, %v1132_v21  ;;  %v1382_v50 = vadd.f32 %v1873_v4, %v1367_v24  ;;  %v1391_v0 = vmax.f32 %v1383_v42, 0.0 }
 0x121   : > { %v1385_v30 = vadd.f32 %v1873_v4, %v1370_v20  ;;  %v1369_v32 = vadd.f32 %v1354_v44, %v1251_v25  ;;  %v1390_v6 = vmax.f32 %v1382_v50, 0.0 }
 0x123   : > { %v1393_v43 = vmax.f32 %v1385_v30, 0.0  ;;  %v1384_v47 = vadd.f32 %v1873_v4, %v1369_v32 }
 0x125   : > { %v1392_v39 = vmax.f32 %v1384_v47, 0.0  ;;  %2138 = vmatprep.subr.mxu1 %v1393_v43  ;;  %2157 = vmatprep.subr.mxu0 %v1393_v43 }
 0x126   : > { %2139 = vmatpush3.msra.mxu1 %v1393_v43  ;;  %2158 = vmatpush3.msra.mxu0 %v1393_v43 }
 0x127   : > { %2140 = vmatprep.subr.mxu1 %v1392_v39  ;;  %2159 = vmatprep.subr.mxu0 %v1392_v39 }
 0x128   : > { %2141 = vmatpush3.msra.mxu1 %v1392_v39  ;;  %2160 = vmatpush3.msra.mxu0 %v1392_v39 }
 0x129   : > { %2142 = vmatprep.subr.mxu1 %v1391_v0  ;;  %2161 = vmatprep.subr.mxu0 %v1391_v0 }
 0x12a   : > { %2143 = vmatpush3.msra.mxu1 %v1391_v0  ;;  %2162 = vmatpush3.msra.mxu0 %v1391_v0 }
 0x12b   : > { %2144 = vmatprep.subr.mxu1 %v1390_v6  ;;  %2163 = vmatprep.subr.mxu0 %v1390_v6 }
 0x12c   : > { %2145 = vmatpush3.msra.mxu1 %v1390_v6  ;;  %2164 = vmatpush3.msra.mxu0 %v1390_v6 }
 0x12d   : > { %2146 = vmatprep.subr.mxu1 %v1389_v60  ;;  %2165 = vmatprep.subr.mxu0 %v1389_v60 }
 0x12e   : > { %2147 = vmatpush3.msra.mxu1 %v1389_v60  ;;  %2166 = vmatpush3.msra.mxu0 %v1389_v60 }
 0x12f   : > { %2148 = vmatprep.subr.mxu1 %v1388_v29  ;;  %2167 = vmatprep.subr.mxu0 %v1388_v29 }
 0x130   : > { %2149 = vmatpush3.msra.mxu1 %v1388_v29  ;;  %2168 = vmatpush3.msra.mxu0 %v1388_v29 }
 0x131   : > { %2150 = vmatprep.subr.mxu1 %v1387_v38  ;;  %2169 = vmatprep.subr.mxu0 %v1387_v38 }
 0x132   : > { %2151 = vmatpush3.msra.mxu1 %v1387_v38  ;;  %2170 = vmatpush3.msra.mxu0 %v1387_v38 }
 0x133   : > { %2152 = vmatprep.subr.mxu1 %v1386_v48  ;;  %2171 = vmatprep.subr.mxu0 %v1386_v48 }
 0x134   : > { %2153 = vmatpush3.msra.mxu1 %v1386_v48  ;;  %2172 = vmatpush3.msra.mxu0 %v1386_v48 }
 0x135   : > { %2155 = vmatmul.mubr.msk.f32.vlgmr.msra.gmra.mxu1 %vm1396_vm3, %v1395_v41  ;;  %2174 = vmatmul.mubr.msk.f32.vlgmr.msra.gmra.mxu0 %vm1396_vm3, %v1877_v56 }
 0x136   : > { %2176 = vmatprep.subr.mxu1 %v1393_v43  ;;  %2195 = vmatprep.subr.mxu0 %v1393_v43 }
 0x137   : > { %2177 = vmatpush3.msra.mxu1 %v1393_v43  ;;  %2196 = vmatpush3.msra.mxu0 %v1393_v43 }
 0x138   : > { %2178 = vmatprep.subr.mxu1 %v1392_v39  ;;  %2197 = vmatprep.subr.mxu0 %v1392_v39 }
 0x139   : > { %2179 = vmatpush3.msra.mxu1 %v1392_v39  ;;  %2198 = vmatpush3.msra.mxu0 %v1392_v39 }
 0x13a   : > { %2180 = vmatprep.subr.mxu1 %v1391_v0  ;;  %2199 = vmatprep.subr.mxu0 %v1391_v0 }
 0x13b   : > { %2181 = vmatpush3.msra.mxu1 %v1391_v0  ;;  %2200 = vmatpush3.msra.mxu0 %v1391_v0 }
 0x13c   : > { %2182 = vmatprep.subr.mxu1 %v1390_v6  ;;  %2201 = vmatprep.subr.mxu0 %v1390_v6 }
 0x13d   : > { %2183 = vmatpush3.msra.mxu1 %v1390_v6  ;;  %2202 = vmatpush3.msra.mxu0 %v1390_v6 }
 0x13e   : > { %2184 = vmatprep.subr.mxu1 %v1389_v60  ;;  %2203 = vmatprep.subr.mxu0 %v1389_v60 }
 0x13f   : > { %2185 = vmatpush3.msra.mxu1 %v1389_v60  ;;  %2204 = vmatpush3.msra.mxu0 %v1389_v60 }
 0x140   : > { %2186 = vmatprep.subr.mxu1 %v1388_v29  ;;  %2205 = vmatprep.subr.mxu0 %v1388_v29 }
 0x141   : > { %2187 = vmatpush3.msra.mxu1 %v1388_v29  ;;  %2206 = vmatpush3.msra.mxu0 %v1388_v29 }
 0x142   : > { %2188 = vmatprep.subr.mxu1 %v1387_v38  ;;  %2207 = vmatprep.subr.mxu0 %v1387_v38 }
 0x143   : > { %2189 = vmatpush3.msra.mxu1 %v1387_v38  ;;  %2208 = vmatpush3.msra.mxu0 %v1387_v38 }
 0x144   : > { %2190 = vmatprep.subr.mxu1 %v1386_v48  ;;  %2209 = vmatprep.subr.mxu0 %v1386_v48 }
 0x145   : > { %2191 = vmatpush3.msra.mxu1 %v1386_v48  ;;  %2192 = vmatprep.mubr.msk.f32.mxu1 %vm1396_vm3, %v1880_v59 }
 0x146   : > { %2210 = vmatpush3.msra.mxu0 %v1386_v48  ;;  %2211 = vmatprep.mubr.msk.f32.mxu0 %vm1396_vm3, %v1884_v2 }
 0x147   : > { %2193 = vmatmul.mubr.msk.f32.vlgmr.msra.gmra.mxu1 %vm1396_vm3, %v1881_v35  ;;  %2212 = vmatmul.mubr.msk.f32.vlgmr.msra.gmra.mxu0 %vm1396_vm3, %v1885_v58 }
 0x1f5   : > { %v2156_v61 = vpop.f32.mrf.mxu1  ;;  %v2175_v63 = vpop.f32.mrf.mxu0 }
 0x1f6   : > { %v1563_v37 = vmax.f32 %v2156_v61, %v2175_v63 }
 0x1f7   : > { %v1469_v3 = vpop.f32.mrf.mxu1  ;;  %v1553_v7 = vpop.f32.mrf.mxu0 }
 0x1f8   : > { %v1562_v16 = vmax.f32 %v1469_v3, %v1553_v7 }
 0x207   : > { %v2194_v15 = vpop.f32.mrf.mxu1  ;;  %v2213_v52 = vpop.f32.mrf.mxu0 }
 0x208   : > { %v1649_v18 = vmax.f32 %v1563_v37, %v2194_v15 }
 0x209   : > { %v1639_v55 = vpop.f32.mrf.mxu1  ;;  %v1725_v19 = vpop.f32.mrf.mxu0 }
 0x20a   : > { %v1735_v1 = vmax.f32 %v1649_v18, %v2213_v52  ;;  %v1648_v17 = vmax.f32 %v1562_v16, %v1639_v55 }
 0x20c   : > { %1737 = vst.msk [vmem:[%s197_s10 + $0x8] sm:$0xff] %vm268_vm1, %v1735_v1  ;;  %v1734_v54 = vmax.f32 %v1648_v17, %v1725_v19 }
 0x20e   : > { %1736 = vst.msk [vmem:[%s197_s10] sm:$0xff] %vm268_vm1, %v1734_v54 }
 0x20f PF: > { %s14_s15 = sadd.s32 1, %s2231_s15  }
 0x210   : > { %p11_p4 = scmp.ge.s32.totalorder %s14_s15, 4  }
 0x212   :  { %13 = sbr.rel (!%p11_p4) target bundleno = 1 (0x1), region = 69 }

// kernel: custom_cnn_forward.3
= control target key start
LH: loop header
LB: loop body
LE: loop exit
PB: predicated region body
PF: predicated region fallthrough
CT: control target
= control target key end

     0   :  { %s5003_s15 = smov 0   ;;  %s7163_s0 = inlined_call_operand.vmem [shape: f32[2,18,18,4], index: 0, kind: input, shape index: {}]   ;;  %s7164_s1 = inlined_call_operand.vmem [shape: f32[36,8], index: 1, kind: input, shape index: {}]   ;;  %s7165_s2 = inlined_call_operand.vmem [shape: f32[1,8], index: 2, kind: input, shape index: {}]   ;;  %s7166_s3 = inlined_call_operand.vmem [shape: f32[4,64,256], index: 3, kind: input, shape index: {}]   ;;  %s7167_s4 = inlined_call_operand.vmem [shape: f32[2,64,8], index: 4, kind: output, shape index: {}]  }
   0x1 LB: > { %s3633_s16 = sadd.s32 4294967295, %s4976_s15   ;;  %p3637_p0 = scmp.ge.s32.totalorder %s4976_s15, 1  ;;  %s4976_s15 = sphi %s5003_s15, %s14_s15  }
   0x2   : > { %p162_p1 = scmp.lt.s32.totalorder %s4976_s15, 3 }
   0x4   : > { %p163_p2 = pnand %p3637_p0, %p162_p1 }
   0x6   : > { %166 = sbr.rel (%p163_p2) target bundleno = 861 (0x35d), region = 36 }
   0xb   : > { %v252_v0 = vld [vmem:[%s7164_s1] sm:$0xff]  ;;  %vm453_vm0 = vcmask 1043456   ;;  %p188_p3 = scmp.lt.s32.totalorder %s3633_s16, 1  ;;  %v253_v1 = vld [vmem:[%s7164_s1 + $0x8] sm:$0xff]  ;;  %v5028_v4 = vld [vmem:[%s7164_s1 + $0x10] sm:$0xff]  ;;  %vm388_vm1 = vcmask 31744  }
   0xc   : > { %v387_v2 = vrot.slane %v252_v0, 4  ;;  %4561 = vmatprep.subr.msk.mxu1 %vm453_vm0, %v252_v0  ;;  %v1377_v3 = vrot.slane %v253_v1, 4  ;;  %vm305_vm2 = vcmask 1046528   ;;  %v7168_v8 = vrot.slane %v5028_v4, 4 }
   0xd   : > { %s7448_s16 = smov (!%p188_p3, %s3633_s16), 1  ;;  %4562 = vmatpush3.msk.msra.mxu1 %vm453_vm0, %v252_v0  ;;  %vm972_vm3 = vcmask 1045504   ;;  %vm3569_vm4 = vcmask 64512  }
   0xe   : > { %4511 = vmatprep.subr.msk.mxu0 %vm453_vm0, %v387_v2  ;;  %4661 = vmatprep.subr.msk.mxu1 %vm453_vm0, %v1377_v3  ;;  %s4961_s21 = smul.u32 432, %s7448_s16  ;;  %s3989_s17 = sshll.u32 %s7448_s16, 6 }
   0xf   : > { %4512 = vmatpush3.msk.msra.mxu0 %vm453_vm0, %v387_v2  ;;  %s7129_s20 = scalar_lea.vmem %s7167_s4, %s3989_s17 }
  0x10   : > { %4611 = vmatprep.subr.msk.mxu0 %vm453_vm0, %v253_v1  ;;  %s5034_s26 = scalar_lea.vmem %s7163_s0, %s4961_s21 }
  0x11   : > { %v5037_v5 = vld [vmem:[%s5034_s26] sm:$0xff]  ;;  %v5040_v6 = vld [vmem:[%s5034_s26 + $0x8] sm:$0xff]  ;;  %v5043_v7 = vld [vmem:[%s5034_s26 + $0x10] sm:$0x3] }
  0x12   : > { %v306_v9 = vrot.slane %v5037_v5, 1  ;;  %v307_v10 = vrot.slane %v5040_v6, 1  ;;  %4563 = vmatprep.mubr.msk.f32.mxu1 %vm388_vm1, %v5037_v5  ;;  %v309_v11 = vrot.slane %v5043_v7, 1  ;;  %v5052_v12 = vld [vmem:[%s5034_s26 + $0x18] sm:$0xff]  ;;  %v5055_v13 = vld [vmem:[%s5034_s26 + $0x20] sm:$0xff]  ;;  %v5065_v17 = vld [vmem:[%s5034_s26 + $0x30] sm:$0xff] }
  0x13   : > { %4564 = vmatmul.mubr.msk.f32.vlgmr.msra.gmra.mxu1 %vm388_vm1, %v5040_v6  ;;  %v311_v14 = vrot.slane %v5052_v12, 1  ;;  %v312_v15 = vrot.slane %v5055_v13, 1  ;;  %v5062_v16 = vld [vmem:[%s5034_s26 + $0x28] sm:$0x3]  ;;  %v5068_v18 = vld [vmem:[%s5034_s26 + $0x38] sm:$0xff]  ;;  %v316_v22 = vrot.slane %v5065_v17, 1 }
  0x14   : > { %v308_v19 = vsel %vm305_vm2, %v306_v9, %v307_v10  ;;  %v310_v20 = vsel %vm305_vm2, %v307_v10, %v309_v11  ;;  %4566 = vmatprep.mubr.msk.f32.mxu1 %vm388_vm1, %v5052_v12  ;;  %v314_v21 = vrot.slane %v5062_v16, 1  ;;  %v5077_v23 = vld [vmem:[%s5034_s26 + $0x40] sm:$0x3]  ;;  %4662 = vmatpush3.msk.msra.mxu1 %vm453_vm0, %v1377_v3  ;;  %v317_v25 = vrot.slane %v5068_v18, 1  ;;  %v5086_v26 = vld [vmem:[%s5034_s26 + $0x48] sm:$0xff]  ;;  %v5089_v27 = vld [vmem:[%s5034_s26 + $0x50] sm:$0xff] }
  0x15   : > { %4513 = vmatprep.mubr.msk.f32.mxu0 %vm388_vm1, %v308_v19  ;;  %v5082_v24 = vsel %vm305_vm2, %v311_v14, %v312_v15  ;;  %4761 = vmatprep.subr.msk.mxu1 %vm453_vm0, %v7168_v8  ;;  %v319_v29 = vrot.slane %v5077_v23, 1  ;;  %v321_v31 = vrot.slane %v5086_v26, 1  ;;  %v322_v32 = vrot.slane %v5089_v27, 1  ;;  %v5111_v33 = vld [vmem:[%s5034_s26 + $0x58] sm:$0x3]  ;;  %v5115_v34 = vld [vmem:[%s5034_s26 + $0x60] sm:$0xff] }
  0x16   : > { %4514 = vmatmul.mubr.msk.f32.vlgmr.msra.gmra.mxu0 %vm388_vm1, %v310_v20  ;;  %v5098_v28 = vsel %vm305_vm2, %v312_v15, %v314_v21  ;;  %v5104_v30 = vsel %vm305_vm2, %v316_v22, %v317_v25  ;;  %v5118_v35 = vld [vmem:[%s5034_s26 + $0x68] sm:$0xff]  ;;  %v324_v37 = vrot.slane %v5111_v33, 1  ;;  %v326_v39 = vrot.slane %v5115_v34, 1  ;;  %v5140_v41 = vld [vmem:[%s5034_s26 + $0x70] sm:$0x3]  ;;  %v5143_v42 = vld [vmem:[%s5034_s26 + $0x78] sm:$0xff] }
  0x17   : > { %4516 = vmatprep.mubr.msk.f32.mxu0 %vm388_vm1, %v5082_v24  ;;  %4567 = vmatmul.mubr.msk.f32.gmra.mxu1 %vm388_vm1, %v5055_v13  ;;  %v5127_v36 = vsel %vm305_vm2, %v317_v25, %v319_v29  ;;  %v5133_v38 = vsel %vm305_vm2, %v321_v31, %v322_v32  ;;  %v327_v40 = vrot.slane %v5118_v35, 1  ;;  %v5146_v43 = vld [vmem:[%s5034_s26 + $0x80] sm:$0xff]  ;;  %v329_v45 = vrot.slane %v5140_v41, 1  ;;  %v5166_v49 = vld [vmem:[%s5034_s26 + $0x88] sm:$0x3]  ;;  %v5169_v50 = vld [vmem:[%s5034_s26 + $0x90] sm:$0xff] }
  0x18   : > { %4569 = vmatprep.mubr.msk.f32.mxu1 %vm388_vm1, %v5065_v17  ;;  %4612 = vmatpush3.msk.msra.mxu0 %vm453_vm0, %v253_v1  ;;  %7247 = vst [vmem:[#allocation2_spill] sm:$0xff] %v5133_v38  ;;  %v5153_v44 = vsel %vm305_vm2, %v322_v32, %v324_v37  ;;  %v331_v47 = vrot.slane %v5143_v42, 1  ;;  %v332_v48 = vrot.slane %v5146_v43, 1  ;;  %7250 = vst [vmem:[#allocation5_spill] sm:$0xff] %v5169_v50  ;;  %v5172_v51 = vld [vmem:[%s5034_s26 + $0x98] sm:$0xff]  ;;  %v334_v53 = vrot.slane %v5166_v49, 1 }
  0x19   : > { %4711 = vmatprep.subr.msk.mxu0 %vm453_vm0, %v5028_v4  ;;  %7248 = vst [vmem:[#allocation3_spill] sm:$0xff] %v5153_v44  ;;  %v5159_v46 = vsel %vm305_vm2, %v326_v39, %v327_v40  ;;  %v5179_v52 = vsel %vm305_vm2, %v327_v40, %v329_v45  ;;  %v336_v55 = vrot.slane %v5169_v50, 1  ;;  %v337_v56 = vrot.slane %v5172_v51, 1  ;;  %v5192_v57 = vld [vmem:[%s5034_s26 + $0xa0] sm:$0x3]  ;;  %v5195_v58 = vld [vmem:[%s5034_s26 + $0xa8] sm:$0xff] }
  0x1a   : > { %4517 = vmatmul.mubr.msk.f32.gmra.mxu0 %vm388_vm1, %v5098_v28  ;;  %7249 = vst [vmem:[#allocation4_spill] sm:$0xff] %v5159_v46  ;;  %7251 = vst [vmem:[#allocation6_spill] sm:$0xff] %v5179_v52  ;;  %v5185_v54 = vsel %vm305_vm2, %v331_v47, %v332_v48  ;;  %v5198_v59 = vld [vmem:[%s5034_s26 + $0xb0] sm:$0xff]  ;;  %v978_v60 = vrot.slane %v5052_v12, 2  ;;  %v5206_v61 = vsel %vm305_vm2, %v332_v48, %v334_v53  ;;  %v339_v62 = vrot.slane %v5192_v57, 1  ;;  %v5224_v10 = vld [vmem:[%s5034_s26 + $0xc0] sm:$0xff] }
  0x1b   : > { %4519 = vmatprep.mubr.msk.f32.mxu0 %vm388_vm1, %v5104_v30  ;;  %4570 = vmatmul.mubr.msk.f32.gmra.mxu1 %vm388_vm1, %v5068_v18  ;;  %7252 = vst [vmem:[#allocation7_spill] sm:$0xff] %v5185_v54  ;;  %7253 = vst [vmem:[#allocation8_spill] sm:$0xff] %v5195_v58  ;;  %v979_v63 = vrot.slane %v5055_v13, 2  ;;  %v981_v0 = vrot.slane %v5062_v16, 2  ;;  %v5214_v1 = vsel %vm305_vm2, %v336_v55, %v337_v56  ;;  %v341_v2 = vrot.slane %v5195_v58, 1  ;;  %v5227_v11 = vld [vmem:[%s5034_s26 + $0xc8] sm:$0xff] }
  0x1c   : > { %4572 = vmatprep.mubr.msk.f32.mxu1 %vm388_vm1, %v5086_v26  ;;  %7254 = vst [vmem:[#allocation9_spill] sm:$0xff] %v5206_v61  ;;  %7255 = vst [vmem:[#allocation10_spill] sm:$0xff] %v5214_v1  ;;  %v342_v3 = vrot.slane %v5198_v59, 1  ;;  %v5221_v9 = vld [vmem:[%s5034_s26 + $0xb8] sm:$0x3]  ;;  %v5240_v16 = vsel %vm305_vm2, %v337_v56, %v339_v62  ;;  %v346_v21 = vrot.slane %v5224_v10, 1 }
  0x1d   : > { %7256 = vst [vmem:[#allocation11_spill] sm:$0xff] %v5224_v10  ;;  %v5230_v14 = vsel %vm972_vm3, %v978_v60, %v979_v63  ;;  %v5233_v15 = vsel %vm972_vm3, %v979_v63, %v981_v0  ;;  %7257 = vst [vmem:[#allocation12_spill] sm:$0xff] %v5240_v16  ;;  %v344_v19 = vrot.slane %v5221_v9, 1  ;;  %v347_v22 = vrot.slane %v5227_v11, 1  ;;  %v5253_v25 = vld [vmem:[%s5034_s26 + $0xd0] sm:$0x3] }
  0x1e   : > { %4520 = vmatmul.mubr.msk.f32.gmra.mxu0 %vm388_vm1, %v5127_v36  ;;  %v5246_v20 = vsel %vm305_vm2, %v341_v2, %v342_v3  ;;  %v5256_v29 = vld [vmem:[%s5034_s26 + $0xd8] sm:$0xff]  ;;  %v5259_v31 = vld [vmem:[%s5034_s26 + $0xe0] sm:$0xff]  ;;  %v349_v37 = vrot.slane %v5253_v25, 1  ;;  %v5279_v47 = vld [vmem:[%s5034_s26 + $0xe8] sm:$0x3] }
  0x1f   : > { %4522 = vmatprep.mubr.msk.f32.mxu0 %vm388_vm1, %v5133_v38  ;;  %4573 = vmatmul.mubr.msk.f32.gmra.mxu1 %vm388_vm1, %v5089_v27  ;;  %7258 = vst [vmem:[#allocation13_spill] sm:$0xff] %v5246_v20  ;;  %7259 = vst [vmem:[#allocation14_spill] sm:$0xff] %v5256_v29  ;;  %v5266_v32 = vsel %vm305_vm2, %v342_v3, %v344_v19  ;;  %v5272_v39 = vsel %vm305_vm2, %v346_v21, %v347_v22  ;;  %v351_v40 = vrot.slane %v5256_v29, 1  ;;  %v5282_v48 = vld [vmem:[%s5034_s26 + $0xf0] sm:$0xff]  ;;  %v5285_v53 = vld [vmem:[%s5034_s26 + $0xf8] sm:$0xff] }
  0x20   : > { %4575 = vmatprep.mubr.msk.f32.mxu1 %vm388_vm1, %v5115_v34  ;;  %7260 = vst [vmem:[#allocation15_spill] sm:$0xff] %v5266_v32  ;;  %7261 = vst [vmem:[#allocation16_spill] sm:$0xff] %v5272_v39  ;;  %v352_v45 = vrot.slane %v5259_v31, 1  ;;  %v5292_v55 = vsel %vm305_vm2, %v347_v22, %v349_v37  ;;  %v354_v56 = vrot.slane %v5279_v47, 1  ;;  %v356_v62 = vrot.slane %v5282_v48, 1  ;;  %v5308_v2 = vld [vmem:[%s5034_s26 + $0x108] sm:$0xff] }
  0x21   : > { %7262 = vst [vmem:[#allocation17_spill] sm:$0xff] %v5282_v48  ;;  %7263 = vst [vmem:[#allocation18_spill] sm:$0xff] %v5292_v55  ;;  %v357_v63 = vrot.slane %v5285_v53, 1  ;;  %v5305_v0 = vld [vmem:[%s5034_s26 + $0x100] sm:$0x3]  ;;  %v5311_v3 = vld [vmem:[%s5034_s26 + $0x110] sm:$0xff] }
  0x22   : > { %4523 = vmatmul.mubr.msk.f32.gmra.mxu0 %vm388_vm1, %v5153_v44  ;;  %v5298_v60 = vsel %vm305_vm2, %v351_v40, %v352_v45  ;;  %7265 = vst [vmem:[#allocation20_spill] sm:$0xff] %v5308_v2  ;;  %v5318_v19 = vsel %vm305_vm2, %v352_v45, %v354_v56  ;;  %v359_v21 = vrot.slane %v5305_v0, 1  ;;  %v361_v37 = vrot.slane %v5308_v2, 1  ;;  %v5331_v45 = vld [vmem:[%s5034_s26 + $0x118] sm:$0x3]  ;;  %v5334_v56 = vld [vmem:[%s5034_s26 + $0x120] sm:$0xff] }
  0x23   : > { %4525 = vmatprep.mubr.msk.f32.mxu0 %vm388_vm1, %v5159_v46  ;;  %4576 = vmatmul.mubr.msk.f32.gmra.mxu1 %vm388_vm1, %v5118_v35  ;;  %7264 = vst [vmem:[#allocation19_spill] sm:$0xff] %v5298_v60  ;;  %7266 = vst [vmem:[#allocation21_spill] sm:$0xff] %v5318_v19  ;;  %v5324_v22 = vsel %vm305_vm2, %v356_v62, %v357_v63  ;;  %v362_v40 = vrot.slane %v5311_v3, 1  ;;  %v5337_v8 = vld [vmem:[%s5034_s26 + $0x128] sm:$0xff]  ;;  %v5435_v38 = vld [vmem:[%s5034_s26 + $0x178] sm:$0x3] }
  0x24   : > { %4578 = vmatprep.mubr.msk.f32.mxu1 %vm388_vm1, %v5143_v42  ;;  %7267 = vst [vmem:[#allocation22_spill] sm:$0xff] %v5324_v22  ;;  %7268 = vst [vmem:[#allocation23_spill] sm:$0xff] %v5334_v56  ;;  %v5344_v62 = vsel %vm305_vm2, %v357_v63, %v359_v21  ;;  %v5357_v63 = vld [vmem:[%s5034_s26 + $0x130] sm:$0x3]  ;;  %v5360_v21 = vld [vmem:[%s5034_s26 + $0x138] sm:$0xff] }
  0x25   : > { %7269 = vst [vmem:[#allocation24_spill] sm:$0xff] %v5344_v62  ;;  %7271 = vst [vmem:[#allocation26_spill] sm:$0xff] %v5360_v21 }
  0x26   : > { %4526 = vmatmul.mubr.msk.f32.gmra.mxu0 %vm388_vm1, %v5179_v52 }
  0x27   : > { %4528 = vmatprep.mubr.msk.f32.mxu0 %vm388_vm1, %v5185_v54  ;;  %4579 = vmatmul.mubr.msk.f32.gmra.mxu1 %vm388_vm1, %v5146_v43 }
  0x28   : > { %4581 = vmatprep.mubr.msk.f32.mxu1 %vm388_vm1, %v5169_v50 }
  0x2a   : > { %4529 = vmatmul.mubr.msk.f32.gmra.mxu0 %vm388_vm1, %v5206_v61 }
  0x2b   : > { %4531 = vmatprep.mubr.msk.f32.mxu0 %vm388_vm1, %v5214_v1  ;;  %4582 = vmatmul.mubr.msk.f32.gmra.mxu1 %vm388_vm1, %v5172_v51 }
  0x2c   : > { %4584 = vmatprep.mubr.msk.f32.mxu1 %vm388_vm1, %v5195_v58 }
  0x2e   : > { %4532 = vmatmul.mubr.msk.f32.gmra.mxu0 %vm388_vm1, %v5240_v16  ;;  %v5389_v16 = vld [vmem:[%s5034_s26 + $0x158] sm:$0xff] }
  0x2f   : > { %4534 = vmatprep.mubr.msk.f32.mxu0 %vm388_vm1, %v5246_v20  ;;  %4585 = vmatmul.mubr.msk.f32.gmra.mxu1 %vm388_vm1, %v5198_v59  ;;  %v377_v54 = vrot.slane %v5389_v16, 1 }
  0x30   : > { %4587 = vmatprep.mubr.msk.f32.mxu1 %vm388_vm1, %v5224_v10 }
  0x32   : > { %4535 = vmatmul.mubr.msk.f32.gmra.mxu0 %vm388_vm1, %v5266_v32  ;;  %v369_v32 = vrot.slane %v5357_v63, 1 }
  0x33   : > { %4537 = vmatprep.mubr.msk.f32.mxu0 %vm388_vm1, %v5272_v39  ;;  %4588 = vmatmul.mubr.msk.f32.gmra.mxu1 %vm388_vm1, %v5227_v11  ;;  %v5363_v39 = vld [vmem:[%s5034_s26 + $0x140] sm:$0xff] }
  0x34   : > { %4590 = vmatprep.mubr.msk.f32.mxu1 %vm388_vm1, %v5256_v29  ;;  %7272 = vst [vmem:[#allocation27_spill] sm:$0xff] %v5363_v39 }
  0x36   : > { %4538 = vmatmul.mubr.msk.f32.gmra.mxu0 %vm388_vm1, %v5292_v55  ;;  %v5350_v55 = vsel %vm305_vm2, %v361_v37, %v362_v40 }
  0x37   : > { %4540 = vmatprep.mubr.msk.f32.mxu0 %vm388_vm1, %v5298_v60  ;;  %4591 = vmatmul.mubr.msk.f32.gmra.mxu1 %vm388_vm1, %v5259_v31  ;;  %v364_v60 = vrot.slane %v5331_v45, 1  ;;  %7270 = vst [vmem:[#allocation25_spill] sm:$0xff] %v5350_v55 }
  0x38   : > { %4593 = vmatprep.mubr.msk.f32.mxu1 %vm388_vm1, %v5282_v48 }
  0x39   : > { %v5370_v37 = vsel %vm305_vm2, %v362_v40, %v364_v60  ;;  %v5383_v60 = vld [vmem:[%s5034_s26 + $0x148] sm:$0x3]  ;;  %v5386_v40 = vld [vmem:[%s5034_s26 + $0x150] sm:$0xff] }
  0x3a   : > { %4541 = vmatmul.mubr.msk.f32.gmra.mxu0 %vm388_vm1, %v5318_v19  ;;  %v366_v19 = vrot.slane %v5334_v56, 1  ;;  %7273 = vst [vmem:[#allocation28_spill] sm:$0xff] %v5370_v37  ;;  %7275 = vst [vmem:[#allocation30_spill] sm:$0xff] %v5386_v40  ;;  %v374_v1 = vrot.slane %v5383_v60, 1 }
  0x3b   : > { %4543 = vmatprep.mubr.msk.f32.mxu0 %vm388_vm1, %v5324_v22  ;;  %4594 = vmatmul.mubr.msk.f32.gmra.mxu1 %vm388_vm1, %v5285_v53  ;;  %v367_v22 = vrot.slane %v5337_v8, 1 }
  0x3c   : > { %4596 = vmatprep.mubr.msk.f32.mxu1 %vm388_vm1, %v5308_v2 }
  0x3d   : > { %v5376_v20 = vsel %vm305_vm2, %v366_v19, %v367_v22  ;;  %v5396_v19 = vsel %vm305_vm2, %v367_v22, %v369_v32  ;;  %v5412_v32 = vld [vmem:[%s5034_s26 + $0x168] sm:$0xff]  ;;  %v5415_v22 = vld [vmem:[%s5034_s26 + $0x170] sm:$0xff] }
  0x3e   : > { %4544 = vmatmul.mubr.msk.f32.gmra.mxu0 %vm388_vm1, %v5344_v62  ;;  %7274 = vst [vmem:[#allocation29_spill] sm:$0xff] %v5376_v20  ;;  %v371_v62 = vrot.slane %v5360_v21, 1  ;;  %7276 = vst [vmem:[#allocation31_spill] sm:$0xff] %v5396_v19  ;;  %v381_v44 = vrot.slane %v5412_v32, 1 }
  0x3f   : > { %4546 = vmatprep.mubr.msk.f32.mxu0 %vm388_vm1, %v5350_v55  ;;  %4597 = vmatmul.mubr.msk.f32.gmra.mxu1 %vm388_vm1, %v5311_v3  ;;  %v372_v55 = vrot.slane %v5363_v39, 1 }
  0x40   : > { %4599 = vmatprep.mubr.msk.f32.mxu1 %vm388_vm1, %v5334_v56 }
  0x41   : > { %v5402_v61 = vsel %vm305_vm2, %v371_v62, %v372_v55  ;;  %v5422_v62 = vsel %vm305_vm2, %v372_v55, %v374_v1  ;;  %v384_v55 = vrot.slane %v5435_v38, 1 }
  0x42   : > { %4547 = vmatmul.mubr.msk.f32.gmra.mxu0 %vm388_vm1, %v5370_v37  ;;  %7277 = vst [vmem:[#allocation32_spill] sm:$0xff] %v5402_v61  ;;  %v376_v37 = vrot.slane %v5386_v40, 1  ;;  %7278 = vst [vmem:[#allocation33_spill] sm:$0xff] %v5422_v62 }
  0x43   : > { %4549 = vmatprep.mubr.msk.f32.mxu0 %vm388_vm1, %v5376_v20  ;;  %4600 = vmatmul.mubr.msk.f32.gmra.mxu1 %vm388_vm1, %v5337_v8  ;;  %v5409_v20 = vld [vmem:[%s5034_s26 + $0x160] sm:$0x3] }
  0x44   : > { %4602 = vmatprep.mubr.msk.f32.mxu1 %vm388_vm1, %v5360_v21  ;;  %v379_v52 = vrot.slane %v5409_v20, 1  ;;  %v5428_v46 = vsel %vm305_vm2, %v376_v37, %v377_v54 }
  0x46   : > { %4550 = vmatmul.mubr.msk.f32.gmra.mxu0 %vm388_vm1, %v5396_v19  ;;  %v382_v19 = vrot.slane %v5415_v22, 1  ;;  %v5442_v1 = vsel %vm305_vm2, %v377_v54, %v379_v52  ;;  %v5459_v52 = vld [vmem:[%s7164_s1 + $0x18] sm:$0xff]  ;;  %v976_v54 = vrot.slane %v5043_v7, 2 }
  0x47   : > { %4552 = vmatprep.mubr.msk.f32.mxu0 %vm388_vm1, %v5402_v61  ;;  %4603 = vmatmul.mubr.msk.f32.gmra.mxu1 %vm388_vm1, %v5363_v39  ;;  %v973_v61 = vrot.slane %v5037_v5, 2 }
  0x48   : > { %4605 = vmatprep.mubr.msk.f32.mxu1 %vm388_vm1, %v5386_v40  ;;  %v5448_v37 = vsel %vm305_vm2, %v381_v44, %v382_v19  ;;  %v5465_v44 = vsel %vm305_vm2, %v382_v19, %v384_v55  ;;  %v984_v19 = vrot.slane %v5068_v18, 2  ;;  %v988_v55 = vrot.slane %v5086_v26, 2 }
  0x4a   : > { %4553 = vmatmul.mubr.msk.f32.gmra.mxu0 %vm388_vm1, %v5422_v62  ;;  %v974_v62 = vrot.slane %v5040_v6, 2  ;;  %v7213_v6 = vrot.slane %v5459_v52, 4 }
  0x4b   : > { %4555 = vmatprep.mubr.msk.f32.mxu0 %vm388_vm1, %v5428_v46  ;;  %4606 = vmatmul.mubr.msk.f32.gmra.mxu1 %vm388_vm1, %v5389_v16 }
  0x4c   : > { %4608 = vmatprep.mubr.msk.f32.mxu1 %vm388_vm1, %v5412_v32  ;;  %v975_v5 = vsel %vm972_vm3, %v973_v61, %v974_v62  ;;  %v977_v7 = vsel %vm972_vm3, %v974_v62, %v976_v54  ;;  %v983_v61 = vrot.slane %v5065_v17, 2  ;;  %v989_v54 = vrot.slane %v5089_v27, 2 }
  0x4e   : > { %4556 = vmatmul.mubr.msk.f32.gmra.mxu0 %vm388_vm1, %v5442_v1  ;;  %v5496_v62 = vsel %vm972_vm3, %v983_v61, %v984_v19  ;;  %v994_v61 = vrot.slane %v5118_v35, 2 }
  0x4f   : > { %4558 = vmatprep.mubr.msk.f32.mxu0 %vm388_vm1, %v5448_v37  ;;  %4609 = vmatmul.mubr.msk.f32.gmra.mxu1 %vm388_vm1, %v5415_v22 }
  0x50   : > { %4663 = vmatprep.mubr.msk.f32.mxu1 %vm388_vm1, %v5052_v12  ;;  %v7279_v12 = vrot.slane %v5028_v4, 4 }
  0x52   : > { %4559 = vmatmul.mubr.msk.f32.gmra.mxu0 %vm388_vm1, %v5465_v44 }
  0x53   : > { %4613 = vmatprep.mubr.msk.f32.mxu0 %vm388_vm1, %v975_v5  ;;  %4664 = vmatmul.mubr.msk.f32.vlgmr.msra.gmra.mxu1 %vm388_vm1, %v5055_v13  ;;  %v986_v13 = vrot.slane %v5077_v23, 2  ;;  %v991_v5 = vrot.slane %v5111_v33, 2  ;;  %v996_v33 = vrot.slane %v5140_v41, 2  ;;  %v1001_v41 = vrot.slane %v5166_v49, 2 }
  0x54   : > { %4666 = vmatprep.mubr.msk.f32.mxu1 %vm388_vm1, %v5065_v17  ;;  %4762 = vmatpush3.msk.msra.mxu1 %vm453_vm0, %v7279_v12  ;;  %v1006_v49 = vrot.slane %v5192_v57, 2  ;;  %v1011_v57 = vrot.slane %v5221_v9, 2  ;;  %v1016_v9 = vrot.slane %v5253_v25, 2  ;;  %v1021_v25 = vrot.slane %v5279_v47, 2 }
  0x55   : > { %4861 = vmatprep.subr.msk.mxu1 %vm453_vm0, %v7213_v6  ;;  %v5511_v23 = vsel %vm972_vm3, %v984_v19, %v986_v13  ;;  %v5528_v19 = vsel %vm972_vm3, %v989_v54, %v991_v5  ;;  %v998_v13 = vrot.slane %v5143_v42, 2  ;;  %v1004_v6 = vrot.slane %v5172_v51, 2 }
  0x56   : > { %4614 = vmatmul.mubr.msk.f32.vlgmr.msra.gmra.mxu0 %vm388_vm1, %v977_v7  ;;  %v5517_v7 = vsel %vm972_vm3, %v988_v55, %v989_v54  ;;  %v999_v55 = vrot.slane %v5146_v43, 2  ;;  %v5545_v54 = vsel %vm972_vm3, %v994_v61, %v996_v33  ;;  %v1026_v47 = vrot.slane %v5305_v0, 2 }
  0x57   : > { %4616 = vmatprep.mubr.msk.f32.mxu0 %vm388_vm1, %v5230_v14  ;;  %4667 = vmatmul.mubr.msk.f32.gmra.mxu1 %vm388_vm1, %v5068_v18  ;;  %7281 = vst [vmem:[#allocation35_spill] sm:$0xff] %v5545_v54  ;;  %v1031_v0 = vrot.slane %v5331_v45, 2  ;;  %v1036_v45 = vrot.slane %v5357_v63, 2  ;;  %v1041_v63 = vrot.slane %v5383_v60, 2  ;;  %v1046_v60 = vrot.slane %v5409_v20, 2 }
  0x58   : > { %4669 = vmatprep.mubr.msk.f32.mxu1 %vm388_vm1, %v5086_v26  ;;  %4712 = vmatpush3.msk.msra.mxu0 %vm453_vm0, %v5028_v4  ;;  %v993_v4 = vrot.slane %v5115_v34, 2  ;;  %v5551_v5 = vsel %vm972_vm3, %v998_v13, %v999_v55  ;;  %v1008_v13 = vrot.slane %v5195_v58, 2 }
  0x59   : > { %4811 = vmatprep.subr.msk.mxu0 %vm453_vm0, %v5459_v52  ;;  %7282 = vst [vmem:[#allocation36_spill] sm:$0xff] %v5551_v5 }
  0x5a   : > { %4617 = vmatmul.mubr.msk.f32.gmra.mxu0 %vm388_vm1, %v5233_v15  ;;  %v5534_v12 = vsel %vm972_vm3, %v993_v4, %v994_v61  ;;  %v1003_v4 = vrot.slane %v5169_v50, 2  ;;  %v5562_v61 = vsel %vm972_vm3, %v999_v55, %v1001_v41  ;;  %v5579_v55 = vsel %vm972_vm3, %v1004_v6, %v1006_v49 }
  0x5b   : > { %4619 = vmatprep.mubr.msk.f32.mxu0 %vm388_vm1, %v5496_v62  ;;  %4670 = vmatmul.mubr.msk.f32.gmra.mxu1 %vm388_vm1, %v5089_v27  ;;  %7280 = vst [vmem:[#allocation34_spill] sm:$0xff] %v5534_v12  ;;  %7283 = vst [vmem:[#allocation37_spill] sm:$0xff] %v5562_v61 }
  0x5c   : > { %4672 = vmatprep.mubr.msk.f32.mxu1 %vm388_vm1, %v5115_v34  ;;  %v5568_v33 = vsel %vm972_vm3, %v1003_v4, %v1004_v6  ;;  %7285 = vst [vmem:[#allocation39_spill] sm:$0xff] %v5579_v55  ;;  %v1013_v4 = vrot.slane %v5224_v10, 2 }
  0x5d   : > { %7284 = vst [vmem:[#allocation38_spill] sm:$0xff] %v5568_v33 }
  0x5e   : > { %4620 = vmatmul.mubr.msk.f32.gmra.mxu0 %vm388_vm1, %v5511_v23 }
  0x5f   : > { %4622 = vmatprep.mubr.msk.f32.mxu0 %vm388_vm1, %v5517_v7  ;;  %4673 = vmatmul.mubr.msk.f32.gmra.mxu1 %vm388_vm1, %v5118_v35 }
  0x60   : > { %4675 = vmatprep.mubr.msk.f32.mxu1 %vm388_vm1, %v5143_v42 }
  0x62   : > { %4623 = vmatmul.mubr.msk.f32.gmra.mxu0 %vm388_vm1, %v5528_v19 }
  0x63   : > { %4625 = vmatprep.mubr.msk.f32.mxu0 %vm388_vm1, %v5534_v12  ;;  %4676 = vmatmul.mubr.msk.f32.gmra.mxu1 %vm388_vm1, %v5146_v43 }
  0x64   : > { %4678 = vmatprep.mubr.msk.f32.mxu1 %vm388_vm1, %v5169_v50  ;;  %v1009_v50 = vrot.slane %v5198_v59, 2 }
  0x66   : > { %4626 = vmatmul.mubr.msk.f32.gmra.mxu0 %vm388_vm1, %v5545_v54  ;;  %v5585_v41 = vsel %vm972_vm3, %v1008_v13, %v1009_v50  ;;  %v5596_v6 = vsel %vm972_vm3, %v1009_v50, %v1011_v57  ;;  %v1018_v13 = vrot.slane %v5256_v29, 2 }
  0x67   : > { %4628 = vmatprep.mubr.msk.f32.mxu0 %vm388_vm1, %v5551_v5  ;;  %4679 = vmatmul.mubr.msk.f32.gmra.mxu1 %vm388_vm1, %v5172_v51  ;;  %7286 = vst [vmem:[#allocation40_spill] sm:$0xff] %v5585_v41  ;;  %7287 = vst [vmem:[#allocation41_spill] sm:$0xff] %v5596_v6 }
  0x68   : > { %4681 = vmatprep.mubr.msk.f32.mxu1 %vm388_vm1, %v5195_v58  ;;  %v1014_v58 = vrot.slane %v5227_v11, 2 }
  0x6a   : > { %4629 = vmatmul.mubr.msk.f32.gmra.mxu0 %vm388_vm1, %v5562_v61  ;;  %v5602_v49 = vsel %vm972_vm3, %v1013_v4, %v1014_v58  ;;  %v5613_v50 = vsel %vm972_vm3, %v1014_v58, %v1016_v9  ;;  %v1023_v4 = vrot.slane %v5282_v48, 2 }
  0x6b   : > { %4631 = vmatprep.mubr.msk.f32.mxu0 %vm388_vm1, %v5568_v33  ;;  %4682 = vmatmul.mubr.msk.f32.gmra.mxu1 %vm388_vm1, %v5198_v59  ;;  %7288 = vst [vmem:[#allocation42_spill] sm:$0xff] %v5602_v49  ;;  %7289 = vst [vmem:[#allocation43_spill] sm:$0xff] %v5613_v50 }
  0x6c   : > { %4684 = vmatprep.mubr.msk.f32.mxu1 %vm388_vm1, %v5224_v10  ;;  %v1019_v10 = vrot.slane %v5259_v31, 2 }
  0x6e   : > { %4632 = vmatmul.mubr.msk.f32.gmra.mxu0 %vm388_vm1, %v5579_v55  ;;  %v5619_v57 = vsel %vm972_vm3, %v1018_v13, %v1019_v10  ;;  %v5630_v58 = vsel %vm972_vm3, %v1019_v10, %v1021_v25  ;;  %v1028_v13 = vrot.slane %v5308_v2, 2 }
  0x6f   : > { %4634 = vmatprep.mubr.msk.f32.mxu0 %vm388_vm1, %v5585_v41  ;;  %4685 = vmatmul.mubr.msk.f32.gmra.mxu1 %vm388_vm1, %v5227_v11  ;;  %7290 = vst [vmem:[#allocation44_spill] sm:$0xff] %v5619_v57  ;;  %7291 = vst [vmem:[#allocation45_spill] sm:$0xff] %v5630_v58 }
  0x70   : > { %4687 = vmatprep.mubr.msk.f32.mxu1 %vm388_vm1, %v5256_v29  ;;  %v1024_v29 = vrot.slane %v5285_v53, 2 }
  0x72   : > { %4635 = vmatmul.mubr.msk.f32.gmra.mxu0 %vm388_vm1, %v5596_v6  ;;  %v5636_v9 = vsel %vm972_vm3, %v1023_v4, %v1024_v29  ;;  %v5647_v10 = vsel %vm972_vm3, %v1024_v29, %v1026_v47  ;;  %v1033_v4 = vrot.slane %v5334_v56, 2 }
  0x73   : > { %4637 = vmatprep.mubr.msk.f32.mxu0 %vm388_vm1, %v5602_v49  ;;  %4688 = vmatmul.mubr.msk.f32.gmra.mxu1 %vm388_vm1, %v5259_v31  ;;  %7292 = vst [vmem:[#allocation46_spill] sm:$0xff] %v5636_v9  ;;  %7293 = vst [vmem:[#allocation47_spill] sm:$0xff] %v5647_v10 }
  0x74   : > { %4690 = vmatprep.mubr.msk.f32.mxu1 %vm388_vm1, %v5282_v48  ;;  %v1029_v48 = vrot.slane %v5311_v3, 2 }
  0x76   : > { %4638 = vmatmul.mubr.msk.f32.gmra.mxu0 %vm388_vm1, %v5613_v50  ;;  %v5653_v25 = vsel %vm972_vm3, %v1028_v13, %v1029_v48  ;;  %v5664_v29 = vsel %vm972_vm3, %v1029_v48, %v1031_v0  ;;  %v1038_v13 = vrot.slane %v5360_v21, 2 }
  0x77   : > { %4640 = vmatprep.mubr.msk.f32.mxu0 %vm388_vm1, %v5619_v57  ;;  %4691 = vmatmul.mubr.msk.f32.gmra.mxu1 %vm388_vm1, %v5285_v53  ;;  %7294 = vst [vmem:[#allocation48_spill] sm:$0xff] %v5653_v25  ;;  %7295 = vst [vmem:[#allocation49_spill] sm:$0xff] %v5664_v29 }
  0x78   : > { %4693 = vmatprep.mubr.msk.f32.mxu1 %vm388_vm1, %v5308_v2  ;;  %v1034_v2 = vrot.slane %v5337_v8, 2 }
  0x7a   : > { %4641 = vmatmul.mubr.msk.f32.gmra.mxu0 %vm388_vm1, %v5630_v58  ;;  %v5670_v47 = vsel %vm972_vm3, %v1033_v4, %v1034_v2  ;;  %v5681_v48 = vsel %vm972_vm3, %v1034_v2, %v1036_v45  ;;  %v1043_v4 = vrot.slane %v5386_v40, 2 }
  0x7b   : > { %4643 = vmatprep.mubr.msk.f32.mxu0 %vm388_vm1, %v5636_v9  ;;  %4694 = vmatmul.mubr.msk.f32.gmra.mxu1 %vm388_vm1, %v5311_v3  ;;  %7296 = vst [vmem:[#allocation50_spill] sm:$0xff] %v5670_v47  ;;  %7297 = vst [vmem:[#allocation51_spill] sm:$0xff] %v5681_v48 }
  0x7c   : > { %4696 = vmatprep.mubr.msk.f32.mxu1 %vm388_vm1, %v5334_v56  ;;  %v1039_v56 = vrot.slane %v5363_v39, 2 }
  0x7e   : > { %4644 = vmatmul.mubr.msk.f32.gmra.mxu0 %vm388_vm1, %v5647_v10  ;;  %v5687_v0 = vsel %vm972_vm3, %v1038_v13, %v1039_v56  ;;  %v5698_v2 = vsel %vm972_vm3, %v1039_v56, %v1041_v63  ;;  %v1048_v13 = vrot.slane %v5412_v32, 2  ;;  %v1051_v56 = vrot.slane %v5435_v38, 2 }
  0x7f   : > { %4646 = vmatprep.mubr.msk.f32.mxu0 %vm388_vm1, %v5653_v25  ;;  %4697 = vmatmul.mubr.msk.f32.gmra.mxu1 %vm388_vm1, %v5337_v8  ;;  %7298 = vst [vmem:[#allocation52_spill] sm:$0xff] %v5687_v0  ;;  %7299 = vst [vmem:[#allocation53_spill] sm:$0xff] %v5698_v2  ;;  %v7303_v38 = vrot.slane %v5459_v52, 4 }
  0x80   : > { %4699 = vmatprep.mubr.msk.f32.mxu1 %vm388_vm1, %v5360_v21  ;;  %v1044_v21 = vrot.slane %v5389_v16, 2 }
  0x82   : > { %4647 = vmatmul.mubr.msk.f32.gmra.mxu0 %vm388_vm1, %v5664_v29  ;;  %v5704_v45 = vsel %vm972_vm3, %v1043_v4, %v1044_v21  ;;  %v5718_v20 = vsel %vm972_vm3, %v1044_v21, %v1046_v60  ;;  %v5729_v4 = vld [vmem:[%s5034_s26 + $0x188] sm:$0xff]  ;;  %v7309_v60 = vld [vmem:[#allocation9_spill] sm:$0xff] }
  0x83   : > { %4649 = vmatprep.mubr.msk.f32.mxu0 %vm388_vm1, %v5670_v47  ;;  %4700 = vmatmul.mubr.msk.f32.gmra.mxu1 %vm388_vm1, %v5363_v39  ;;  %7300 = vst [vmem:[#allocation54_spill] sm:$0xff] %v5704_v45  ;;  %v5711_v39 = vld [vmem:[%s5034_s26 + $0x180] sm:$0xff]  ;;  %7301 = vst [vmem:[#allocation55_spill] sm:$0xff] %v5718_v20 }
  0x84   : > { %4702 = vmatprep.mubr.msk.f32.mxu1 %vm388_vm1, %v5386_v40  ;;  %v1049_v40 = vrot.slane %v5415_v22, 2 }
  0x86   : > { %4650 = vmatmul.mubr.msk.f32.gmra.mxu0 %vm388_vm1, %v5681_v48  ;;  %v5724_v63 = vsel %vm972_vm3, %v1048_v13, %v1049_v40  ;;  %v5736_v21 = vsel %vm972_vm3, %v1049_v40, %v1051_v56  ;;  %v7307_v40 = vld [vmem:[#allocation6_spill] sm:$0xff]  ;;  %v7311_v56 = vld [vmem:[#allocation12_spill] sm:$0xff] }
  0x87   : > { %4652 = vmatprep.mubr.msk.f32.mxu0 %vm388_vm1, %v5687_v0  ;;  %4703 = vmatmul.mubr.msk.f32.gmra.mxu1 %vm388_vm1, %v5389_v16  ;;  %7302 = vst [vmem:[#allocation56_spill] sm:$0xff] %v5724_v63  ;;  %v7310_v13 = vld [vmem:[#allocation10_spill] sm:$0xff] }
  0x88   : > { %4705 = vmatprep.mubr.msk.f32.mxu1 %vm388_vm1, %v5412_v32 }
  0x8a   : > { %4653 = vmatmul.mubr.msk.f32.gmra.mxu0 %vm388_vm1, %v5698_v2 }
  0x8b   : > { %4655 = vmatprep.mubr.msk.f32.mxu0 %vm388_vm1, %v5704_v45  ;;  %4706 = vmatmul.mubr.msk.f32.gmra.mxu1 %vm388_vm1, %v5415_v22 }
  0x8c   : > { %4708 = vmatprep.mubr.msk.f32.mxu1 %vm388_vm1, %v5711_v39 }
  0x8e   : > { %4656 = vmatmul.mubr.msk.f32.gmra.mxu0 %vm388_vm1, %v5718_v20 }
  0x8f   : > { %4658 = vmatprep.mubr.msk.f32.mxu0 %vm388_vm1, %v5724_v63  ;;  %4709 = vmatmul.mubr.msk.f32.gmra.mxu1 %vm388_vm1, %v5729_v4 }
  0x90   : > { %4763 = vmatprep.mubr.msk.f32.mxu1 %vm388_vm1, %v5230_v14  ;;  %v5758_v14 = vld [vmem:[%s7164_s1 + $0x20] sm:$0xf] }
  0x92   : > { %4659 = vmatmul.mubr.msk.f32.gmra.mxu0 %vm388_vm1, %v5736_v21 }
  0x93   : > { %4713 = vmatprep.mubr.msk.f32.mxu0 %vm388_vm1, %v5082_v24  ;;  %4764 = vmatmul.mubr.msk.f32.vlgmr.msra.gmra.mxu1 %vm388_vm1, %v5233_v15  ;;  %v7304_v24 = vld [vmem:[#allocation2_spill] sm:$0xff]  ;;  %v7306_v15 = vld [vmem:[#allocation4_spill] sm:$0xff] }
  0x94   : > { %4766 = vmatprep.mubr.msk.f32.mxu1 %vm388_vm1, %v5496_v62  ;;  %4862 = vmatpush3.msk.msra.mxu1 %vm453_vm0, %v7303_v38  ;;  %v7312_v38 = vld [vmem:[#allocation13_spill] sm:$0xff] }
  0x96   : > { %4714 = vmatmul.mubr.msk.f32.vlgmr.msra.gmra.mxu0 %vm388_vm1, %v5098_v28  ;;  %v7305_v28 = vld [vmem:[#allocation3_spill] sm:$0xff] }
  0x97   : > { %4716 = vmatprep.mubr.msk.f32.mxu0 %vm388_vm1, %v5104_v30  ;;  %4767 = vmatmul.mubr.msk.f32.gmra.mxu1 %vm388_vm1, %v5511_v23 }
  0x98   : > { %4769 = vmatprep.mubr.msk.f32.mxu1 %vm388_vm1, %v5517_v7  ;;  %4812 = vmatpush3.msk.msra.mxu0 %vm453_vm0, %v5459_v52  ;;  %v7308_v52 = vld [vmem:[#allocation7_spill] sm:$0xff] }
  0x99   : > { %4911 = vmatprep.subr.msk.mxu0 %vm453_vm0, %v5758_v14 }
  0x9a   : > { %4717 = vmatmul.mubr.msk.f32.gmra.mxu0 %vm388_vm1, %v5127_v36 }
  0x9b   : > { %4719 = vmatprep.mubr.msk.f32.mxu0 %vm388_vm1, %v7304_v24  ;;  %4770 = vmatmul.mubr.msk.f32.gmra.mxu1 %vm388_vm1, %v5528_v19 }
  0x9c   : > { %4772 = vmatprep.mubr.msk.f32.mxu1 %vm388_vm1, %v5534_v12 }
  0x9e   : > { %4720 = vmatmul.mubr.msk.f32.gmra.mxu0 %vm388_vm1, %v7305_v28 }
  0x9f   : > { %4722 = vmatprep.mubr.msk.f32.mxu0 %vm388_vm1, %v7306_v15  ;;  %4773 = vmatmul.mubr.msk.f32.gmra.mxu1 %vm388_vm1, %v5545_v54 }
  0xa0   : > { %4775 = vmatprep.mubr.msk.f32.mxu1 %vm388_vm1, %v5551_v5  ;;  %v1644_v5 = vrot.slane %v5711_v39, 1 }
  0xa2   : > { %4723 = vmatmul.mubr.msk.f32.gmra.mxu0 %vm388_vm1, %v7307_v40 }
  0xa3   : > { %4725 = vmatprep.mubr.msk.f32.mxu0 %vm388_vm1, %v7308_v52  ;;  %4776 = vmatmul.mubr.msk.f32.gmra.mxu1 %vm388_vm1, %v5562_v61  ;;  %v7314_v61 = vld [vmem:[#allocation16_spill] sm:$0xff] }
  0xa4   : > { %4778 = vmatprep.mubr.msk.f32.mxu1 %vm388_vm1, %v5568_v33  ;;  %v7313_v33 = vld [vmem:[#allocation15_spill] sm:$0xff] }
  0xa6   : > { %4726 = vmatmul.mubr.msk.f32.gmra.mxu0 %vm388_vm1, %v7309_v60 }
  0xa7   : > { %4728 = vmatprep.mubr.msk.f32.mxu0 %vm388_vm1, %v7310_v13  ;;  %4779 = vmatmul.mubr.msk.f32.gmra.mxu1 %vm388_vm1, %v5579_v55  ;;  %v7316_v55 = vld [vmem:[#allocation19_spill] sm:$0xff] }
  0xa8   : > { %4781 = vmatprep.mubr.msk.f32.mxu1 %vm388_vm1, %v5585_v41  ;;  %v7315_v41 = vld [vmem:[#allocation18_spill] sm:$0xff] }
  0xaa   : > { %4729 = vmatmul.mubr.msk.f32.gmra.mxu0 %vm388_vm1, %v7311_v56 }
  0xab   : > { %4731 = vmatprep.mubr.msk.f32.mxu0 %vm388_vm1, %v7312_v38  ;;  %4782 = vmatmul.mubr.msk.f32.gmra.mxu1 %vm388_vm1, %v5596_v6  ;;  %v7318_v6 = vld [vmem:[#allocation22_spill] sm:$0xff] }
  0xac   : > { %4784 = vmatprep.mubr.msk.f32.mxu1 %vm388_vm1, %v5602_v49  ;;  %v7317_v49 = vld [vmem:[#allocation21_spill] sm:$0xff] }
  0xae   : > { %4732 = vmatmul.mubr.msk.f32.gmra.mxu0 %vm388_vm1, %v7313_v33 }
  0xaf   : > { %4734 = vmatprep.mubr.msk.f32.mxu0 %vm388_vm1, %v7314_v61  ;;  %4785 = vmatmul.mubr.msk.f32.gmra.mxu1 %vm388_vm1, %v5613_v50  ;;  %v7320_v50 = vld [vmem:[#allocation25_spill] sm:$0xff] }
  0xb0   : > { %4787 = vmatprep.mubr.msk.f32.mxu1 %vm388_vm1, %v5619_v57  ;;  %v7319_v57 = vld [vmem:[#allocation24_spill] sm:$0xff] }
  0xb2   : > { %4735 = vmatmul.mubr.msk.f32.gmra.mxu0 %vm388_vm1, %v7315_v41 }
  0xb3   : > { %4737 = vmatprep.mubr.msk.f32.mxu0 %vm388_vm1, %v7316_v55  ;;  %4788 = vmatmul.mubr.msk.f32.gmra.mxu1 %vm388_vm1, %v5630_v58  ;;  %v7324_v58 = vld [vmem:[#allocation32_spill] sm:$0xff] }
  0xb4   : > { %4790 = vmatprep.mubr.msk.f32.mxu1 %vm388_vm1, %v5636_v9  ;;  %v7321_v9 = vld [vmem:[#allocation28_spill] sm:$0xff] }
  0xb6   : > { %4738 = vmatmul.mubr.msk.f32.gmra.mxu0 %vm388_vm1, %v7317_v49 }
  0xb7   : > { %4740 = vmatprep.mubr.msk.f32.mxu0 %vm388_vm1, %v7318_v6  ;;  %4791 = vmatmul.mubr.msk.f32.gmra.mxu1 %vm388_vm1, %v5647_v10  ;;  %v7322_v10 = vld [vmem:[#allocation29_spill] sm:$0xff] }
  0xb8   : > { %4793 = vmatprep.mubr.msk.f32.mxu1 %vm388_vm1, %v5653_v25  ;;  %v7323_v25 = vld [vmem:[#allocation31_spill] sm:$0xff] }
  0xba   : > { %4741 = vmatmul.mubr.msk.f32.gmra.mxu0 %vm388_vm1, %v7319_v57 }
  0xbb   : > { %4743 = vmatprep.mubr.msk.f32.mxu0 %vm388_vm1, %v7320_v50  ;;  %4794 = vmatmul.mubr.msk.f32.gmra.mxu1 %vm388_vm1, %v5664_v29  ;;  %v1914_v29 = vrot.slane %v5729_v4, 2 }
  0xbc   : > { %4796 = vmatprep.mubr.msk.f32.mxu1 %vm388_vm1, %v5670_v47  ;;  %v1913_v47 = vrot.slane %v5711_v39, 2 }
  0xbe   : > { %4744 = vmatmul.mubr.msk.f32.gmra.mxu0 %vm388_vm1, %v7321_v9  ;;  %v5872_v54 = vsel %vm972_vm3, %v1913_v47, %v1914_v29 }
  0xbf   : > { %4746 = vmatprep.mubr.msk.f32.mxu0 %vm388_vm1, %v7322_v10  ;;  %4797 = vmatmul.mubr.msk.f32.gmra.mxu1 %vm388_vm1, %v5681_v48  ;;  %v7325_v48 = vld [vmem:[#allocation33_spill] sm:$0xff] }
  0xc0   : > { %4799 = vmatprep.mubr.msk.f32.mxu1 %vm388_vm1, %v5687_v0  ;;  %v248_v0 = vld [vmem:[%s5034_s26 + $0x190] sm:$0x3] }
  0xc2   : > { %4747 = vmatmul.mubr.msk.f32.gmra.mxu0 %vm388_vm1, %v7323_v25 }
  0xc3   : > { %4749 = vmatprep.mubr.msk.f32.mxu0 %vm388_vm1, %v7324_v58  ;;  %4800 = vmatmul.mubr.msk.f32.gmra.mxu1 %vm388_vm1, %v5698_v2  ;;  %v1645_v2 = vrot.slane %v5729_v4, 1 }
  0xc4   : > { %4802 = vmatprep.mubr.msk.f32.mxu1 %vm388_vm1, %v5704_v45  ;;  %v1916_v45 = vrot.slane %v248_v0, 2 }
  0xc5   : > { %v5881_v12 = vsel %vm305_vm2, %v1644_v5, %v1645_v2 }
  0xc6   : > { %4750 = vmatmul.mubr.msk.f32.gmra.mxu0 %vm388_vm1, %v7325_v48 }
  0xc7   : > { %4752 = vmatprep.mubr.msk.f32.mxu0 %vm388_vm1, %v5428_v46  ;;  %4803 = vmatmul.mubr.msk.f32.gmra.mxu1 %vm388_vm1, %v5718_v20  ;;  %v1647_v20 = vrot.slane %v248_v0, 1 }
  0xc8   : > { %4805 = vmatprep.mubr.msk.f32.mxu1 %vm388_vm1, %v5724_v63  ;;  %v5886_v63 = vsel %vm972_vm3, %v1914_v29, %v1916_v45 }
  0xc9   : > { %v5893_v47 = vsel %vm305_vm2, %v1645_v2, %v1647_v20 }
  0xca   : > { %4753 = vmatmul.mubr.msk.f32.gmra.mxu0 %vm388_vm1, %v5442_v1 }
  0xcb   : > { %4755 = vmatprep.mubr.msk.f32.mxu0 %vm388_vm1, %v5448_v37  ;;  %4806 = vmatmul.mubr.msk.f32.gmra.mxu1 %vm388_vm1, %v5736_v21 }
  0xcc   : > { %4808 = vmatprep.mubr.msk.f32.mxu1 %vm388_vm1, %v5872_v54 }
  0xce   : > { %4756 = vmatmul.mubr.msk.f32.gmra.mxu0 %vm388_vm1, %v5465_v44 }
  0xcf   : > { %4758 = vmatprep.mubr.msk.f32.mxu0 %vm388_vm1, %v5881_v12  ;;  %4809 = vmatmul.mubr.msk.f32.gmra.mxu1 %vm388_vm1, %v5886_v63 }
  0xd0   : > { %4863 = vmatprep.mubr.msk.f32.mxu1 %vm388_vm1, %v5104_v30 }
  0xd2   : > { %4759 = vmatmul.mubr.msk.f32.gmra.mxu0 %vm388_vm1, %v5893_v47 }
  0xd3   : > { %4813 = vmatprep.mubr.msk.f32.mxu0 %vm388_vm1, %v5065_v17  ;;  %v4565_v5 = vpop.f32.mrf.mxu1  ;;  %4864 = vmatmul.mubr.msk.f32.vlgmr.msra.gmra.mxu1 %vm388_vm1, %v5127_v36 }
  0xd4   : > { %4866 = vmatprep.mubr.msk.f32.mxu1 %vm388_vm1, %v7304_v24 }
  0xd5   : > { %v813_v29 = vpop.f32.mrf.mxu1 }
  0xd6   : > { %v4515_v0 = vpop.f32.mrf.mxu0  ;;  %4814 = vmatmul.mubr.msk.f32.vlgmr.msra.gmra.mxu0 %vm388_vm1, %v5068_v18 }
  0xd7   : > { %v5909_v2 = vadd.f32 %v4565_v5, %v4515_v0  ;;  %4816 = vmatprep.mubr.msk.f32.mxu0 %vm388_vm1, %v5086_v26  ;;  %v4568_v30 = vpop.f32.mrf.mxu1  ;;  %4867 = vmatmul.mubr.msk.f32.gmra.mxu1 %vm388_vm1, %v7305_v28  ;;  %v7326_v0 = vld [vmem:[#allocation5_spill] sm:$0xff] }
  0xd8   : > { %v522_v17 = vpop.f32.mrf.mxu0  ;;  %4869 = vmatprep.mubr.msk.f32.mxu1 %vm388_vm1, %v7306_v15  ;;  %4912 = vmatpush3.msk.msra.mxu0 %vm453_vm0, %v5758_v14 }
  0xd9   : > { %v5919_v36 = vadd.f32 %v813_v29, %v522_v17  ;;  %v823_v45 = vpop.f32.mrf.mxu1 }
  0xda   : > { %v4518_v18 = vpop.f32.mrf.mxu0  ;;  %4817 = vmatmul.mubr.msk.f32.gmra.mxu0 %vm388_vm1, %v5089_v27 }
  0xdb   : > { %v5923_v20 = vadd.f32 %v4568_v30, %v4518_v18  ;;  %4819 = vmatprep.mubr.msk.f32.mxu0 %vm388_vm1, %v5115_v34  ;;  %v4571_v26 = vpop.f32.mrf.mxu1  ;;  %4870 = vmatmul.mubr.msk.f32.gmra.mxu1 %vm388_vm1, %v7307_v40 }
  0xdc   : > { %v532_v24 = vpop.f32.mrf.mxu0  ;;  %4872 = vmatprep.mubr.msk.f32.mxu1 %vm388_vm1, %v7308_v52 }
  0xdd   : > { %v5931_v14 = vadd.f32 %v823_v45, %v532_v24  ;;  %v833_v28 = vpop.f32.mrf.mxu1  ;;  %v7327_v45 = vld [vmem:[#allocation8_spill] sm:$0xff] }
  0xde   : > { %v4521_v15 = vpop.f32.mrf.mxu0  ;;  %4820 = vmatmul.mubr.msk.f32.gmra.mxu0 %vm388_vm1, %v5118_v35 }
  0xdf   : > { %v5935_v27 = vadd.f32 %v4571_v26, %v4521_v15  ;;  %4822 = vmatprep.mubr.msk.f32.mxu0 %vm388_vm1, %v5143_v42  ;;  %v4574_v34 = vpop.f32.mrf.mxu1  ;;  %4873 = vmatmul.mubr.msk.f32.gmra.mxu1 %vm388_vm1, %v7309_v60 }
  0xe0   : > { %v542_v40 = vpop.f32.mrf.mxu0  ;;  %4875 = vmatprep.mubr.msk.f32.mxu1 %vm388_vm1, %v7310_v13 }
  0xe1   : > { %v5943_v52 = vadd.f32 %v833_v28, %v542_v40  ;;  %v843_v5 = vpop.f32.mrf.mxu1  ;;  %v7328_v28 = vld [vmem:[#allocation11_spill] sm:$0xff] }
  0xe2   : > { %v4524_v29 = vpop.f32.mrf.mxu0  ;;  %4823 = vmatmul.mubr.msk.f32.gmra.mxu0 %vm388_vm1, %v5146_v43 }
  0xe3   : > { %v5947_v35 = vadd.f32 %v4574_v34, %v4524_v29  ;;  %4825 = vmatprep.mubr.msk.f32.mxu0 %vm388_vm1, %v7326_v0  ;;  %v4577_v42 = vpop.f32.mrf.mxu1  ;;  %4876 = vmatmul.mubr.msk.f32.gmra.mxu1 %vm388_vm1, %v7311_v56 }
  0xe4   : > { %v552_v60 = vpop.f32.mrf.mxu0  ;;  %4878 = vmatprep.mubr.msk.f32.mxu1 %vm388_vm1, %v7312_v38 }
  0xe5   : > { %v5955_v13 = vadd.f32 %v843_v5, %v552_v60  ;;  %v853_v30 = vpop.f32.mrf.mxu1  ;;  %v7329_v5 = vld [vmem:[#allocation14_spill] sm:$0xff]  ;;  %v7330_v60 = vld [vmem:[#allocation17_spill] sm:$0xff] }
  0xe6   : > { %v4527_v17 = vpop.f32.mrf.mxu0  ;;  %4826 = vmatmul.mubr.msk.f32.gmra.mxu0 %vm388_vm1, %v5172_v51 }
  0xe7   : > { %v5959_v43 = vadd.f32 %v4577_v42, %v4527_v17  ;;  %4828 = vmatprep.mubr.msk.f32.mxu0 %vm388_vm1, %v7327_v45  ;;  %v4580_v18 = vpop.f32.mrf.mxu1  ;;  %4879 = vmatmul.mubr.msk.f32.gmra.mxu1 %vm388_vm1, %v7313_v33 }
  0xe8   : > { %v562_v56 = vpop.f32.mrf.mxu0  ;;  %4881 = vmatprep.mubr.msk.f32.mxu1 %vm388_vm1, %v7314_v61 }
  0xe9   : > { %v5967_v38 = vadd.f32 %v853_v30, %v562_v56  ;;  %v863_v26 = vpop.f32.mrf.mxu1 }
  0xea   : > { %v4530_v24 = vpop.f32.mrf.mxu0  ;;  %4829 = vmatmul.mubr.msk.f32.gmra.mxu0 %vm388_vm1, %v5198_v59 }
  0xeb   : > { %v5971_v51 = vadd.f32 %v4580_v18, %v4530_v24  ;;  %4831 = vmatprep.mubr.msk.f32.mxu0 %vm388_vm1, %v7328_v28  ;;  %v4583_v15 = vpop.f32.mrf.mxu1  ;;  %4882 = vmatmul.mubr.msk.f32.gmra.mxu1 %vm388_vm1, %v7315_v41  ;;  %v7331_v18 = vld [vmem:[#allocation20_spill] sm:$0xff]  ;;  %v7332_v24 = vld [vmem:[#allocation23_spill] sm:$0xff] }
  0xec   : > { %v572_v33 = vpop.f32.mrf.mxu0  ;;  %4884 = vmatprep.mubr.msk.f32.mxu1 %vm388_vm1, %v7316_v55 }
  0xed   : > { %v5979_v61 = vadd.f32 %v863_v26, %v572_v33  ;;  %v873_v34 = vpop.f32.mrf.mxu1  ;;  %v7333_v33 = vld [vmem:[#allocation26_spill] sm:$0xff] }
  0xee   : > { %v4533_v40 = vpop.f32.mrf.mxu0  ;;  %4832 = vmatmul.mubr.msk.f32.gmra.mxu0 %vm388_vm1, %v5227_v11 }
  0xef   : > { %v5983_v59 = vadd.f32 %v4583_v15, %v4533_v40  ;;  %4834 = vmatprep.mubr.msk.f32.mxu0 %vm388_vm1, %v7329_v5  ;;  %v4586_v29 = vpop.f32.mrf.mxu1  ;;  %4885 = vmatmul.mubr.msk.f32.gmra.mxu1 %vm388_vm1, %v7317_v49  ;;  %v7334_v5 = vld [vmem:[#allocation27_spill] sm:$0xff] }
  0xf0   : > { %v582_v41 = vpop.f32.mrf.mxu0  ;;  %4887 = vmatprep.mubr.msk.f32.mxu1 %vm388_vm1, %v7318_v6 }
  0xf1   : > { %v5991_v55 = vadd.f32 %v873_v34, %v582_v41  ;;  %v883_v0 = vpop.f32.mrf.mxu1 }
  0xf2   : > { %v4536_v42 = vpop.f32.mrf.mxu0  ;;  %4835 = vmatmul.mubr.msk.f32.gmra.mxu0 %vm388_vm1, %v5259_v31 }
  0xf3   : > { %v5995_v11 = vadd.f32 %v4586_v29, %v4536_v42  ;;  %4837 = vmatprep.mubr.msk.f32.mxu0 %vm388_vm1, %v7330_v60  ;;  %v4589_v30 = vpop.f32.mrf.mxu1  ;;  %4888 = vmatmul.mubr.msk.f32.gmra.mxu1 %vm388_vm1, %v7319_v57  ;;  %v6055_v29 = vld [vmem:[%s5034_s26 + $0x1a0] sm:$0xff] }
  0xf4   : > { %v592_v49 = vpop.f32.mrf.mxu0  ;;  %4890 = vmatprep.mubr.msk.f32.mxu1 %vm388_vm1, %v7320_v50 }
  0xf5   : > { %v6003_v6 = vadd.f32 %v883_v0, %v592_v49  ;;  %v6005_v17 = vpop.f32.mrf.mxu1  ;;  %v7335_v0 = vld [vmem:[#allocation30_spill] sm:$0xff]  ;;  %v6072_v49 = vld [vmem:[%s5034_s26 + $0x1a8] sm:$0x3] }
  0xf6   : > { %v4539_v45 = vpop.f32.mrf.mxu0  ;;  %4838 = vmatmul.mubr.msk.f32.gmra.mxu0 %vm388_vm1, %v5285_v53 }
  0xf7   : > { %v6009_v31 = vadd.f32 %v4589_v30, %v4539_v45  ;;  %4840 = vmatprep.mubr.msk.f32.mxu0 %vm388_vm1, %v7331_v18  ;;  %v4592_v56 = vpop.f32.mrf.mxu1  ;;  %4891 = vmatmul.mubr.msk.f32.gmra.mxu1 %vm388_vm1, %v7321_v9  ;;  %v2450_v30 = vrot.slane %v6055_v29, 1 }
  0xf8   : > { %v6015_v57 = vpop.f32.mrf.mxu0  ;;  %4893 = vmatprep.mubr.msk.f32.mxu1 %vm388_vm1, %v7322_v10 }
  0xf9   : > { %v6019_v50 = vpop.f32.mrf.mxu1 }
  0xfa   : > { %v4542_v26 = vpop.f32.mrf.mxu0  ;;  %4841 = vmatmul.mubr.msk.f32.gmra.mxu0 %vm388_vm1, %v5311_v3 }
  0xfb   : > { %v6023_v53 = vadd.f32 %v4592_v56, %v4542_v26  ;;  %4843 = vmatprep.mubr.msk.f32.mxu0 %vm388_vm1, %v7332_v24  ;;  %v4595_v28 = vpop.f32.mrf.mxu1  ;;  %4894 = vmatmul.mubr.msk.f32.gmra.mxu1 %vm388_vm1, %v7323_v25  ;;  %v2452_v56 = vrot.slane %v6072_v49, 1 }
  0xfc   : > { %v6029_v9 = vpop.f32.mrf.mxu0  ;;  %4896 = vmatprep.mubr.msk.f32.mxu1 %vm388_vm1, %v7324_v58 }
  0xfd   : > { %v6033_v10 = vpop.f32.mrf.mxu1 }
  0xfe   : > { %v4545_v15 = vpop.f32.mrf.mxu0  ;;  %4844 = vmatmul.mubr.msk.f32.gmra.mxu0 %vm388_vm1, %v5337_v8  ;;  %v6052_v8 = vld [vmem:[%s5034_s26 + $0x198] sm:$0xff] }
  0xff   : > { %v6037_v3 = vadd.f32 %v4595_v28, %v4545_v15  ;;  %4846 = vmatprep.mubr.msk.f32.mxu0 %vm388_vm1, %v7333_v33  ;;  %v4598_v34 = vpop.f32.mrf.mxu1  ;;  %4897 = vmatmul.mubr.msk.f32.gmra.mxu1 %vm388_vm1, %v7325_v48  ;;  %v2449_v60 = vrot.slane %v6052_v8, 1  ;;  %v2453_v28 = vsel %vm305_vm2, %v2450_v30, %v2452_v56 }
 0x100   : > { %v6043_v25 = vpop.f32.mrf.mxu0  ;;  %4899 = vmatprep.mubr.msk.f32.mxu1 %vm388_vm1, %v5428_v46 }
 0x101   : > { %v6047_v58 = vpop.f32.mrf.mxu1 }
 0x102   : > { %v4548_v40 = vpop.f32.mrf.mxu0  ;;  %4847 = vmatmul.mubr.msk.f32.gmra.mxu0 %vm388_vm1, %v7334_v5 }
 0x103   : > { %v6057_v41 = vadd.f32 %v4598_v34, %v4548_v40  ;;  %4849 = vmatprep.mubr.msk.f32.mxu0 %vm388_vm1, %v7335_v0  ;;  %v4601_v48 = vpop.f32.mrf.mxu1  ;;  %4900 = vmatmul.mubr.msk.f32.gmra.mxu1 %vm388_vm1, %v5442_v1 }
 0x104   : > { %v6063_v46 = vpop.f32.mrf.mxu0  ;;  %4902 = vmatprep.mubr.msk.f32.mxu1 %vm388_vm1, %v5448_v37 }
 0x105   : > { %v6067_v42 = vpop.f32.mrf.mxu1 }
 0x106   : > { %7336 = vst [vmem:[#allocation2_spill] sm:$0xff] %v6067_v42  ;;  %v4551_v45 = vpop.f32.mrf.mxu0  ;;  %4850 = vmatmul.mubr.msk.f32.gmra.mxu0 %vm388_vm1, %v5389_v16  ;;  %v2451_v16 = vsel %vm305_vm2, %v2449_v60, %v2450_v30 }
 0x107   : > { %v6076_v18 = vadd.f32 %v4601_v48, %v4551_v45  ;;  %4852 = vmatprep.mubr.msk.f32.mxu0 %vm388_vm1, %v5412_v32  ;;  %v4604_v1 = vpop.f32.mrf.mxu1  ;;  %4903 = vmatmul.mubr.msk.f32.gmra.mxu1 %vm388_vm1, %v5465_v44 }
 0x108   : > { %v6082_v37 = vpop.f32.mrf.mxu0  ;;  %4905 = vmatprep.mubr.msk.f32.mxu1 %vm388_vm1, %v5881_v12 }
 0x109   : > { %7337 = vst [vmem:[#allocation3_spill] sm:$0xff] %v6082_v37  ;;  %v6087_v26 = vpop.f32.mrf.mxu1  ;;  %v7366_v37 = vld [vmem:[#allocation54_spill] sm:$0xff] }
 0x10a   : > { %7338 = vst [vmem:[#allocation4_spill] sm:$0xff] %v6087_v26  ;;  %v4554_v24 = vpop.f32.mrf.mxu0  ;;  %4853 = vmatmul.mubr.msk.f32.gmra.mxu0 %vm388_vm1, %v5415_v22 }
 0x10b   : > { %v6092_v32 = vadd.f32 %v4604_v1, %v4554_v24  ;;  %4855 = vmatprep.mubr.msk.f32.mxu0 %vm388_vm1, %v5711_v39  ;;  %v4607_v44 = vpop.f32.mrf.mxu1  ;;  %4906 = vmatmul.mubr.msk.f32.gmra.mxu1 %vm388_vm1, %v5893_v47 }
 0x10c   : > { %v6098_v12 = vpop.f32.mrf.mxu0  ;;  %4908 = vmatprep.mubr.msk.f32.mxu1 %vm388_vm1, %v2451_v16 }
 0x10d   : > { %7339 = vst [vmem:[#allocation6_spill] sm:$0xff] %v6098_v12  ;;  %v6102_v15 = vpop.f32.mrf.mxu1  ;;  %v7362_v12 = vld [vmem:[#allocation52_spill] sm:$0xff] }
 0x10e   : > { %7340 = vst [vmem:[#allocation7_spill] sm:$0xff] %v6102_v15  ;;  %v4557_v33 = vpop.f32.mrf.mxu0  ;;  %4856 = vmatmul.mubr.msk.f32.gmra.mxu0 %vm388_vm1, %v5729_v4  ;;  %v7358_v15 = vld [vmem:[#allocation48_spill] sm:$0xff] }
 0x10f   : > { %v6106_v22 = vadd.f32 %v4607_v44, %v4557_v33  ;;  %4858 = vmatprep.mubr.msk.f32.mxu0 %vm388_vm1, %v6052_v8  ;;  %v4610_v39 = vpop.f32.mrf.mxu1  ;;  %4909 = vmatmul.mubr.msk.f32.gmra.mxu1 %vm388_vm1, %v2453_v28  ;;  %v7344_v44 = vld [vmem:[#allocation34_spill] sm:$0xff] }
 0x110   : > { %v6111_v47 = vpop.f32.mrf.mxu0 }
 0x111   : > { %7341 = vst [vmem:[#allocation9_spill] sm:$0xff] %v6111_v47  ;;  %v6113_v34 = vpop.f32.mrf.mxu1  ;;  %v7360_v47 = vld [vmem:[#allocation50_spill] sm:$0xff] }
 0x112   : > { %7342 = vst [vmem:[#allocation10_spill] sm:$0xff] %v6113_v34  ;;  %v4560_v40 = vpop.f32.mrf.mxu0  ;;  %4859 = vmatmul.mubr.msk.f32.gmra.mxu0 %vm388_vm1, %v6055_v29  ;;  %v7354_v34 = vld [vmem:[#allocation44_spill] sm:$0xff] }
 0x113   : > { %v6117_v5 = vadd.f32 %v4610_v39, %v4560_v40  ;;  %4913 = vmatprep.mubr.msk.f32.mxu0 %vm388_vm1, %v5496_v62  ;;  %v4665_v4 = vpop.f32.mrf.mxu1  ;;  %v7345_v40 = vld [vmem:[#allocation35_spill] sm:$0xff] }
 0x114   : > { %v6121_v0 = vpop.f32.mrf.mxu0 }
 0x115   : > { %7343 = vst [vmem:[#allocation12_spill] sm:$0xff] %v6121_v0  ;;  %v6123_v48 = vpop.f32.mrf.mxu1  ;;  %v7356_v0 = vld [vmem:[#allocation46_spill] sm:$0xff] }
 0x116   : > { %v4615_v60 = vpop.f32.mrf.mxu0  ;;  %4914 = vmatmul.mubr.msk.f32.vlgmr.msra.gmra.mxu0 %vm388_vm1, %v5511_v23 }
 0x117   : > { %v1346_v30 = vadd.f32 %v4615_v60, %v5909_v2  ;;  %4916 = vmatprep.mubr.msk.f32.mxu0 %vm388_vm1, %v5517_v7  ;;  %v4668_v45 = vpop.f32.mrf.mxu1 }
 0x118   : > { %v1186_v1 = vpop.f32.mrf.mxu0 }
 0x119   : > { %v6131_v56 = vadd.f32 %v1186_v1, %v5919_v36  ;;  %v6133_v62 = vadd.f32 %v4665_v4, %v1346_v30  ;;  %v6135_v16 = vpop.f32.mrf.mxu1  ;;  %v7346_v4 = vld [vmem:[#allocation36_spill] sm:$0xff] }
 0x11a   : > { %v4618_v24 = vpop.f32.mrf.mxu0  ;;  %4917 = vmatmul.mubr.msk.f32.gmra.mxu0 %vm388_vm1, %v5528_v19 }
 0x11b   : > { %v1348_v23 = vadd.f32 %v4618_v24, %v5923_v20  ;;  %4919 = vmatprep.mubr.msk.f32.mxu0 %vm388_vm1, %v7344_v44  ;;  %v4671_v2 = vpop.f32.mrf.mxu1  ;;  %v7347_v24 = vld [vmem:[#allocation37_spill] sm:$0xff]  ;;  %v7348_v44 = vld [vmem:[#allocation38_spill] sm:$0xff] }
 0x11c   : > { %v1196_v7 = vpop.f32.mrf.mxu0 }
 0x11d   : > { %v6143_v28 = vadd.f32 %v1196_v7, %v5931_v14  ;;  %v6145_v36 = vadd.f32 %v4668_v45, %v1348_v23  ;;  %v6147_v33 = vpop.f32.mrf.mxu1 }
 0x11e   : > { %v4621_v39 = vpop.f32.mrf.mxu0  ;;  %4920 = vmatmul.mubr.msk.f32.gmra.mxu0 %vm388_vm1, %v7345_v40 }
 0x11f   : > { %v1350_v19 = vadd.f32 %v4621_v39, %v5935_v27  ;;  %4922 = vmatprep.mubr.msk.f32.mxu0 %vm388_vm1, %v7346_v4  ;;  %v4674_v20 = vpop.f32.mrf.mxu1 }
 0x120   : > { %v1206_v60 = vpop.f32.mrf.mxu0 }
 0x121   : > { %v6155_v30 = vadd.f32 %v1206_v60, %v5943_v52  ;;  %v6157_v14 = vadd.f32 %v4671_v2, %v1350_v19  ;;  %v6159_v45 = vpop.f32.mrf.mxu1  ;;  %v7349_v19 = vld [vmem:[#allocation39_spill] sm:$0xff]  ;;  %v7350_v60 = vld [vmem:[#allocation40_spill] sm:$0xff] }
 0x122   : > { %v4624_v1 = vpop.f32.mrf.mxu0  ;;  %4923 = vmatmul.mubr.msk.f32.gmra.mxu0 %vm388_vm1, %v7347_v24 }
 0x123   : > { %v1352_v23 = vadd.f32 %v4624_v1, %v5947_v35  ;;  %4925 = vmatprep.mubr.msk.f32.mxu0 %vm388_vm1, %v7348_v44  ;;  %v4677_v27 = vpop.f32.mrf.mxu1  ;;  %v7351_v44 = vld [vmem:[#allocation41_spill] sm:$0xff] }
 0x124   : > { %v1216_v7 = vpop.f32.mrf.mxu0 }
 0x125   : > { %v6167_v39 = vadd.f32 %v1216_v7, %v5955_v13  ;;  %v6169_v52 = vadd.f32 %v4674_v20, %v1352_v23  ;;  %v6171_v2 = vpop.f32.mrf.mxu1 }
 0x126   : > { %v4627_v40 = vpop.f32.mrf.mxu0  ;;  %4926 = vmatmul.mubr.msk.f32.gmra.mxu0 %vm388_vm1, %v7349_v19  ;;  %v7352_v19 = vld [vmem:[#allocation42_spill] sm:$0xff] }
 0x127   : > { %v1354_v4 = vadd.f32 %v4627_v40, %v5959_v43  ;;  %4928 = vmatprep.mubr.msk.f32.mxu0 %vm388_vm1, %v7350_v60  ;;  %v4680_v35 = vpop.f32.mrf.mxu1 }
 0x128   : > { %v1226_v1 = vpop.f32.mrf.mxu0 }
 0x129   : > { %v6179_v24 = vadd.f32 %v1226_v1, %v5967_v38  ;;  %v6181_v13 = vadd.f32 %v4677_v27, %v1354_v4  ;;  %v6183_v20 = vpop.f32.mrf.mxu1  ;;  %v7353_v1 = vld [vmem:[#allocation43_spill] sm:$0xff] }
 0x12a   : > { %v4630_v23 = vpop.f32.mrf.mxu0  ;;  %4929 = vmatmul.mubr.msk.f32.gmra.mxu0 %vm388_vm1, %v7351_v44 }
 0x12b   : > { %v1356_v7 = vadd.f32 %v4630_v23, %v5971_v51  ;;  %4931 = vmatprep.mubr.msk.f32.mxu0 %vm388_vm1, %v7352_v19  ;;  %v4683_v43 = vpop.f32.mrf.mxu1 }
 0x12c   : > { %v1236_v40 = vpop.f32.mrf.mxu0 }
 0x12d   : > { %v6191_v60 = vadd.f32 %v1236_v40, %v5979_v61  ;;  %v6193_v38 = vadd.f32 %v4680_v35, %v1356_v7  ;;  %v6195_v27 = vpop.f32.mrf.mxu1  ;;  %v7355_v40 = vld [vmem:[#allocation45_spill] sm:$0xff] }
 0x12e   : > { %v4633_v4 = vpop.f32.mrf.mxu0  ;;  %4932 = vmatmul.mubr.msk.f32.gmra.mxu0 %vm388_vm1, %v7353_v1 }
 0x12f   : > { %v1358_v44 = vadd.f32 %v4633_v4, %v5983_v59  ;;  %4934 = vmatprep.mubr.msk.f32.mxu0 %vm388_vm1, %v7354_v34  ;;  %v4686_v51 = vpop.f32.mrf.mxu1 }
 0x130   : > { %v1246_v23 = vpop.f32.mrf.mxu0 }
 0x131   : > { %v6203_v19 = vadd.f32 %v1246_v23, %v5991_v55  ;;  %v6205_v61 = vadd.f32 %v4683_v43, %v1358_v44  ;;  %v6207_v35 = vpop.f32.mrf.mxu1  ;;  %v7357_v23 = vld [vmem:[#allocation47_spill] sm:$0xff] }
 0x132   : > { %v4636_v7 = vpop.f32.mrf.mxu0  ;;  %4935 = vmatmul.mubr.msk.f32.gmra.mxu0 %vm388_vm1, %v7355_v40 }
 0x133   : > { %v1360_v1 = vadd.f32 %v4636_v7, %v5995_v11  ;;  %4937 = vmatprep.mubr.msk.f32.mxu0 %vm388_vm1, %v7356_v0  ;;  %v4689_v59 = vpop.f32.mrf.mxu1 }
 0x134   : > { %v1256_v34 = vpop.f32.mrf.mxu0 }
 0x135   : > { %v6215_v4 = vadd.f32 %v1256_v34, %v6003_v6  ;;  %v6217_v55 = vadd.f32 %v4686_v51, %v1360_v1  ;;  %v6219_v43 = vpop.f32.mrf.mxu1  ;;  %v7359_v1 = vld [vmem:[#allocation49_spill] sm:$0xff] }
 0x136   : > { %v4639_v44 = vpop.f32.mrf.mxu0  ;;  %4938 = vmatmul.mubr.msk.f32.gmra.mxu0 %vm388_vm1, %v7357_v23 }
 0x137   : > { %v1362_v40 = vadd.f32 %v4639_v44, %v6009_v31  ;;  %4940 = vmatprep.mubr.msk.f32.mxu0 %vm388_vm1, %v7358_v15  ;;  %v4692_v11 = vpop.f32.mrf.mxu1 }
 0x138   : > { %v6226_v0 = vpop.f32.mrf.mxu0 }
 0x139   : > { %v6228_v7 = vadd.f32 %v4689_v59, %v1362_v40  ;;  %v6230_v6 = vpop.f32.mrf.mxu1  ;;  %v7361_v40 = vld [vmem:[#allocation51_spill] sm:$0xff] }
 0x13a   : > { %v4642_v51 = vpop.f32.mrf.mxu0  ;;  %4941 = vmatmul.mubr.msk.f32.gmra.mxu0 %vm388_vm1, %v7359_v1 }
 0x13b   : > { %v1364_v34 = vadd.f32 %v4642_v51, %v6023_v53  ;;  %4943 = vmatprep.mubr.msk.f32.mxu0 %vm388_vm1, %v7360_v47  ;;  %v4695_v31 = vpop.f32.mrf.mxu1 }
 0x13c   : > { %v6237_v44 = vpop.f32.mrf.mxu0 }
 0x13d   : > { %v6239_v15 = vadd.f32 %v4692_v11, %v1364_v34  ;;  %v6241_v23 = vpop.f32.mrf.mxu1  ;;  %v7365_v34 = vld [vmem:[#allocation53_spill] sm:$0xff] }
 0x13e   : > { %v4645_v59 = vpop.f32.mrf.mxu0  ;;  %4944 = vmatmul.mubr.msk.f32.gmra.mxu0 %vm388_vm1, %v7361_v40 }
 0x13f   : > { %v1366_v26 = vadd.f32 %v4645_v59, %v6037_v3  ;;  %4946 = vmatprep.mubr.msk.f32.mxu0 %vm388_vm1, %v7362_v12  ;;  %v4698_v53 = vpop.f32.mrf.mxu1 }
 0x140   : > { %v6248_v51 = vpop.f32.mrf.mxu0 }
 0x141   : > { %v6250_v47 = vadd.f32 %v4695_v31, %v1366_v26  ;;  %v6252_v1 = vpop.f32.mrf.mxu1  ;;  %v7368_v31 = vld [vmem:[#allocation55_spill] sm:$0xff] }
 0x142   : > { %7364 = vst [vmem:[#allocation15_spill] sm:$0xff] %v6252_v1  ;;  %v4648_v11 = vpop.f32.mrf.mxu0  ;;  %4947 = vmatmul.mubr.msk.f32.gmra.mxu0 %vm388_vm1, %v7365_v34  ;;  %v2719_v34 = vrot.slane %v6055_v29, 2 }
 0x143   : > { %7363 = vst [vmem:[#allocation13_spill] sm:$0xff] %v6250_v47  ;;  %v1368_v42 = vadd.f32 %v4648_v11, %v6057_v41  ;;  %4949 = vmatprep.mubr.msk.f32.mxu0 %vm388_vm1, %v7366_v37  ;;  %v4701_v3 = vpop.f32.mrf.mxu1  ;;  %v7369_v47 = vld [vmem:[#allocation56_spill] sm:$0xff]  ;;  %v2718_v11 = vrot.slane %v6052_v8, 2  ;;  %v2721_v8 = vrot.slane %v6072_v49, 2 }
 0x144   : > { %v6259_v59 = vpop.f32.mrf.mxu0 }
 0x145   : > { %v6261_v12 = vadd.f32 %v4698_v53, %v1368_v42  ;;  %v6263_v40 = vpop.f32.mrf.mxu1  ;;  %v2720_v29 = vsel %vm972_vm3, %v2718_v11, %v2719_v34 }
 0x146   : > { %7367 = vst [vmem:[#allocation16_spill] sm:$0xff] %v6263_v40  ;;  %v4651_v26 = vpop.f32.mrf.mxu0  ;;  %4950 = vmatmul.mubr.msk.f32.gmra.mxu0 %vm388_vm1, %v7368_v31 }
 0x147   : > { %v1370_v1 = vadd.f32 %v4651_v26, %v6076_v18  ;;  %4952 = vmatprep.mubr.msk.f32.mxu0 %vm388_vm1, %v7369_v47  ;;  %v4704_v41 = vpop.f32.mrf.mxu1 }
 0x148   : > { %v6271_v37 = vpop.f32.mrf.mxu0 }
 0x149   : > { %v6274_v42 = vadd.f32 %v4701_v3, %v1370_v1  ;;  %v6276_v53 = vpop.f32.mrf.mxu1 }
 0x14a   : > { %v4654_v40 = vpop.f32.mrf.mxu0  ;;  %4953 = vmatmul.mubr.msk.f32.gmra.mxu0 %vm388_vm1, %v5736_v21 }
 0x14b   : > { %v1372_v18 = vadd.f32 %v4654_v40, %v6092_v32  ;;  %4955 = vmatprep.mubr.msk.f32.mxu0 %vm388_vm1, %v5872_v54  ;;  %v4707_v47 = vpop.f32.mrf.mxu1  ;;  %v2722_v54 = vsel %vm972_vm3, %v2719_v34, %v2721_v8  ;;  %v1611_v34 = vadd.f32 %v6123_v48, %v6131_v56 }
 0x14c   : > { %v6284_v26 = vpop.f32.mrf.mxu0 }
 0x14d   : > { %v6287_v1 = vadd.f32 %v4704_v41, %v1372_v18  ;;  %v6289_v3 = vpop.f32.mrf.mxu1 }
 0x14e   : > { %7371 = vst [vmem:[#allocation19_spill] sm:$0xff] %v6289_v3  ;;  %v4657_v31 = vpop.f32.mrf.mxu0  ;;  %4956 = vmatmul.mubr.msk.f32.gmra.mxu0 %vm388_vm1, %v5886_v63 }
 0x14f   : > { %7370 = vst [vmem:[#allocation18_spill] sm:$0xff] %v6287_v1  ;;  %v1374_v21 = vadd.f32 %v4657_v31, %v6106_v22  ;;  %4958 = vmatprep.mubr.msk.f32.mxu0 %vm388_vm1, %v2720_v29  ;;  %v4710_v32 = vpop.f32.mrf.mxu1 }
 0x150   : > { %v6296_v49 = vpop.f32.mrf.mxu0 }
 0x151   : > { %v6298_v40 = vadd.f32 %v4707_v47, %v1374_v21  ;;  %v6300_v11 = vpop.f32.mrf.mxu1 }
 0x152   : > { %7373 = vst [vmem:[#allocation22_spill] sm:$0xff] %v6300_v11  ;;  %v4660_v41 = vpop.f32.mrf.mxu0  ;;  %4959 = vmatmul.mubr.msk.f32.gmra.mxu0 %vm388_vm1, %v2722_v54 }
 0x153   : > { %7372 = vst [vmem:[#allocation21_spill] sm:$0xff] %v6298_v40  ;;  %v1376_v18 = vadd.f32 %v4660_v41, %v6117_v5  ;;  %v4765_v3 = vpop.f32.mrf.mxu1  ;;  %v1613_v5 = vadd.f32 %v6135_v16, %v6143_v28 }
 0x154   : > { %v6304_v63 = vpop.f32.mrf.mxu0 }
 0x155   : > { %7374 = vst [vmem:[#allocation24_spill] sm:$0xff] %v6304_v63  ;;  %v6306_v22 = vadd.f32 %v4710_v32, %v1376_v18  ;;  %v1991_v29 = vpop.f32.mrf.mxu1 }
 0x156   : > { %v4715_v31 = vpop.f32.mrf.mxu0 }
 0x157   : > { %7375 = vst [vmem:[#allocation25_spill] sm:$0xff] %v6306_v22  ;;  %v1882_v47 = vadd.f32 %v4715_v31, %v6133_v62  ;;  %v4768_v8 = vpop.f32.mrf.mxu1 }
 0x158   : > { %v1722_v21 = vpop.f32.mrf.mxu0 }
 0x159   : > { %v1881_v11 = vadd.f32 %v1722_v21, %v1611_v34  ;;  %v6311_v40 = vadd.f32 %v4765_v3, %v1882_v47  ;;  %v2001_v54 = vpop.f32.mrf.mxu1  ;;  %v1615_v3 = vadd.f32 %v6147_v33, %v6155_v30 }
 0x15a   : > { %v4718_v1 = vpop.f32.mrf.mxu0 }
 0x15b   : > { %v1884_v32 = vadd.f32 %v4718_v1, %v6145_v36  ;;  %v6316_v41 = vadd.f32 %v1991_v29, %v1881_v11  ;;  %v4771_v18 = vpop.f32.mrf.mxu1 }
 0x15c   : > { %v1732_v22 = vpop.f32.mrf.mxu0 }
 0x15d   : > { %v1883_v63 = vadd.f32 %v1732_v22, %v1613_v5  ;;  %v6318_v48 = vadd.f32 %v4768_v8, %v1884_v32  ;;  %v2011_v56 = vpop.f32.mrf.mxu1  ;;  %v1617_v22 = vadd.f32 %v6159_v45, %v6167_v39  ;;  %v1619_v5 = vadd.f32 %v6171_v2, %v6179_v24 }
 0x15e   : > { %v4721_v62 = vpop.f32.mrf.mxu0 }
 0x15f   : > { %v1886_v31 = vadd.f32 %v4721_v62, %v6157_v14  ;;  %v6323_v34 = vadd.f32 %v2001_v54, %v1883_v63  ;;  %v4774_v47 = vpop.f32.mrf.mxu1 }
 0x160   : > { %v1742_v16 = vpop.f32.mrf.mxu0 }
 0x161   : > { %v1885_v28 = vadd.f32 %v1742_v16, %v1615_v3  ;;  %v6325_v36 = vadd.f32 %v4771_v18, %v1886_v31  ;;  %v2021_v1 = vpop.f32.mrf.mxu1  ;;  %v1621_v31 = vadd.f32 %v6183_v20, %v6191_v60  ;;  %v894_v60 = vadd.f32 %v6005_v17, %v6015_v57 }
 0x162   : > { %v4724_v11 = vpop.f32.mrf.mxu0 }
 0x163   : > { %v1888_v29 = vadd.f32 %v4724_v11, %v6169_v52  ;;  %v6330_v8 = vadd.f32 %v2011_v56, %v1885_v28  ;;  %v4777_v21 = vpop.f32.mrf.mxu1 }
 0x164   : > { %v1752_v33 = vpop.f32.mrf.mxu0 }
 0x165   : > { %v1887_v30 = vadd.f32 %v1752_v33, %v1617_v22  ;;  %v6332_v14 = vadd.f32 %v4774_v47, %v1888_v29  ;;  %v2031_v63 = vpop.f32.mrf.mxu1  ;;  %v1623_v22 = vadd.f32 %v6195_v27, %v6203_v19 }
 0x166   : > { %v4727_v54 = vpop.f32.mrf.mxu0 }
 0x167   : > { %v1890_v32 = vadd.f32 %v4727_v54, %v6181_v13  ;;  %v6337_v18 = vadd.f32 %v2021_v1, %v1887_v30  ;;  %v4780_v62 = vpop.f32.mrf.mxu1 }
 0x168   : > { %v1762_v45 = vpop.f32.mrf.mxu0 }
 0x169   : > { %v1889_v39 = vadd.f32 %v1762_v45, %v1619_v5  ;;  %v6339_v52 = vadd.f32 %v4777_v21, %v1890_v32  ;;  %v2041_v56 = vpop.f32.mrf.mxu1  ;;  %v1625_v5 = vadd.f32 %v6207_v35, %v6215_v4  ;;  %v1361_v32 = vadd.f32 %v6226_v0, %v894_v60  ;;  %v7376_v60 = vld [vmem:[#allocation13_spill] sm:$0xff] }
 0x16a   : > { %v4730_v3 = vpop.f32.mrf.mxu0  ;;  %v904_v45 = vadd.f32 %v6019_v50, %v6029_v9 }
 0x16b   : > { %v1892_v47 = vadd.f32 %v4730_v3, %v6193_v38  ;;  %v6344_v16 = vadd.f32 %v2031_v63, %v1889_v39  ;;  %v4783_v28 = vpop.f32.mrf.mxu1  ;;  %v1627_v3 = vadd.f32 %v6219_v43, %v1361_v32 }
 0x16c   : > { %v1772_v2 = vpop.f32.mrf.mxu0  ;;  %v1363_v35 = vadd.f32 %v6237_v44, %v904_v45 }
 0x16d   : > { %v1891_v24 = vadd.f32 %v1772_v2, %v1621_v31  ;;  %v6346_v13 = vadd.f32 %v4780_v62, %v1892_v47  ;;  %v2051_v1 = vpop.f32.mrf.mxu1  ;;  %v914_v47 = vadd.f32 %v6033_v10, %v6043_v25 }
 0x16e   : > { %v4733_v11 = vpop.f32.mrf.mxu0 }
 0x16f   : > { %v1894_v29 = vadd.f32 %v4733_v11, %v6205_v61  ;;  %v6351_v21 = vadd.f32 %v2041_v56, %v1891_v24  ;;  %v4786_v33 = vpop.f32.mrf.mxu1  ;;  %v1629_v24 = vadd.f32 %v6230_v6, %v1363_v35  ;;  %v1365_v43 = vadd.f32 %v6248_v51, %v914_v47  ;;  %v7381_v35 = vld [vmem:[#allocation4_spill] sm:$0xff] }
 0x170   : > { %v1782_v20 = vpop.f32.mrf.mxu0 }
 0x171   : > { %v1893_v38 = vadd.f32 %v1782_v20, %v1623_v22  ;;  %v6355_v30 = vadd.f32 %v4783_v28, %v1894_v29  ;;  %v2061_v63 = vpop.f32.mrf.mxu1  ;;  %v924_v22 = vadd.f32 %v6047_v58, %v6063_v46  ;;  %v1631_v20 = vadd.f32 %v6241_v23, %v1365_v43 }
 0x172   : > { %v4736_v54 = vpop.f32.mrf.mxu0 }
 0x173   : > { %v1896_v27 = vadd.f32 %v4736_v54, %v6217_v55  ;;  %v6361_v19 = vadd.f32 %v2051_v1, %v1893_v38  ;;  %v4789_v61 = vpop.f32.mrf.mxu1  ;;  %v1367_v6 = vadd.f32 %v6259_v59, %v924_v22  ;;  %v7377_v54 = vld [vmem:[#allocation3_spill] sm:$0xff] }
 0x174   : > { %v1792_v62 = vpop.f32.mrf.mxu0 }
 0x175   : > { %v1895_v17 = vadd.f32 %v1792_v62, %v1625_v5  ;;  %v6365_v57 = vadd.f32 %v4786_v33, %v1896_v27  ;;  %v2071_v39 = vpop.f32.mrf.mxu1  ;;  %v7378_v5 = vld [vmem:[#allocation2_spill] sm:$0xff]  ;;  %v7379_v62 = vld [vmem:[#allocation15_spill] sm:$0xff] }
 0x176   : > { %v4739_v56 = vpop.f32.mrf.mxu0  ;;  %v934_v32 = vadd.f32 %v7378_v5, %v7377_v54  ;;  %v1633_v45 = vadd.f32 %v7379_v62, %v1367_v6  ;;  %v7386_v54 = vld [vmem:[#allocation12_spill] sm:$0xff]  ;;  %v7387_v5 = vld [vmem:[#allocation10_spill] sm:$0xff] }
 0x177   : > { %v1898_v4 = vadd.f32 %v4739_v56, %v6228_v7  ;;  %v6370_v0 = vadd.f32 %v2061_v63, %v1895_v17  ;;  %v4792_v55 = vpop.f32.mrf.mxu1 }
 0x178   : > { %v1802_v31 = vpop.f32.mrf.mxu0  ;;  %v1369_v23 = vadd.f32 %v6271_v37, %v934_v32  ;;  %v964_v32 = vadd.f32 %v7387_v5, %v7386_v54 }
 0x179   : > { %v1897_v28 = vadd.f32 %v1802_v31, %v1627_v3  ;;  %v6374_v50 = vadd.f32 %v4789_v61, %v1898_v4  ;;  %v2081_v9 = vpop.f32.mrf.mxu1  ;;  %v7380_v3 = vld [vmem:[#allocation6_spill] sm:$0xff] }
 0x17a   : > { %v4742_v2 = vpop.f32.mrf.mxu0  ;;  %v944_v4 = vadd.f32 %v7381_v35, %v7380_v3 }
 0x17b   : > { %v1900_v44 = vadd.f32 %v4742_v2, %v6239_v15  ;;  %v6379_v1 = vadd.f32 %v2071_v39, %v1897_v28  ;;  %v4795_v7 = vpop.f32.mrf.mxu1 }
 0x17c   : > { %v1812_v11 = vpop.f32.mrf.mxu0 }
 0x17d   : > { %v1899_v29 = vadd.f32 %v1812_v11, %v1629_v24  ;;  %v6383_v10 = vadd.f32 %v4792_v55, %v1900_v44  ;;  %v2091_v25 = vpop.f32.mrf.mxu1  ;;  %v1371_v24 = vadd.f32 %v6284_v26, %v944_v4  ;;  %v7384_v11 = vld [vmem:[#allocation7_spill] sm:$0xff] }
 0x17e   : > { %v4745_v33 = vpop.f32.mrf.mxu0 }
 0x17f   : > { %v1902_v51 = vadd.f32 %v4745_v33, %v7376_v60  ;;  %v6388_v38 = vadd.f32 %v2081_v9, %v1899_v29  ;;  %v4798_v15 = vpop.f32.mrf.mxu1  ;;  %v7382_v9 = vld [vmem:[#allocation16_spill] sm:$0xff]  ;;  %v1637_v6 = vadd.f32 %v6276_v53, %v1371_v24  ;;  %v7392_v24 = vld [vmem:[#allocation25_spill] sm:$0xff] }
 0x180   : > { %v1822_v63 = vpop.f32.mrf.mxu0  ;;  %v1635_v2 = vadd.f32 %v7382_v9, %v1369_v23  ;;  %v7391_v9 = vld [vmem:[#allocation22_spill] sm:$0xff] }
 0x181   : > { %v1901_v27 = vadd.f32 %v1822_v63, %v1631_v20  ;;  %v6392_v58 = vadd.f32 %v4795_v7, %v1902_v51  ;;  %v2101_v46 = vpop.f32.mrf.mxu1  ;;  %v7383_v7 = vld [vmem:[#allocation9_spill] sm:$0xff]  ;;  %v7385_v51 = vld [vmem:[#allocation18_spill] sm:$0xff] }
 0x182   : > { %v4748_v61 = vpop.f32.mrf.mxu0  ;;  %v954_v22 = vadd.f32 %v7384_v11, %v7383_v7 }
 0x183   : > { %v1904_v59 = vadd.f32 %v4748_v61, %v6261_v12  ;;  %v6397_v17 = vadd.f32 %v2091_v25, %v1901_v27  ;;  %v4801_v39 = vpop.f32.mrf.mxu1 }
 0x184   : > { %v1832_v56 = vpop.f32.mrf.mxu0  ;;  %v1373_v60 = vadd.f32 %v6296_v49, %v954_v22 }
 0x185   : > { %v1903_v55 = vadd.f32 %v1832_v56, %v1633_v45  ;;  %v6401_v31 = vadd.f32 %v4798_v15, %v1904_v59  ;;  %v2111_v47 = vpop.f32.mrf.mxu1  ;;  %v7388_v45 = vld [vmem:[#allocation19_spill] sm:$0xff]  ;;  %v7389_v59 = vld [vmem:[#allocation24_spill] sm:$0xff] }
 0x186   : > { %v4751_v28 = vpop.f32.mrf.mxu0  ;;  %v1639_v23 = vadd.f32 %v7388_v45, %v1373_v60  ;;  %v1375_v53 = vadd.f32 %v7389_v59, %v964_v32 }
 0x187   : > { %v1906_v37 = vadd.f32 %v4751_v28, %v6274_v42  ;;  %v6406_v43 = vadd.f32 %v2101_v46, %v1903_v55  ;;  %v4804_v12 = vpop.f32.mrf.mxu1 }
 0x188   : > { %v1842_v44 = vpop.f32.mrf.mxu0 }
 0x189   : > { %v1905_v29 = vadd.f32 %v1842_v44, %v1635_v2  ;;  %v6410_v25 = vadd.f32 %v4801_v39, %v1906_v37  ;;  %v2121_v33 = vpop.f32.mrf.mxu1  ;;  %v7390_v39 = vld [vmem:[#allocation21_spill] sm:$0xff]  ;;  %v1641_v2 = vadd.f32 %v7391_v9, %v1375_v53 }
 0x18a   : > { %v4754_v20 = vpop.f32.mrf.mxu0 }
 0x18b   : > { %v1908_v26 = vadd.f32 %v4754_v20, %v7385_v51  ;;  %v6415_v15 = vadd.f32 %v2111_v47, %v1905_v29  ;;  %v4807_v42 = vpop.f32.mrf.mxu1 }
 0x18c   : > { %v1852_v63 = vpop.f32.mrf.mxu0 }
 0x18d   : > { %v1907_v27 = vadd.f32 %v1852_v63, %v1637_v6  ;;  %v6419_v46 = vadd.f32 %v4804_v12, %v1908_v26  ;;  %v2131_v61 = vpop.f32.mrf.mxu1 }
 0x18e   : > { %v4757_v62 = vpop.f32.mrf.mxu0 }
 0x18f   : > { %v1910_v49 = vadd.f32 %v4757_v62, %v7390_v39  ;;  %v6424_v56 = vadd.f32 %v2121_v33, %v1907_v27  ;;  %v6426_v3 = vpop.f32.mrf.mxu1 }
 0x190   : > { %v1862_v35 = vpop.f32.mrf.mxu0 }
 0x191   : > { %v1909_v4 = vadd.f32 %v1862_v35, %v1639_v23  ;;  %v6428_v55 = vadd.f32 %v4807_v42, %v1910_v49  ;;  %v6430_v47 = vpop.f32.mrf.mxu1 }
 0x192   : > { %v4760_v28 = vpop.f32.mrf.mxu0 }
 0x193   : > { %v6434_v37 = vadd.f32 %v4760_v28, %v7392_v24  ;;  %v6436_v12 = vadd.f32 %v2131_v61, %v1909_v4  ;;  %v4865_v44 = vpop.f32.mrf.mxu1 }
 0x194   : > { %v1872_v7 = vpop.f32.mrf.mxu0 }
 0x195   : > { %v6438_v11 = vadd.f32 %v1872_v7, %v1641_v2  ;;  %v2527_v22 = vpop.f32.mrf.mxu1 }
 0x196   : > { %v4815_v29 = vpop.f32.mrf.mxu0 }
 0x197   : > { %v2417_v33 = vadd.f32 %v4815_v29, %v6311_v40  ;;  %v4868_v20 = vpop.f32.mrf.mxu1 }
 0x198   : > { %v2257_v6 = vpop.f32.mrf.mxu0 }
 0x199   : > { %v2416_v60 = vadd.f32 %v2257_v6, %v6316_v41  ;;  %v6442_v51 = vadd.f32 %v4865_v44, %v2417_v33  ;;  %v2537_v26 = vpop.f32.mrf.mxu1 }
 0x19a   : > { %v4818_v42 = vpop.f32.mrf.mxu0 }
 0x19b   : > { %v2419_v63 = vadd.f32 %v4818_v42, %v6318_v48  ;;  %v6445_v54 = vadd.f32 %v2527_v22, %v2416_v60  ;;  %v4871_v5 = vpop.f32.mrf.mxu1 }
 0x19c   : > { %v2267_v32 = vpop.f32.mrf.mxu0 }
 0x19d   : > { %v2418_v27 = vadd.f32 %v2267_v32, %v6323_v34  ;;  %v6448_v61 = vadd.f32 %v4868_v20, %v2419_v63  ;;  %v2547_v62 = vpop.f32.mrf.mxu1 }
 0x19e   : > { %v4821_v40 = vpop.f32.mrf.mxu0 }
 0x19f   : > { %v2421_v45 = vadd.f32 %v4821_v40, %v6325_v36  ;;  %v6451_v23 = vadd.f32 %v2537_v26, %v2418_v27  ;;  %v4874_v59 = vpop.f32.mrf.mxu1 }
 0x1a0   : > { %v2277_v41 = vpop.f32.mrf.mxu0 }
 0x1a1   : > { %v2420_v53 = vadd.f32 %v2277_v41, %v6330_v8  ;;  %v6454_v39 = vadd.f32 %v4871_v5, %v2421_v45  ;;  %v2557_v4 = vpop.f32.mrf.mxu1 }
 0x1a2   : > { %v4824_v48 = vpop.f32.mrf.mxu0 }
 0x1a3   : > { %v2423_v49 = vadd.f32 %v4824_v48, %v6332_v14  ;;  %v6457_v35 = vadd.f32 %v2547_v62, %v2420_v53  ;;  %v6485_v60 = vpop.f32.mrf.mxu1 }
 0x1a4   : > { %v2287_v34 = vpop.f32.mrf.mxu0 }
 0x1a5   : > { %v2422_v28 = vadd.f32 %v2287_v34, %v6337_v18  ;;  %v6460_v9 = vadd.f32 %v4874_v59, %v2423_v49 }
 0x1a6   : > { %v4827_v36 = vpop.f32.mrf.mxu0 }
 0x1a7   : > { %v6463_v2 = vadd.f32 %v4827_v36, %v6339_v52  ;;  %v6465_v24 = vadd.f32 %v2557_v4, %v2422_v28 }
 0x1a8   : > { %v2297_v8 = vpop.f32.mrf.mxu0 }
 0x1a9   : > { %v6468_v44 = vadd.f32 %v2297_v8, %v6344_v16 }
 0x1aa   : > { %v4830_v7 = vpop.f32.mrf.mxu0 }
 0x1ab   : > { %v6471_v14 = vadd.f32 %v4830_v7, %v6346_v13 }
 0x1ac   : > { %v2307_v22 = vpop.f32.mrf.mxu0 }
 0x1ad   : > { %v6474_v29 = vadd.f32 %v2307_v22, %v6351_v21 }
 0x1ae   : > { %v4833_v18 = vpop.f32.mrf.mxu0 }
 0x1af   : > { %v6477_v33 = vadd.f32 %v4833_v18, %v6355_v30  ;;  %v3059_v30 = vld [vmem:[%s7166_s3 + $0x8] sm:$0xff] }
 0x1b0   : > { %v2317_v52 = vpop.f32.mrf.mxu0  ;;  %3138 = vmatprep.mubr.f32.mxu1 %v3059_v30 }
 0x1b1   : > { %v6480_v20 = vadd.f32 %v2317_v52, %v6361_v19  ;;  %v6496_v19 = vpop.f32.mrf.mxu1 }
 0x1b2   : > { %v4836_v6 = vpop.f32.mrf.mxu0 }
 0x1b3   : > { %v6483_v16 = vadd.f32 %v4836_v6, %v6365_v57 }
 0x1b4   : > { %v2327_v13 = vpop.f32.mrf.mxu0 }
 0x1b5   : > { %v6488_v26 = vadd.f32 %v2327_v13, %v6370_v0  ;;  %v6504_v0 = vpop.f32.mrf.mxu1 }
 0x1b6   : > { %v4839_v21 = vpop.f32.mrf.mxu0 }
 0x1b7   : > { %v6491_v42 = vadd.f32 %v4839_v21, %v6374_v50  ;;  %v6512_v45 = vpop.f32.mrf.mxu1 }
 0x1b8   : > { %v2337_v63 = vpop.f32.mrf.mxu0 }
 0x1b9   : > { %7393 = vst [vmem:[#allocation28_spill] sm:$0xff] %v6491_v42  ;;  %v6499_v57 = vadd.f32 %v2337_v63, %v6379_v1  ;;  %v6520_v53 = vpop.f32.mrf.mxu1  ;;  %v3956_v63 = vld [vmem:[%s7166_s3 + $0x108] sm:$0xff] }
 0x1ba   : > { %v4842_v5 = vpop.f32.mrf.mxu0  ;;  %3390 = vmatprep.mubr.f32.mxu0 %v3956_v63 }
 0x1bb   : > { %7394 = vst [vmem:[#allocation29_spill] sm:$0xff] %v6499_v57  ;;  %v6502_v32 = vadd.f32 %v4842_v5, %v6383_v10  ;;  %v6528_v34 = vpop.f32.mrf.mxu1 }
 0x1bc   : > { %v2347_v27 = vpop.f32.mrf.mxu0 }
 0x1bd   : > { %7395 = vst [vmem:[#allocation31_spill] sm:$0xff] %v6502_v32  ;;  %v6507_v50 = vadd.f32 %v2347_v27, %v6388_v38  ;;  %v6536_v36 = vpop.f32.mrf.mxu1 }
 0x1be   : > { %v4845_v62 = vpop.f32.mrf.mxu0 }
 0x1bf   : > { %7396 = vst [vmem:[#allocation32_spill] sm:$0xff] %v6507_v50  ;;  %v6510_v40 = vadd.f32 %v4845_v62, %v6392_v58  ;;  %v6544_v22 = vpop.f32.mrf.mxu1 }
 0x1c0   : > { %v2357_v41 = vpop.f32.mrf.mxu0 }
 0x1c1   : > { %7397 = vst [vmem:[#allocation33_spill] sm:$0xff] %v6510_v40  ;;  %v6515_v1 = vadd.f32 %v2357_v41, %v6397_v17  ;;  %v6549_v6 = vpop.f32.mrf.mxu1 }
 0x1c2   : > { %v4848_v59 = vpop.f32.mrf.mxu0  ;;  %7399 = vst [vmem:[#allocation8_spill] sm:$0xff] %v6549_v6 }
 0x1c3   : > { %7398 = vst [vmem:[#allocation5_spill] sm:$0xff] %v6515_v1  ;;  %v6518_v10 = vadd.f32 %v4848_v59, %v6401_v31 }
 0x1c4   : > { %v2367_v48 = vpop.f32.mrf.mxu0 }
 0x1c5   : > { %v6523_v38 = vadd.f32 %v2367_v48, %v6406_v43 }
 0x1c6   : > { %v4851_v49 = vpop.f32.mrf.mxu0 }
 0x1c7   : > { %v6526_v58 = vadd.f32 %v4851_v49, %v6410_v25 }
 0x1c8   : > { %v2377_v4 = vpop.f32.mrf.mxu0 }
 0x1c9   : > { %v6531_v17 = vadd.f32 %v2377_v4, %v6415_v15 }
 0x1ca   : > { %v4854_v28 = vpop.f32.mrf.mxu0 }
 0x1cb   : > { %v6534_v31 = vadd.f32 %v4854_v28, %v6419_v46 }
 0x1cc   : > { %v2387_v8 = vpop.f32.mrf.mxu0 }
 0x1cd   : > { %v6539_v43 = vadd.f32 %v2387_v8, %v6424_v56  ;;  %v6554_v56 = vpop.f32.mrf.mxu1 }
 0x1ce   : > { %v4857_v7 = vpop.f32.mrf.mxu0  ;;  %7401 = vst [vmem:[#allocation14_spill] sm:$0xff] %v6554_v56 }
 0x1cf   : > { %v6542_v25 = vadd.f32 %v4857_v7, %v6428_v55  ;;  %v6565_v27 = vpop.f32.mrf.mxu1 }
 0x1d0   : > { %v2397_v18 = vpop.f32.mrf.mxu0  ;;  %7404 = vst [vmem:[#allocation23_spill] sm:$0xff] %v6565_v27 }
 0x1d1   : > { %v6547_v15 = vadd.f32 %v2397_v18, %v6436_v12 }
 0x1d2   : > { %v4860_v52 = vpop.f32.mrf.mxu0 }
 0x1d4   : > { %v2407_v46 = vpop.f32.mrf.mxu0 }
 0x1d6   : > { %v4915_v13 = vpop.f32.mrf.mxu0 }
 0x1d7   : > { %v6552_v21 = vadd.f32 %v4915_v13, %v6442_v51 }
 0x1d8   : > { %v2796_v30 = vpop.f32.mrf.mxu0 }
 0x1d9   : > { %7400 = vst [vmem:[#allocation11_spill] sm:$0xff] %v6552_v21  ;;  %v6557_v55 = vadd.f32 %v2796_v30, %v6445_v54  ;;  %v6573_v54 = vpop.f32.mrf.mxu1 }
 0x1da   : > { %v4918_v12 = vpop.f32.mrf.mxu0  ;;  %7407 = vst [vmem:[#allocation30_spill] sm:$0xff] %v6573_v54 }
 0x1db   : > { %7402 = vst [vmem:[#allocation17_spill] sm:$0xff] %v6557_v55  ;;  %v6563_v5 = vadd.f32 %v4918_v12, %v6448_v61  ;;  %v6581_v28 = vpop.f32.mrf.mxu1 }
 0x1dc   : > { %v2806_v62 = vpop.f32.mrf.mxu0  ;;  %7410 = vst [vmem:[#allocation36_spill] sm:$0xff] %v6581_v28 }
 0x1dd   : > { %7403 = vst [vmem:[#allocation20_spill] sm:$0xff] %v6563_v5  ;;  %v6568_v51 = vadd.f32 %v2806_v62, %v6451_v23 }
 0x1de   : > { %v4921_v41 = vpop.f32.mrf.mxu0 }
 0x1df   : > { %7405 = vst [vmem:[#allocation26_spill] sm:$0xff] %v6568_v51  ;;  %v6571_v59 = vadd.f32 %v4921_v41, %v6454_v39  ;;  %v6588_v39 = vpop.f32.mrf.mxu1 }
 0x1e0   : > { %v2816_v48 = vpop.f32.mrf.mxu0  ;;  %7412 = vst [vmem:[#allocation38_spill] sm:$0xff] %v6588_v39 }
 0x1e1   : > { %7406 = vst [vmem:[#allocation27_spill] sm:$0xff] %v6571_v59  ;;  %v6576_v49 = vadd.f32 %v2816_v48, %v6457_v35  ;;  %v6594_v35 = vpop.f32.mrf.mxu1 }
 0x1e2   : > { %v4924_v4 = vpop.f32.mrf.mxu0 }
 0x1e3   : > { %7408 = vst [vmem:[#allocation34_spill] sm:$0xff] %v6576_v49  ;;  %v6579_v61 = vadd.f32 %v4924_v4, %v6460_v9  ;;  %v6598_v63 = vpop.f32.mrf.mxu1 }
 0x1e4   : > { %v2826_v8 = vpop.f32.mrf.mxu0 }
 0x1e5   : > { %7409 = vst [vmem:[#allocation35_spill] sm:$0xff] %v6579_v61  ;;  %v6584_v23 = vadd.f32 %v2826_v8, %v6465_v24  ;;  %v4901_v41 = vpop.f32.mrf.mxu1 }
 0x1e6   : > { %v6586_v7 = vpop.f32.mrf.mxu0 }
 0x1e7   : > { %7411 = vst [vmem:[#allocation37_spill] sm:$0xff] %v6584_v23  ;;  %v6602_v4 = vpop.f32.mrf.mxu1  ;;  %v2180_v23 = vadd.f32 %v6430_v47, %v6438_v11 }
 0x1e8   : > { %v6590_v18 = vpop.f32.mrf.mxu0 }
 0x1e9   : > { %v4904_v21 = vpop.f32.mrf.mxu1  ;;  %v2446_v61 = vadd.f32 %v2407_v46, %v2180_v23  ;;  %v2697_v46 = vadd.f32 %v6504_v0, %v6471_v14  ;;  %v2711_v0 = vadd.f32 %v4901_v41, %v6526_v58  ;;  %v2710_v58 = vadd.f32 %v6602_v4, %v6531_v17 }
 0x1ea   : > { %v6592_v13 = vpop.f32.mrf.mxu0  ;;  %v2709_v17 = vadd.f32 %v6594_v35, %v6518_v10  ;;  %v2708_v10 = vadd.f32 %v6598_v63, %v6523_v38  ;;  %v7421_v38 = vld [vmem:[#allocation36_spill] sm:$0xff] }
 0x1eb   : > { %v2657_v56 = vpop.f32.mrf.mxu1 }
 0x1ec   : > { %v6596_v30 = vpop.f32.mrf.mxu0 }
 0x1ed   : > { %v4907_v6 = vpop.f32.mrf.mxu1 }
 0x1ee   : > { %v4933_v9 = vpop.f32.mrf.mxu0  ;;  %v2715_v28 = vadd.f32 %v4907_v6, %v6542_v25 }
 0x1ef   : > { %v2667_v59 = vpop.f32.mrf.mxu1 }
 0x1f0   : > { %v2856_v12 = vpop.f32.mrf.mxu0  ;;  %v2714_v11 = vadd.f32 %v2667_v59, %v6547_v15 }
 0x1f1   : > { %v4910_v50 = vpop.f32.mrf.mxu1 }
 0x1f2   : > { %v4936_v62 = vpop.f32.mrf.mxu0 }
 0x1f3   : > { %v2677_v39 = vpop.f32.mrf.mxu1 }
 0x1f4   : > { %v2866_v24 = vpop.f32.mrf.mxu0 }
 0x1f6   : > { %v6600_v48 = vpop.f32.mrf.mxu0 }
 0x1f7   : > { %7413 = vst [vmem:[#allocation39_spill] sm:$0xff] %v6600_v48 }
 0x1f8   : > { %v6604_v8 = vpop.f32.mrf.mxu0 }
 0x1f9   : > { %7414 = vst [vmem:[#allocation40_spill] sm:$0xff] %v6604_v8 }
 0x1fa   : > { %v6606_v55 = vpop.f32.mrf.mxu0 }
 0x1fb   : > { %7415 = vst [vmem:[#allocation41_spill] sm:$0xff] %v6606_v55  ;;  %v2181_v55 = vadd.f32 %v6426_v3, %v6434_v37  ;;  %v2699_v37 = vadd.f32 %v6520_v53, %v6477_v33  ;;  %v2713_v33 = vadd.f32 %v4904_v21, %v6534_v31  ;;  %v2966_v31 = vadd.f32 %v6592_v13, %v2697_v46 }
 0x1fc   : > { %v6608_v51 = vpop.f32.mrf.mxu0 }
 0x1fd   : > { %7416 = vst [vmem:[#allocation42_spill] sm:$0xff] %v6608_v51  ;;  %v2447_v27 = vadd.f32 %v4860_v52, %v2181_v55  ;;  %v2716_v52 = vadd.f32 %v2677_v39, %v2446_v61  ;;  %v2968_v25 = vadd.f32 %v4933_v9, %v2699_v37  ;;  %v2712_v55 = vadd.f32 %v2657_v56, %v6539_v43 }
 0x1fe   : > { %v6610_v5 = vpop.f32.mrf.mxu0 }
 0x1ff   : > { %7417 = vst [vmem:[#allocation43_spill] sm:$0xff] %v6610_v5  ;;  %v2700_v5 = vadd.f32 %v6544_v22, %v6488_v26  ;;  %v2717_v3 = vadd.f32 %v4910_v50, %v2447_v27 }
 0x200   : > { %v6612_v57 = vpop.f32.mrf.mxu0 }
 0x201   : > { %7418 = vst [vmem:[#allocation44_spill] sm:$0xff] %v6612_v57  ;;  %v2701_v57 = vadd.f32 %v6536_v36, %v6483_v16  ;;  %v2969_v40 = vadd.f32 %v2866_v24, %v2700_v5  ;;  %v6635_v16 = vld [vmem:[%s7165_s2] ss:$0 sm:$0xff]  ;;  %v7420_v24 = vld [vmem:[#allocation33_spill] sm:$0xff] }
 0x202   : > { %v6614_v49 = vpop.f32.mrf.mxu0  ;;  %v3007_v21 = vadd.f32 %v6635_v16, %v2968_v25  ;;  %v3005_v39 = vadd.f32 %v6635_v16, %v2966_v31  ;;  %v2707_v63 = vadd.f32 %v7421_v38, %v7420_v24  ;;  %v7432_v31 = vld [vmem:[#allocation30_spill] sm:$0xff] }
 0x203   : > { %v2970_v1 = vadd.f32 %v4936_v62, %v2701_v57  ;;  %v2698_v57 = vadd.f32 %v6528_v34, %v6480_v20  ;;  %v3008_v5 = vadd.f32 %v6635_v16, %v2969_v40 }
 0x204   : > { %v6616_v42 = vpop.f32.mrf.mxu0  ;;  %v6681_v13 = vmax.f32 %v3007_v21, 0.0  ;;  %v6708_v41 = vmax.f32 %v3005_v39, 0.0 }
 0x205   : > { %7419 = vst [vmem:[#allocation45_spill] sm:$0xff] %v6616_v42  ;;  %v3009_v50 = vadd.f32 %v6635_v16, %v2970_v1  ;;  %v6666_v61 = vmax.f32 %v3008_v5, 0.0 }
 0x206   : > { %v4951_v48 = vpop.f32.mrf.mxu0 }
 0x207   : > { %v6654_v14 = vmax.f32 %v3009_v50, 0.0  ;;  %v7426_v50 = vld [vmem:[#allocation35_spill] sm:$0xff] }
 0x208   : > { %v6618_v54 = vpop.f32.mrf.mxu0  ;;  %v7429_v46 = vld [vmem:[#allocation44_spill] sm:$0xff] }
 0x20a   : > { %v4954_v8 = vpop.f32.mrf.mxu0 }
 0x20b   : > { %v2982_v27 = vadd.f32 %v4954_v8, %v2713_v33 }
 0x20c   : > { %v2926_v51 = vpop.f32.mrf.mxu0 }
 0x20d   : > { %v2981_v43 = vadd.f32 %v2926_v51, %v2712_v55  ;;  %v2980_v51 = vadd.f32 %v4951_v48, %v2711_v0  ;;  %v7433_v0 = vld [vmem:[#allocation41_spill] sm:$0xff] }
 0x20e   : > { %v4957_v32 = vpop.f32.mrf.mxu0 }
 0x20f   : > { %v2984_v26 = vadd.f32 %v4957_v32, %v2715_v28  ;;  %v2967_v32 = vadd.f32 %v2856_v12, %v2698_v57  ;;  %v3021_v28 = vadd.f32 %v6635_v16, %v2982_v27  ;;  %v3020_v9 = vadd.f32 %v6635_v16, %v2981_v43  ;;  %v7430_v27 = vld [vmem:[#allocation37_spill] sm:$0xff] }
 0x210   : > { %v2936_v42 = vpop.f32.mrf.mxu0  ;;  %v3019_v35 = vadd.f32 %v6635_v16, %v2980_v51  ;;  %v7435_v51 = vld [vmem:[#allocation28_spill] sm:$0xff] }
 0x211   : > { %v2983_v53 = vadd.f32 %v2936_v42, %v2714_v11  ;;  %v3023_v20 = vadd.f32 %v6635_v16, %v2984_v26  ;;  %v2696_v42 = vadd.f32 %v6512_v45, %v6474_v29  ;;  %v2695_v29 = vadd.f32 %v6485_v60, %v6463_v2  ;;  %v7424_v11 = vld [vmem:[#allocation38_spill] sm:$0xff]  ;;  %v7425_v26 = vld [vmem:[#allocation43_spill] sm:$0xff] }
 0x212   : > { %v4960_v47 = vpop.f32.mrf.mxu0  ;;  %v3006_v59 = vadd.f32 %v6635_v16, %v2967_v32  ;;  %v2694_v2 = vadd.f32 %v6496_v19, %v6468_v44  ;;  %v6703_v62 = vmax.f32 %v3021_v28, 0.0  ;;  %v6716_v8 = vmax.f32 %v3020_v9, 0.0  ;;  %v7436_v28 = vld [vmem:[#allocation8_spill] sm:$0xff]  ;;  %v7438_v9 = vld [vmem:[#allocation34_spill] sm:$0xff] }
 0x213   : > { %v2986_v36 = vadd.f32 %v4960_v47, %v2717_v3  ;;  %v3022_v40 = vadd.f32 %v6635_v16, %v2983_v53  ;;  %v2965_v45 = vadd.f32 %v6596_v30, %v2696_v42  ;;  %v6673_v23 = vmax.f32 %v3023_v20, 0.0  ;;  %v7423_v47 = vld [vmem:[#allocation5_spill] sm:$0xff]  ;;  %v7427_v53 = vld [vmem:[#allocation31_spill] sm:$0xff]  ;;  %v7431_v42 = vld [vmem:[#allocation32_spill] sm:$0xff] }
 0x214   : > { %v2946_v22 = vpop.f32.mrf.mxu0  ;;  %v2964_v60 = vadd.f32 %v6586_v7, %v2695_v29  ;;  %v2979_v30 = vadd.f32 %v6618_v54, %v2710_v58  ;;  %v2963_v44 = vadd.f32 %v6590_v18, %v2694_v2  ;;  %v6695_v7 = vmax.f32 %v3006_v59, 0.0 }
 0x215   : > { %v3025_v15 = vadd.f32 %v6635_v16, %v2986_v36  ;;  %v2985_v6 = vadd.f32 %v2946_v22, %v2716_v52  ;;  %v6689_v12 = vmax.f32 %v3022_v40, 0.0  ;;  %v3004_v19 = vadd.f32 %v6635_v16, %v2965_v45  ;;  %v7434_v45 = vld [vmem:[#allocation27_spill] sm:$0xff] }
 0x216   : > { %v2978_v54 = vadd.f32 %v6614_v49, %v2709_v17  ;;  %v3003_v18 = vadd.f32 %v6635_v16, %v2964_v60  ;;  %v7422_v49 = vld [vmem:[#allocation45_spill] sm:$0xff]  ;;  %v3018_v4 = vadd.f32 %v6635_v16, %v2979_v30  ;;  %v3002_v3 = vadd.f32 %v6635_v16, %v2963_v44  ;;  %v7437_v60 = vld [vmem:[#allocation42_spill] sm:$0xff] }
 0x217   : > { %v6647_v34 = vmax.f32 %v3025_v15, 0.0  ;;  %v3024_v1 = vadd.f32 %v6635_v16, %v2985_v6  ;;  %v2977_v48 = vadd.f32 %v7422_v49, %v2708_v10  ;;  %v6721_v37 = vmax.f32 %v3004_v19, 0.0  ;;  %v7428_v15 = vld [vmem:[#allocation23_spill] sm:$0xff]  ;;  %v7439_v10 = vld [vmem:[#allocation29_spill] sm:$0xff]  ;;  %v7442_v49 = vld [vmem:[#allocation20_spill] sm:$0xff] }
 0x218   : > { %v2706_v52 = vadd.f32 %v7424_v11, %v7423_v47  ;;  %v2976_v36 = vadd.f32 %v7425_v26, %v2707_v63  ;;  %v3017_v57 = vadd.f32 %v6635_v16, %v2978_v54  ;;  %v6729_v25 = vmax.f32 %v3019_v35, 0.0  ;;  %v7440_v54 = vld [vmem:[#allocation14_spill] sm:$0xff] }
 0x219   : > { %v6658_v56 = vmax.f32 %v3024_v1, 0.0  ;;  %4287 = vmatprep.subr.mxu1 %v6647_v34  ;;  %4399 = vmatprep.subr.mxu0 %v6647_v34  ;;  %v3001_v22 = vadd.f32 %v6635_v16, %v7426_v50  ;;  %v6735_v33 = vmax.f32 %v3003_v18, 0.0  ;;  %v2705_v6 = vadd.f32 %v7428_v15, %v7427_v53  ;;  %v7441_v18 = vld [vmem:[#allocation39_spill] sm:$0xff]  ;;  %v7444_v26 = vld [vmem:[#allocation26_spill] sm:$0xff] }
 0x21a   : > { %4288 = vmatpush3.msra.mxu1 %v6654_v14  ;;  %4400 = vmatpush3.msra.mxu0 %v6654_v14  ;;  %v2975_v55 = vadd.f32 %v7429_v46, %v2706_v52  ;;  %v3016_v32 = vadd.f32 %v6635_v16, %v2977_v48  ;;  %v6743_v5 = vmax.f32 %v3018_v4, 0.0  ;;  %v3000_v20 = vadd.f32 %v6635_v16, %v7430_v27  ;;  %v7445_v53 = vld [vmem:[#allocation11_spill] sm:$0xff] }
 0x21b   : > { %4289 = vmatprep.subr.mxu1 %v6658_v56  ;;  %4401 = vmatprep.subr.mxu0 %v6658_v56  ;;  %v6749_v1 = vmax.f32 %v3002_v3, 0.0  ;;  %v2704_v21 = vadd.f32 %v7432_v31, %v7431_v42  ;;  %v2974_v43 = vadd.f32 %v7433_v0, %v2705_v6  ;;  %v3015_v40 = vadd.f32 %v6635_v16, %v2976_v36  ;;  %v7443_v3 = vld [vmem:[#allocation40_spill] sm:$0xff]  ;;  %v3058_v0 = vld [vmem:[%s7166_s3] sm:$0xff] }
 0x21c   : > { %4290 = vmatpush3.msra.mxu1 %v6666_v61  ;;  %4402 = vmatpush3.msra.mxu0 %v6666_v61  ;;  %v6757_v29 = vmax.f32 %v3017_v57, 0.0  ;;  %v2999_v59 = vadd.f32 %v6635_v16, %v7434_v45  ;;  %v6763_v58 = vmax.f32 %v3001_v22, 0.0  ;;  %v2703_v2 = vadd.f32 %v7436_v28, %v7435_v51  ;;  %v3958_v45 = vld [vmem:[%s7166_s3 + $0x118] sm:$0xff]  ;;  %v3063_v51 = vld [vmem:[%s7166_s3 + $0x28] sm:$0xff]  ;;  %v3957_v28 = vld [vmem:[%s7166_s3 + $0x110] sm:$0xff] }
 0x21d   : > { %4291 = vmatprep.subr.mxu1 %v6673_v23  ;;  %4403 = vmatprep.subr.mxu0 %v6673_v23  ;;  %v2973_v39 = vadd.f32 %v7437_v60, %v2704_v21  ;;  %v3014_v17 = vadd.f32 %v6635_v16, %v2975_v55  ;;  %v6771_v30 = vmax.f32 %v3016_v32, 0.0  ;;  %v2998_v44 = vadd.f32 %v6635_v16, %v7438_v9  ;;  %v7446_v32 = vld [vmem:[#allocation17_spill] sm:$0xff]  ;;  %v3062_v60 = vld [vmem:[%s7166_s3 + $0x20] sm:$0xff] }
 0x21e   : > { %4292 = vmatpush3.msra.mxu1 %v6681_v13  ;;  %4404 = vmatpush3.msra.mxu0 %v6681_v13  ;;  %v6777_v19 = vmax.f32 %v3000_v20, 0.0  ;;  %v2702_v35 = vadd.f32 %v7440_v54, %v7439_v10  ;;  %v2972_v24 = vadd.f32 %v7441_v18, %v2703_v2  ;;  %v3013_v38 = vadd.f32 %v6635_v16, %v2974_v43  ;;  %v3061_v43 = vld [vmem:[%s7166_s3 + $0x18] sm:$0xff]  ;;  %v3960_v2 = vld [vmem:[%s7166_s3 + $0x128] sm:$0xff]  ;;  %v3961_v54 = vld [vmem:[%s7166_s3 + $0x130] sm:$0xff] }
 0x21f   : > { %4293 = vmatprep.subr.mxu1 %v6689_v12  ;;  %4405 = vmatprep.subr.mxu0 %v6689_v12  ;;  %v6785_v63 = vmax.f32 %v3015_v40, 0.0  ;;  %v2997_v48 = vadd.f32 %v6635_v16, %v7442_v49  ;;  %v6791_v4 = vmax.f32 %v2999_v59, 0.0  ;;  %v3012_v11 = vadd.f32 %v6635_v16, %v2973_v39  ;;  %v3955_v40 = vld [vmem:[%s7166_s3 + $0x100] sm:$0xff]  ;;  %v3060_v59 = vld [vmem:[%s7166_s3 + $0x10] sm:$0xff]  ;;  %v3065_v39 = vld [vmem:[%s7166_s3 + $0x38] sm:$0xff] }
 0x220   : > { %4294 = vmatpush3.msra.mxu1 %v6695_v7  ;;  %4406 = vmatpush3.msra.mxu0 %v6695_v7  ;;  %v2971_v47 = vadd.f32 %v7443_v3, %v2702_v35  ;;  %v6797_v52 = vmax.f32 %v3014_v17, 0.0  ;;  %v2996_v36 = vadd.f32 %v6635_v16, %v7444_v26  ;;  %v6803_v57 = vmax.f32 %v2998_v44, 0.0  ;;  %v3959_v17 = vld [vmem:[%s7166_s3 + $0x120] sm:$0xff]  ;;  %v3962_v9 = vld [vmem:[%s7166_s3 + $0x138] sm:$0xff]  ;;  %v3064_v44 = vld [vmem:[%s7166_s3 + $0x30] sm:$0xff] }
 0x221   : > { %4295 = vmatprep.subr.mxu1 %v6703_v62  ;;  %4407 = vmatprep.subr.mxu0 %v6703_v62  ;;  %v3011_v50 = vadd.f32 %v6635_v16, %v2972_v24  ;;  %v6808_v22 = vmax.f32 %v3013_v38, 0.0  ;;  %v2995_v15 = vadd.f32 %v6635_v16, %v7445_v53  ;;  %v6814_v6 = vmax.f32 %v2997_v48, 0.0  ;;  %v3067_v10 = vld [vmem:[%s7166_s3 + $0x48] sm:$0xff]  ;;  %v3066_v18 = vld [vmem:[%s7166_s3 + $0x40] sm:$0xff]  ;;  %v3069_v24 = vld [vmem:[%s7166_s3 + $0x58] sm:$0xff] }
 0x222   : > { %4296 = vmatpush3.msra.mxu1 %v6708_v41  ;;  %4408 = vmatpush3.msra.mxu0 %v6708_v41  ;;  %v3010_v46 = vadd.f32 %v6635_v16, %v2971_v47  ;;  %v6819_v55 = vmax.f32 %v3012_v11, 0.0  ;;  %v2994_v27 = vadd.f32 %v6635_v16, %v7446_v32  ;;  %v6825_v20 = vmax.f32 %v2996_v36, 0.0  ;;  %v3964_v35 = vld [vmem:[%s7166_s3 + $0x148] sm:$0xff]  ;;  %v3963_v38 = vld [vmem:[%s7166_s3 + $0x140] sm:$0xff]  ;;  %v3966_v49 = vld [vmem:[%s7166_s3 + $0x158] sm:$0xff] }
 0x223   : > { %4297 = vmatprep.subr.mxu1 %v6716_v8  ;;  %4409 = vmatprep.subr.mxu0 %v6716_v8  ;;  %v6829_v42 = vmax.f32 %v3011_v50, 0.0  ;;  %v6833_v31 = vmax.f32 %v2995_v15, 0.0  ;;  %v3068_v48 = vld [vmem:[%s7166_s3 + $0x50] sm:$0xff]  ;;  %v3071_v3 = vld [vmem:[%s7166_s3 + $0x68] sm:$0xff]  ;;  %v3070_v26 = vld [vmem:[%s7166_s3 + $0x60] sm:$0xff] }
 0x224   : > { %4298 = vmatpush3.msra.mxu1 %v6721_v37  ;;  %4410 = vmatpush3.msra.mxu0 %v6721_v37  ;;  %v6837_v21 = vmax.f32 %v3010_v46, 0.0  ;;  %v6841_v16 = vmax.f32 %v2994_v27, 0.0  ;;  %v3965_v47 = vld [vmem:[%s7166_s3 + $0x150] sm:$0xff]  ;;  %v3968_v11 = vld [vmem:[%s7166_s3 + $0x168] sm:$0xff]  ;;  %v3073_v36 = vld [vmem:[%s7166_s3 + $0x78] sm:$0xff] }
 0x225   : > { %4299 = vmatprep.subr.mxu1 %v6729_v25  ;;  %4411 = vmatprep.subr.mxu0 %v6729_v25  ;;  %v3967_v50 = vld [vmem:[%s7166_s3 + $0x160] sm:$0xff]  ;;  %v3970_v53 = vld [vmem:[%s7166_s3 + $0x178] sm:$0xff]  ;;  %v3072_v15 = vld [vmem:[%s7166_s3 + $0x70] sm:$0xff] }
 0x226   : > { %4300 = vmatpush3.msra.mxu1 %v6735_v33  ;;  %4412 = vmatpush3.msra.mxu0 %v6735_v33  ;;  %v3940_v46 = vld [vmem:[%s7166_s3 + $0x88] sm:$0xff]  ;;  %v3969_v32 = vld [vmem:[%s7166_s3 + $0x170] sm:$0xff]  ;;  %v3939_v27 = vld [vmem:[%s7166_s3 + $0x80] sm:$0xff] }
 0x227   : > { %4301 = vmatprep.subr.mxu1 %v6743_v5  ;;  %4413 = vmatprep.subr.mxu0 %v6743_v5 }
 0x228   : > { %4302 = vmatpush3.msra.mxu1 %v6749_v1  ;;  %4414 = vmatpush3.msra.mxu0 %v6749_v1 }
 0x229   : > { %4303 = vmatprep.subr.mxu1 %v6757_v29  ;;  %4415 = vmatprep.subr.mxu0 %v6757_v29 }
 0x22a   : > { %4304 = vmatpush3.msra.mxu1 %v6763_v58  ;;  %4416 = vmatpush3.msra.mxu0 %v6763_v58 }
 0x22b   : > { %4305 = vmatprep.subr.mxu1 %v6771_v30  ;;  %4417 = vmatprep.subr.mxu0 %v6771_v30 }
 0x22c   : > { %4306 = vmatpush3.msra.mxu1 %v6777_v19  ;;  %4418 = vmatpush3.msra.mxu0 %v6777_v19 }
 0x22d   : > { %4307 = vmatprep.subr.mxu1 %v6785_v63  ;;  %4419 = vmatprep.subr.mxu0 %v6785_v63 }
 0x22e   : > { %4308 = vmatpush3.msra.mxu1 %v6791_v4  ;;  %4420 = vmatpush3.msra.mxu0 %v6791_v4 }
 0x22f   : > { %4309 = vmatprep.subr.mxu1 %v6797_v52  ;;  %4421 = vmatprep.subr.mxu0 %v6797_v52 }
 0x230   : > { %4310 = vmatpush3.msra.mxu1 %v6803_v57  ;;  %4422 = vmatpush3.msra.mxu0 %v6803_v57 }
 0x231   : > { %4311 = vmatprep.subr.mxu1 %v6808_v22  ;;  %4423 = vmatprep.subr.mxu0 %v6808_v22 }
 0x232   : > { %4312 = vmatpush3.msra.mxu1 %v6814_v6  ;;  %4424 = vmatpush3.msra.mxu0 %v6814_v6 }
 0x233   : > { %4313 = vmatprep.subr.mxu1 %v6819_v55  ;;  %4425 = vmatprep.subr.mxu0 %v6819_v55 }
 0x234   : > { %4314 = vmatpush3.msra.mxu1 %v6825_v20  ;;  %4426 = vmatpush3.msra.mxu0 %v6825_v20 }
 0x235   : > { %4315 = vmatprep.subr.mxu1 %v6829_v42  ;;  %4427 = vmatprep.subr.mxu0 %v6829_v42 }
 0x236   : > { %4316 = vmatpush3.msra.mxu1 %v6833_v31  ;;  %4428 = vmatpush3.msra.mxu0 %v6833_v31 }
 0x237   : > { %4317 = vmatprep.subr.mxu1 %v6837_v21  ;;  %4429 = vmatprep.subr.mxu0 %v6837_v21 }
 0x238   : > { %4318 = vmatpush3.msra.mxu1 %v6841_v16  ;;  %4430 = vmatpush3.msra.mxu0 %v6841_v16 }
 0x239   : > { %3139 = vmatmul.mubr.f32.vlgmr.msra.gmra.mxu1 %v3058_v0  ;;  %4343 = vmatprep.subr.mxu1 %v6647_v34  ;;  %v3942_v0 = vld [vmem:[%s7166_s3 + $0x98] sm:$0xff] }
 0x23a   : > { %4344 = vmatpush3.msra.mxu1 %v6654_v14  ;;  %3143 = vmatprep.mubr.f32.mxu1 %v3061_v43  ;;  %v3941_v43 = vld [vmem:[%s7166_s3 + $0x90] sm:$0xff] }
 0x23b   : > { %4345 = vmatprep.subr.mxu1 %v6658_v56  ;;  %3391 = vmatmul.mubr.f32.vlgmr.msra.gmra.mxu0 %v3955_v40  ;;  %v3944_v40 = vld [vmem:[%s7166_s3 + $0xa8] sm:$0xff] }
 0x23c   : > { %4346 = vmatpush3.msra.mxu1 %v6666_v61  ;;  %3395 = vmatprep.mubr.f32.mxu0 %v3958_v45 }
 0x23d   : > { %3144 = vmatmul.mubr.f32.gmra.mxu1 %v3060_v59  ;;  %4347 = vmatprep.subr.mxu1 %v6673_v23 }
 0x23e   : > { %4348 = vmatpush3.msra.mxu1 %v6681_v13  ;;  %3148 = vmatprep.mubr.f32.mxu1 %v3063_v51 }
 0x23f   : > { %4349 = vmatprep.subr.mxu1 %v6689_v12  ;;  %3396 = vmatmul.mubr.f32.gmra.mxu0 %v3957_v28 }
 0x240   : > { %4350 = vmatpush3.msra.mxu1 %v6695_v7  ;;  %3400 = vmatprep.mubr.f32.mxu0 %v3960_v2 }
 0x241   : > { %3149 = vmatmul.mubr.f32.gmra.mxu1 %v3062_v60  ;;  %4351 = vmatprep.subr.mxu1 %v6703_v62 }
 0x242   : > { %4352 = vmatpush3.msra.mxu1 %v6708_v41  ;;  %3153 = vmatprep.mubr.f32.mxu1 %v3065_v39 }
 0x243   : > { %4353 = vmatprep.subr.mxu1 %v6716_v8  ;;  %3401 = vmatmul.mubr.f32.gmra.mxu0 %v3959_v17 }
 0x244   : > { %4354 = vmatpush3.msra.mxu1 %v6721_v37  ;;  %3405 = vmatprep.mubr.f32.mxu0 %v3962_v9 }
 0x245   : > { %3154 = vmatmul.mubr.f32.gmra.mxu1 %v3064_v44  ;;  %4355 = vmatprep.subr.mxu1 %v6729_v25 }
 0x246   : > { %4356 = vmatpush3.msra.mxu1 %v6735_v33  ;;  %3158 = vmatprep.mubr.f32.mxu1 %v3067_v10 }
 0x247   : > { %4357 = vmatprep.subr.mxu1 %v6743_v5  ;;  %3406 = vmatmul.mubr.f32.gmra.mxu0 %v3961_v54 }
 0x248   : > { %4358 = vmatpush3.msra.mxu1 %v6749_v1  ;;  %3410 = vmatprep.mubr.f32.mxu0 %v3964_v35 }
 0x249   : > { %3159 = vmatmul.mubr.f32.gmra.mxu1 %v3066_v18  ;;  %4359 = vmatprep.subr.mxu1 %v6757_v29 }
 0x24a   : > { %4360 = vmatpush3.msra.mxu1 %v6763_v58  ;;  %3163 = vmatprep.mubr.f32.mxu1 %v3069_v24 }
 0x24b   : > { %4361 = vmatprep.subr.mxu1 %v6771_v30  ;;  %3411 = vmatmul.mubr.f32.gmra.mxu0 %v3963_v38 }
 0x24c   : > { %4362 = vmatpush3.msra.mxu1 %v6777_v19  ;;  %3415 = vmatprep.mubr.f32.mxu0 %v3966_v49 }
 0x24d   : > { %3164 = vmatmul.mubr.f32.gmra.mxu1 %v3068_v48  ;;  %4363 = vmatprep.subr.mxu1 %v6785_v63 }
 0x24e   : > { %4364 = vmatpush3.msra.mxu1 %v6791_v4  ;;  %3168 = vmatprep.mubr.f32.mxu1 %v3071_v3 }
 0x24f   : > { %4365 = vmatprep.subr.mxu1 %v6797_v52  ;;  %3416 = vmatmul.mubr.f32.gmra.mxu0 %v3965_v47 }
 0x250   : > { %4366 = vmatpush3.msra.mxu1 %v6803_v57  ;;  %3420 = vmatprep.mubr.f32.mxu0 %v3968_v11 }
 0x251   : > { %3169 = vmatmul.mubr.f32.gmra.mxu1 %v3070_v26  ;;  %4367 = vmatprep.subr.mxu1 %v6808_v22 }
 0x252   : > { %4368 = vmatpush3.msra.mxu1 %v6814_v6  ;;  %3173 = vmatprep.mubr.f32.mxu1 %v3073_v36 }
 0x253   : > { %4369 = vmatprep.subr.mxu1 %v6819_v55  ;;  %3421 = vmatmul.mubr.f32.gmra.mxu0 %v3967_v50 }
 0x254   : > { %4370 = vmatpush3.msra.mxu1 %v6825_v20  ;;  %3425 = vmatprep.mubr.f32.mxu0 %v3970_v53 }
 0x255   : > { %3174 = vmatmul.mubr.f32.gmra.mxu1 %v3072_v15  ;;  %4371 = vmatprep.subr.mxu1 %v6829_v42 }
 0x256   : > { %4372 = vmatpush3.msra.mxu1 %v6833_v31  ;;  %3260 = vmatprep.mubr.f32.mxu1 %v3940_v46 }
 0x257   : > { %4373 = vmatprep.subr.mxu1 %v6837_v21  ;;  %3426 = vmatmul.mubr.f32.gmra.mxu0 %v3969_v32 }
 0x258   : > { %4374 = vmatpush3.msra.mxu1 %v6841_v16 }
 0x259   : > { %3261 = vmatmul.mubr.f32.vlgmr.msra.gmra.mxu1 %v3939_v27  ;;  %4455 = vmatprep.subr.mxu1 %v6647_v34  ;;  %v3943_v34 = vld [vmem:[%s7166_s3 + $0xa0] sm:$0xff] }
 0x25a   : > { %4456 = vmatpush3.msra.mxu1 %v6654_v14  ;;  %3265 = vmatprep.mubr.f32.mxu1 %v3942_v0  ;;  %v3946_v14 = vld [vmem:[%s7166_s3 + $0xb8] sm:$0xff] }
 0x25b   : > { %4457 = vmatprep.subr.mxu1 %v6658_v56  ;;  %v3945_v56 = vld [vmem:[%s7166_s3 + $0xb0] sm:$0xff] }
 0x25c   : > { %4458 = vmatpush3.msra.mxu1 %v6666_v61  ;;  %v3948_v61 = vld [vmem:[%s7166_s3 + $0xc8] sm:$0xff] }
 0x25d   : > { %3266 = vmatmul.mubr.f32.gmra.mxu1 %v3941_v43  ;;  %4459 = vmatprep.subr.mxu1 %v6673_v23  ;;  %v3947_v23 = vld [vmem:[%s7166_s3 + $0xc0] sm:$0xff] }
 0x25e   : > { %4460 = vmatpush3.msra.mxu1 %v6681_v13  ;;  %3270 = vmatprep.mubr.f32.mxu1 %v3944_v40  ;;  %v3950_v13 = vld [vmem:[%s7166_s3 + $0xd8] sm:$0xff] }
 0x25f   : > { %4461 = vmatprep.subr.mxu1 %v6689_v12  ;;  %v3949_v12 = vld [vmem:[%s7166_s3 + $0xd0] sm:$0xff] }
 0x260   : > { %4462 = vmatpush3.msra.mxu1 %v6695_v7  ;;  %v3952_v7 = vld [vmem:[%s7166_s3 + $0xe8] sm:$0xff] }
 0x261   : > { %3271 = vmatmul.mubr.f32.gmra.mxu1 %v3943_v34  ;;  %4463 = vmatprep.subr.mxu1 %v6703_v62  ;;  %v3951_v62 = vld [vmem:[%s7166_s3 + $0xe0] sm:$0xff] }
 0x262   : > { %4464 = vmatpush3.msra.mxu1 %v6708_v41  ;;  %3275 = vmatprep.mubr.f32.mxu1 %v3946_v14  ;;  %v3954_v41 = vld [vmem:[%s7166_s3 + $0xf8] sm:$0xff] }
 0x263   : > { %4465 = vmatprep.subr.mxu1 %v6716_v8  ;;  %v3953_v8 = vld [vmem:[%s7166_s3 + $0xf0] sm:$0xff] }
 0x264   : > { %4466 = vmatpush3.msra.mxu1 %v6721_v37  ;;  %v3972_v37 = vld [vmem:[%s7166_s3 + $0x188] sm:$0xff] }
 0x265   : > { %3276 = vmatmul.mubr.f32.gmra.mxu1 %v3945_v56  ;;  %4467 = vmatprep.subr.mxu1 %v6729_v25  ;;  %v3971_v25 = vld [vmem:[%s7166_s3 + $0x180] sm:$0xff] }
 0x266   : > { %4468 = vmatpush3.msra.mxu1 %v6735_v33  ;;  %3280 = vmatprep.mubr.f32.mxu1 %v3948_v61  ;;  %v3974_v33 = vld [vmem:[%s7166_s3 + $0x198] sm:$0xff] }
 0x267   : > { %4469 = vmatprep.subr.mxu1 %v6743_v5  ;;  %v3973_v5 = vld [vmem:[%s7166_s3 + $0x190] sm:$0xff] }
 0x268   : > { %4470 = vmatpush3.msra.mxu1 %v6749_v1  ;;  %v3976_v1 = vld [vmem:[%s7166_s3 + $0x1a8] sm:$0xff] }
 0x269   : > { %3281 = vmatmul.mubr.f32.gmra.mxu1 %v3947_v23  ;;  %4471 = vmatprep.subr.mxu1 %v6757_v29  ;;  %v3975_v29 = vld [vmem:[%s7166_s3 + $0x1a0] sm:$0xff] }
 0x26a   : > { %4472 = vmatpush3.msra.mxu1 %v6763_v58  ;;  %3285 = vmatprep.mubr.f32.mxu1 %v3950_v13  ;;  %v3978_v58 = vld [vmem:[%s7166_s3 + $0x1b8] sm:$0xff] }
 0x26b   : > { %4473 = vmatprep.subr.mxu1 %v6771_v30  ;;  %v3977_v30 = vld [vmem:[%s7166_s3 + $0x1b0] sm:$0xff] }
 0x26c   : > { %4474 = vmatpush3.msra.mxu1 %v6777_v19  ;;  %v3980_v19 = vld [vmem:[%s7166_s3 + $0x1c8] sm:$0xff] }
 0x26d   : > { %3286 = vmatmul.mubr.f32.gmra.mxu1 %v3949_v12  ;;  %4475 = vmatprep.subr.mxu1 %v6785_v63  ;;  %v3979_v63 = vld [vmem:[%s7166_s3 + $0x1c0] sm:$0xff] }
 0x26e   : > { %4476 = vmatpush3.msra.mxu1 %v6791_v4  ;;  %3290 = vmatprep.mubr.f32.mxu1 %v3952_v7  ;;  %v3982_v4 = vld [vmem:[%s7166_s3 + $0x1d8] sm:$0xff] }
 0x26f   : > { %4477 = vmatprep.subr.mxu1 %v6797_v52  ;;  %v3981_v52 = vld [vmem:[%s7166_s3 + $0x1d0] sm:$0xff] }
 0x270   : > { %4478 = vmatpush3.msra.mxu1 %v6803_v57  ;;  %v3984_v57 = vld [vmem:[%s7166_s3 + $0x1e8] sm:$0xff] }
 0x271   : > { %3291 = vmatmul.mubr.f32.gmra.mxu1 %v3951_v62  ;;  %4479 = vmatprep.subr.mxu1 %v6808_v22  ;;  %v3983_v22 = vld [vmem:[%s7166_s3 + $0x1e0] sm:$0xff] }
 0x272   : > { %4480 = vmatpush3.msra.mxu1 %v6814_v6  ;;  %3295 = vmatprep.mubr.f32.mxu1 %v3954_v41  ;;  %v3986_v6 = vld [vmem:[%s7166_s3 + $0x1f8] sm:$0xff] }
 0x273   : > { %4481 = vmatprep.subr.mxu1 %v6819_v55  ;;  %v3985_v55 = vld [vmem:[%s7166_s3 + $0x1f0] sm:$0xff] }
 0x274   : > { %4482 = vmatpush3.msra.mxu1 %v6825_v20 }
 0x275   : > { %3296 = vmatmul.mubr.f32.gmra.mxu1 %v3953_v8  ;;  %4483 = vmatprep.subr.mxu1 %v6829_v42 }
 0x276   : > { %4484 = vmatpush3.msra.mxu1 %v6833_v31  ;;  %3520 = vmatprep.mubr.f32.mxu1 %v3972_v37 }
 0x277   : > { %4485 = vmatprep.subr.mxu1 %v6837_v21 }
 0x278   : > { %4486 = vmatpush3.msra.mxu1 %v6841_v16 }
 0x279   : > { %3521 = vmatmul.mubr.f32.vlgmr.msra.gmra.mxu1 %v3971_v25 }
 0x27a   : > { %3525 = vmatprep.mubr.f32.mxu1 %v3974_v33 }
 0x27d   : > { %3526 = vmatmul.mubr.f32.gmra.mxu1 %v3973_v5 }
 0x27e   : > { %3530 = vmatprep.mubr.f32.mxu1 %v3976_v1 }
 0x281   : > { %3531 = vmatmul.mubr.f32.gmra.mxu1 %v3975_v29 }
 0x282   : > { %3535 = vmatprep.mubr.f32.mxu1 %v3978_v58 }
 0x285   : > { %3536 = vmatmul.mubr.f32.gmra.mxu1 %v3977_v30 }
 0x286   : > { %3540 = vmatprep.mubr.f32.mxu1 %v3980_v19 }
 0x289   : > { %3541 = vmatmul.mubr.f32.gmra.mxu1 %v3979_v63 }
 0x28a   : > { %3545 = vmatprep.mubr.f32.mxu1 %v3982_v4 }
 0x28d   : > { %3546 = vmatmul.mubr.f32.gmra.mxu1 %v3981_v52 }
 0x28e   : > { %3550 = vmatprep.mubr.f32.mxu1 %v3984_v57 }
 0x291   : > { %3551 = vmatmul.mubr.f32.gmra.mxu1 %v3983_v22 }
 0x292   : > { %3555 = vmatprep.mubr.f32.mxu1 %v3986_v6 }
 0x295   : > { %3556 = vmatmul.mubr.f32.gmra.mxu1 %v3985_v55 }
 0x2f9   : > { %v4319_v20 = vpop.f32.mrf.mxu1 }
 0x2fb   : > { %v4320_v42 = vpop.f32.mrf.mxu1  ;;  %v4431_v10 = vpop.f32.mrf.mxu0 }
 0x2fc   : > { %v4321_v23 = vadd.f32 %v4320_v42, %v4319_v20 }
 0x2fd   : > { %v4322_v31 = vpop.f32.mrf.mxu1  ;;  %v4432_v18 = vpop.f32.mrf.mxu0 }
 0x2fe   : > { %v4433_v7 = vadd.f32 %v4432_v18, %v4431_v10 }
 0x2ff   : > { %v4323_v21 = vpop.f32.mrf.mxu1  ;;  %v4434_v49 = vpop.f32.mrf.mxu0 }
 0x300   : > { %v4324_v37 = vadd.f32 %v4323_v21, %v4322_v31 }
 0x301   : > { %v4325_v16 = vpop.f32.mrf.mxu1  ;;  %v4435_v47 = vpop.f32.mrf.mxu0 }
 0x302   : > { %v4436_v25 = vadd.f32 %v4435_v47, %v4434_v49 }
 0x303   : > { %v4326_v45 = vpop.f32.mrf.mxu1  ;;  %v4437_v26 = vpop.f32.mrf.mxu0 }
 0x304   : > { %v4327_v63 = vadd.f32 %v4326_v45, %v4325_v16 }
 0x305   : > { %v7099_v59 = vpop.f32.mrf.mxu1  ;;  %v4438_v53 = vpop.f32.mrf.mxu0 }
 0x306   : > { %v4439_v52 = vadd.f32 %v4438_v53, %v4437_v26 }
 0x307   : > { %v7101_v51 = vpop.f32.mrf.mxu1  ;;  %v4440_v32 = vpop.f32.mrf.mxu0 }
 0x308   : > { %v4330_v21 = vadd.f32 %v7101_v51, %v7099_v59 }
 0x309   : > { %v7103_v28 = vpop.f32.mrf.mxu1  ;;  %v4441_v43 = vpop.f32.mrf.mxu0 }
 0x30b   : > { %v7105_v2 = vpop.f32.mrf.mxu1  ;;  %v4443_v56 = vpop.f32.mrf.mxu0 }
 0x30d   : > { %v7107_v60 = vpop.f32.mrf.mxu1  ;;  %v4444_v41 = vpop.f32.mrf.mxu0 }
 0x30f   : > { %v7109_v39 = vpop.f32.mrf.mxu1  ;;  %v4446_v30 = vpop.f32.mrf.mxu0 }
 0x311   : > { %v7111_v17 = vpop.f32.mrf.mxu1  ;;  %v4447_v42 = vpop.f32.mrf.mxu0 }
 0x313   : > { %v7113_v9 = vpop.f32.mrf.mxu1  ;;  %v4449_v49 = vpop.f32.mrf.mxu0 }
 0x315   : > { %v7115_v44 = vpop.f32.mrf.mxu1  ;;  %v4450_v53 = vpop.f32.mrf.mxu0 }
 0x317   : > { %v7117_v54 = vpop.f32.mrf.mxu1 }
 0x319   : > { %v4375_v35 = vpop.f32.mrf.mxu1 }
 0x31b   : > { %v4376_v24 = vpop.f32.mrf.mxu1 }
 0x31c   : > { %v4377_v14 = vadd.f32 %v4376_v24, %v4375_v35  ;;  %v4442_v35 = vadd.f32 %v4441_v43, %v4440_v32  ;;  %v4448_v43 = vadd.f32 %v4447_v42, %v4446_v30 }
 0x31d   : > { %v4378_v38 = vpop.f32.mrf.mxu1 }
 0x31e   : > { %v3301_v12 = vmax.f32 %v4321_v23, %v4377_v14 }
 0x31f   : > { %v4379_v48 = vpop.f32.mrf.mxu1 }
 0x320   : > { %v4380_v62 = vadd.f32 %v4379_v48, %v4378_v38  ;;  %v3431_v5 = vmax.f32 %v3301_v12, %v4433_v7  ;;  %v4339_v12 = vadd.f32 %v7113_v9, %v7111_v17 }
 0x321   : > { %v4381_v3 = vpop.f32.mrf.mxu1 }
 0x322   : > { %v3302_v1 = vmax.f32 %v4324_v37, %v4380_v62  ;;  %v4451_v62 = vadd.f32 %v4450_v53, %v4449_v49 }
 0x323   : > { %v4382_v11 = vpop.f32.mrf.mxu1 }
 0x324   : > { %v4383_v29 = vadd.f32 %v4382_v11, %v4381_v3  ;;  %v3432_v22 = vmax.f32 %v3302_v1, %v4436_v25  ;;  %v4333_v3 = vadd.f32 %v7105_v2, %v7103_v28  ;;  %v4445_v11 = vadd.f32 %v4444_v41, %v4443_v56 }
 0x325   : > { %v4384_v36 = vpop.f32.mrf.mxu1  ;;  %v4342_v25 = vadd.f32 %v7117_v54, %v7115_v44 }
 0x326   : > { %v3303_v6 = vmax.f32 %v4327_v63, %v4383_v29 }
 0x327   : > { %v4385_v50 = vpop.f32.mrf.mxu1 }
 0x328   : > { %v4386_v55 = vadd.f32 %v4385_v50, %v4384_v36  ;;  %v3433_v16 = vmax.f32 %v3303_v6, %v4439_v52 }
 0x329   : > { %v4387_v15 = vpop.f32.mrf.mxu1 }
 0x32a   : > { %v3304_v45 = vmax.f32 %v4330_v21, %v4386_v55 }
 0x32b   : > { %v4388_v46 = vpop.f32.mrf.mxu1 }
 0x32c   : > { %v4389_v24 = vadd.f32 %v4388_v46, %v4387_v15  ;;  %v3434_v59 = vmax.f32 %v3304_v45, %v4442_v35  ;;  %v4336_v46 = vadd.f32 %v7109_v39, %v7107_v60 }
 0x32d   : > { %v4390_v27 = vpop.f32.mrf.mxu1 }
 0x32e   : > { %v3305_v51 = vmax.f32 %v4333_v3, %v4389_v24 }
 0x32f   : > { %v4391_v0 = vpop.f32.mrf.mxu1 }
 0x330   : > { %v4392_v36 = vadd.f32 %v4391_v0, %v4390_v27  ;;  %v3435_v28 = vmax.f32 %v3305_v51, %v4445_v11  ;;  %v4452_v27 = vpop.f32.mrf.mxu0 }
 0x331   : > { %v7119_v40 = vpop.f32.mrf.mxu1 }
 0x332   : > { %v3306_v2 = vmax.f32 %v4336_v46, %v4392_v36 }
 0x333   : > { %v4394_v34 = vpop.f32.mrf.mxu1 }
 0x334   : > { %v4395_v56 = vadd.f32 %v4394_v34, %v7119_v40  ;;  %v3436_v39 = vmax.f32 %v3306_v2, %v4448_v43  ;;  %v4453_v34 = vpop.f32.mrf.mxu0 }
 0x335   : > { %v7121_v61 = vpop.f32.mrf.mxu1  ;;  %v4454_v1 = vadd.f32 %v4453_v34, %v4452_v27 }
 0x336   : > { %v3307_v41 = vmax.f32 %v4339_v12, %v4395_v56 }
 0x337   : > { %v7123_v13 = vpop.f32.mrf.mxu1 }
 0x339   : > { %v4487_v8 = vpop.f32.mrf.mxu1 }
 0x33b   : > { %v4488_v33 = vpop.f32.mrf.mxu1 }
 0x33c   : > { %v4489_v58 = vadd.f32 %v4488_v33, %v4487_v8  ;;  %v4398_v8 = vadd.f32 %v7123_v13, %v7121_v61  ;;  %v3437_v33 = vmax.f32 %v3307_v41, %v4451_v62 }
 0x33d   : > { %v4490_v19 = vpop.f32.mrf.mxu1 }
 0x33e   : > { %v3561_v4 = vmax.f32 %v3431_v5, %v4489_v58  ;;  %v3308_v5 = vmax.f32 %v4342_v25, %v4398_v8 }
 0x33f   : > { %v4491_v57 = vpop.f32.mrf.mxu1 }
 0x340   : > { %3570 = vst.msk [vmem:[%s7129_s20] sm:$0xff] %vm3569_vm4, %v3561_v4  ;;  %v4492_v20 = vadd.f32 %v4491_v57, %v4490_v19  ;;  %v3438_v30 = vmax.f32 %v3308_v5, %v4454_v1 }
 0x341   : > { %v4493_v31 = vpop.f32.mrf.mxu1 }
 0x342   : > { %v3562_v10 = vmax.f32 %v3432_v22, %v4492_v20 }
 0x343   : > { %v4494_v18 = vpop.f32.mrf.mxu1 }
 0x344   : > { %3571 = vst.msk [vmem:[%s7129_s20 + $0x8] sm:$0xff] %vm3569_vm4, %v3562_v10  ;;  %v4495_v38 = vadd.f32 %v4494_v18, %v4493_v31 }
 0x345   : > { %v4496_v48 = vpop.f32.mrf.mxu1 }
 0x346   : > { %v3563_v47 = vmax.f32 %v3433_v16, %v4495_v38 }
 0x347   : > { %v4497_v26 = vpop.f32.mrf.mxu1 }
 0x348   : > { %3572 = vst.msk [vmem:[%s7129_s20 + $0x10] sm:$0xff] %vm3569_vm4, %v3563_v47  ;;  %v4498_v50 = vadd.f32 %v4497_v26, %v4496_v48 }
 0x349   : > { %v4499_v15 = vpop.f32.mrf.mxu1 }
 0x34a   : > { %v3564_v32 = vmax.f32 %v3434_v59, %v4498_v50 }
 0x34b   : > { %v4500_v14 = vpop.f32.mrf.mxu1 }
 0x34c   : > { %3573 = vst.msk [vmem:[%s7129_s20 + $0x18] sm:$0xff] %vm3569_vm4, %v3564_v32  ;;  %v4501_v23 = vadd.f32 %v4500_v14, %v4499_v15 }
 0x34d   : > { %v4502_v0 = vpop.f32.mrf.mxu1 }
 0x34e   : > { %v3565_v7 = vmax.f32 %v3435_v28, %v4501_v23 }
 0x34f   : > { %v4503_v60 = vpop.f32.mrf.mxu1 }
 0x350   : > { %3574 = vst.msk [vmem:[%s7129_s20 + $0x20] sm:$0xff] %vm3569_vm4, %v3565_v7  ;;  %v4504_v40 = vadd.f32 %v4503_v60, %v4502_v0 }
 0x351   : > { %v4505_v37 = vpop.f32.mrf.mxu1 }
 0x352   : > { %v3566_v17 = vmax.f32 %v3436_v39, %v4504_v40 }
 0x353   : > { %v4506_v9 = vpop.f32.mrf.mxu1 }
 0x354   : > { %3575 = vst.msk [vmem:[%s7129_s20 + $0x28] sm:$0xff] %vm3569_vm4, %v3566_v17  ;;  %v4507_v29 = vadd.f32 %v4506_v9, %v4505_v37 }
 0x355   : > { %v4508_v58 = vpop.f32.mrf.mxu1 }
 0x356   : > { %v3567_v61 = vmax.f32 %v3437_v33, %v4507_v29 }
 0x357   : > { %v4509_v13 = vpop.f32.mrf.mxu1 }
 0x358   : > { %3576 = vst.msk [vmem:[%s7129_s20 + $0x30] sm:$0xff] %vm3569_vm4, %v3567_v61  ;;  %v4510_v19 = vadd.f32 %v4509_v13, %v4508_v58 }
 0x35a   : > { %v3568_v63 = vmax.f32 %v3438_v30, %v4510_v19 }
 0x35c   : > { %3577 = vst.msk [vmem:[%s7129_s20 + $0x38] sm:$0xff] %vm3569_vm4, %v3568_v63 }
 0x35d PF: > { %s14_s15 = sadd.s32 1, %s4976_s15  }
 0x35e   : > { %p11_p4 = scmp.ge.s32.totalorder %s14_s15, 4  }
 0x360   :  { %13 = sbr.rel (!%p11_p4) target bundleno = 1 (0x1), region = 69 }

</bundles_post_ra>
